<compile_context>
chip_gen: v5e
topology: v5e:2x2
jax: 0.10.0
libtpu: 0.0.40
codegen_flags: <defaults>
</compile_context>

<pallas_src>
import functools

import jax
import jax.numpy as jnp
from jax import lax
from jax.experimental import pallas as pl
from jax.experimental.pallas import tpu as pltpu


_NEG_INF = float("-inf")


def _attn_kernel(q_ref, k_ref, v_ref, qm_ref, bias_ref, o_ref,
                 m_scr, l_scr, acc_scr, *,
                 num_heads, head_dim, temp, mxu_dtype, exp_dtype):
    """One grid step = (batch n, L-block l, S-block s); all heads in-kernel.

    q_ref : (1, Lb, H*D)   k_ref/v_ref : (1, Sb, H*D)
    qm_ref: (1, Lb, 1) f32 bias_ref    : (1, 1, Sb) f32 (0 valid / -inf masked)
    o_ref : (1, Lb, H*D)
    m_scr/l_scr : (H, Lb, 1) f32 online-softmax state; acc_scr : (H, Lb, D) f32.
    """
    s_idx = pl.program_id(2)
    neg_inf = jnp.float32(_NEG_INF)

    @pl.when(s_idx == 0)
    def _init():
        m_scr[...] = jnp.full_like(m_scr, neg_inf)
        l_scr[...] = jnp.zeros_like(l_scr)
        acc_scr[...] = jnp.zeros_like(acc_scr)

    q_all = q_ref[0] * temp              # fold 1/sqrt(D) into Q once (Lb*HD mults)
    k_all = k_ref[0]
    v_all = v_ref[0]
    bias = bias_ref[0]                   # (1, Sb) additive kv-mask bias

    for h in range(num_heads):           # static unroll; heads are lane slices of H*D
        lo = h * head_dim
        hi = lo + head_dim
        q_h = q_all[:, lo:hi].astype(mxu_dtype)
        k_h = k_all[:, lo:hi].astype(mxu_dtype)
        v_h = v_all[:, lo:hi].astype(mxu_dtype)

        # scores: contract over D (no K transpose), f32 MXU accumulation
        s = lax.dot_general(q_h, k_h, (((1,), (1,)), ((), ())),
                            preferred_element_type=jnp.float32)
        s = s + bias                                             # (Lb, Sb) kv masking

        m_prev = m_scr[h]                                        # (Lb, 1)
        l_prev = l_scr[h]
        acc_prev = acc_scr[h]                                    # (Lb, D)

        m_cur = jnp.max(s, axis=-1, keepdims=True)
        m_new = jnp.maximum(m_prev, m_cur)
        m_safe = jnp.where(m_new > neg_inf, m_new, 0.0)          # avoid (-inf)-(-inf)
        alpha = jnp.exp(m_prev - m_safe)                         # (Lb, 1) f32

        p = jnp.exp((s - m_safe).astype(exp_dtype))              # (Lb, Sb) EUP
        l_scr[h] = alpha * l_prev + jnp.sum(p.astype(jnp.float32),
                                            axis=-1, keepdims=True)
        pv = jnp.dot(p.astype(mxu_dtype), v_h,
                     preferred_element_type=jnp.float32)         # (Lb, D) MXU
        acc_scr[h] = alpha * acc_prev + pv
        m_scr[h] = m_new

    @pl.when(s_idx == pl.num_programs(2) - 1)
    def _finalize():
        q_valid = qm_ref[0] > 0.0                                # (Lb, 1)
        for h in range(num_heads):
            lo = h * head_dim
            l_h = l_scr[h]
            row_ok = jnp.logical_and(l_h > 0.0, q_valid)         # nan_to_num rows -> 0
            inv = pl.reciprocal(jnp.where(row_ok, l_h, 1.0), approx=True)
            scale = jnp.where(row_ok, inv, 0.0)                  # (Lb, 1)
            o_ref[0, :, lo:lo + head_dim] = (acc_scr[h] * scale).astype(o_ref.dtype)


def _ceil_to(x, m):
    return ((x + m - 1) // m) * m


def _vmem_capacity_bytes():
    try:
        info = pltpu.get_tpu_info()
        cap = getattr(info, "vmem_capacity_bytes", None)
        if cap:
            return int(cap)
    except Exception:
        pass
    return 64 << 20     # conservative fallback (v7x per-core VMEM)


def _default_exp_dtype():
    # bf16 EUP exists on v6e / v7x; keep f32 exp on older generations (v5e etc.).
    try:
        kind = jax.devices()[0].device_kind.lower()
    except Exception:
        return jnp.float32
    if any(tag in kind for tag in ("v6", "v7", "7x")):
        return jnp.bfloat16
    return jnp.float32


def _working_set_bytes(block_l, block_s, num_heads, head_dim, hd,
                       in_itemsize, out_itemsize, kv_buffers):
    lane = 128
    q_bytes = 2 * block_l * hd * in_itemsize                     # double-buffered Q
    o_bytes = 2 * block_l * hd * out_itemsize                    # double-buffered out
    kv_bytes = kv_buffers * 2 * block_s * hd * in_itemsize       # K + V blocks
    score_bytes = 3 * block_l * block_s * 4                      # s / p temporaries
    acc_lanes = _ceil_to(head_dim, lane)
    scratch_bytes = num_heads * block_l * (2 * lane + acc_lanes) * 4  # m, l, acc
    mask_bytes = 2 * block_l * lane * 4 + 2 * 8 * max(block_s, lane) * 4
    return q_bytes + o_bytes + kv_bytes + score_bytes + scratch_bytes + mask_bytes


def _choose_blocks(L, S, num_heads, head_dim, hd, in_itemsize, out_itemsize, budget):
    """Largest L block first; keep K/V resident (single S tile) when the working set
    fits the VMEM budget, otherwise tile S for the online-softmax path."""
    l8 = _ceil_to(max(L, 1), 8)
    bl_cands = ([l8] if l8 <= 512 else []) + [b for b in (512, 256, 128, 64, 32, 16, 8)
                                              if b < l8]

    def fits(bl, bs, kv_bufs):
        return _working_set_bytes(bl, bs, num_heads, head_dim, hd,
                                  in_itemsize, out_itemsize, kv_bufs) <= budget

    for bl in bl_cands:                           # resident K/V, single-buffered
        if fits(bl, S, 1):
            return bl, S
    for bs in (2048, 1024, 512, 256, 128):        # S-tiled, double-buffered K/V
        if bs >= S:
            continue
        for bl in bl_cands:
            if fits(bl, bs, 2):
                return bl, bs
    return bl_cands[-1], (S if S <= 128 else 128)


def full_attention(queries, keys, values, q_mask=None, kv_mask=None, *,
                   mxu_dtype=jnp.bfloat16, exp_dtype=None,
                   block_l=None, block_s=None):
    """FullAttention.forward (use_dropout=False path).

    queries: [N, L, H, D]; keys/values: [N, S, H, D]; q_mask: [N, L]; kv_mask: [N, S].
    Returns [N, L, H, D]. Matmuls run in bf16 with f32 accumulation by default.
    """
    N, L, H, D = queries.shape
    S = keys.shape[1]
    HD = H * D
    in_dtype = queries.dtype
    if mxu_dtype is None:
        mxu_dtype = in_dtype
    if exp_dtype is None:
        exp_dtype = _default_exp_dtype()

    # Free reshapes (merge contiguous minor dims) — no HBM transpose passes.
    q = queries.reshape(N, L, HD)
    k = keys.reshape(N, S, HD)
    v = values.reshape(N, S, HD)

    # Tiny per-row / per-column mask vectors instead of an [N, L, S] mask tensor.
    if q_mask is None:
        qm = jnp.ones((N, L, 1), jnp.float32)
    else:
        qm = q_mask.astype(jnp.float32).reshape(N, L, 1)
    if kv_mask is None:
        kv_bias = jnp.zeros((N, 1, S), jnp.float32)
    else:
        kv_bias = jnp.where(kv_mask.astype(bool).reshape(N, 1, S),
                            jnp.float32(0.0), jnp.float32(_NEG_INF))

    # Generation-aware VMEM budget (64 MiB on v7x, 128 MiB on v5e/v6e).
    budget = int(0.75 * _vmem_capacity_bytes())
    itemsize = jnp.dtype(in_dtype).itemsize
    if block_l is None or block_s is None:
        bl, bs = _choose_blocks(L, S, H, D, HD, itemsize, itemsize, budget)
        block_l = block_l or bl
        block_s = block_s or bs

    # Sanitize blocks and pad L / S so all blocks are (8,128)-legal.
    block_l = max(8, min(_ceil_to(int(block_l), 8), _ceil_to(L, 8)))
    block_s = int(block_s)
    if block_s < S:
        block_s = _ceil_to(block_s, 128)
    if block_s >= S:
        block_s = S
    Lp = _ceil_to(L, block_l)
    Sp = _ceil_to(S, block_s)

    if Lp != L:
        q = jnp.pad(q, ((0, 0), (0, Lp - L), (0, 0)))
        qm = jnp.pad(qm, ((0, 0), (0, Lp - L), (0, 0)))                 # pad rows masked
    if Sp != S:
        k = jnp.pad(k, ((0, 0), (0, Sp - S), (0, 0)))
        v = jnp.pad(v, ((0, 0), (0, Sp - S), (0, 0)))
        kv_bias = jnp.pad(kv_bias, ((0, 0), (0, 0), (0, Sp - S)),
                          constant_values=_NEG_INF)                     # pad cols masked

    grid = (N, Lp // block_l, Sp // block_s)
    num_s_blocks = grid[2]
    temp = 1.0 / float(D) ** 0.5

    kernel = functools.partial(_attn_kernel, num_heads=H, head_dim=D, temp=temp,
                               mxu_dtype=mxu_dtype, exp_dtype=exp_dtype)

    scratch_shapes = [pltpu.VMEM((H, block_l, 1), jnp.float32),   # m
                      pltpu.VMEM((H, block_l, 1), jnp.float32),   # l
                      pltpu.VMEM((H, block_l, D), jnp.float32)]   # acc

    def build(kv_pipeline_mode):
        kv_kwargs = ({} if kv_pipeline_mode is None
                     else dict(pipeline_mode=kv_pipeline_mode))
        in_specs = [
            pl.BlockSpec((1, block_l, HD), lambda n, l, s: (n, l, 0)),               # Q
            pl.BlockSpec((1, block_s, HD), lambda n, l, s: (n, s, 0), **kv_kwargs),  # K
            pl.BlockSpec((1, block_s, HD), lambda n, l, s: (n, s, 0), **kv_kwargs),  # V
            pl.BlockSpec((1, block_l, 1), lambda n, l, s: (n, l, 0)),                # q mask
            pl.BlockSpec((1, 1, block_s), lambda n, l, s: (n, 0, s)),                # kv bias
        ]
        out_specs = pl.BlockSpec((1, block_l, HD), lambda n, l, s: (n, l, 0))
        return pl.pallas_call(
            kernel,
            out_shape=jax.ShapeDtypeStruct((N, Lp, HD), in_dtype),
            grid_spec=pltpu.PrefetchScalarGridSpec(
                num_scalar_prefetch=0,
                grid=grid,
                in_specs=in_specs,
                out_specs=out_specs,
                scratch_shapes=scratch_shapes),
            compiler_params=pltpu.CompilerParams(
                dimension_semantics=("parallel", "arbitrary", "arbitrary"),
                vmem_limit_bytes=budget),
        )

    # Single-buffer K/V when fully resident (their block index only changes with the
    # batch axis), halving the dominant VMEM term; fall back if unsupported.
    if num_s_blocks == 1:
        try:
            out = build(pl.Buffered(1))(q, k, v, qm, kv_bias)
        except Exception:
            out = build(None)(q, k, v, qm, kv_bias)
    else:
        out = build(None)(q, k, v, qm, kv_bias)

    if Lp != L:
        out = out[:, :L]
    return out.reshape(N, L, H, D)


def _reference(queries, keys, values, q_mask=None, kv_mask=None):
    N, L, H, D = queries.shape
    S = keys.shape[1]
    if q_mask is None:
        q_mask = jnp.ones((N, L), bool)
    if kv_mask is None:
        kv_mask = jnp.ones((N, S), bool)
    qk = jnp.einsum('nlhd,nshd->nlsh', queries.astype(jnp.float32),
                    keys.astype(jnp.float32))
    mask = q_mask[:, :, None, None] & kv_mask[:, None, :, None]
    s = jnp.where(mask, qk, -jnp.inf) / jnp.sqrt(jnp.float32(D))
    m = jnp.max(s, axis=2, keepdims=True)
    m = jnp.where(jnp.isfinite(m), m, 0.0)
    p = jnp.exp(s - m)
    a = p / jnp.sum(p, axis=2, keepdims=True)
    a = jnp.where(jnp.isfinite(a), a, 0.0)
    return jnp.einsum('nlsh,nshd->nlhd', a, values.astype(jnp.float32))


if __name__ == "__main__":
    ks = jax.random.split(jax.random.PRNGKey(0), 9)

    # --- Test 1: resident-K/V path, boolean masks, fully-masked query row ---
    N, L, S, H, D = 2, 16, 12, 4, 32
    queries = jax.random.normal(ks[0], (N, L, H, D), dtype=jnp.float32)
    keys = jax.random.normal(ks[1], (N, S, H, D), dtype=jnp.float32)
    values = jax.random.normal(ks[2], (N, S, H, D), dtype=jnp.float32)
    q_mask = jax.random.bernoulli(ks[3], 0.8, (N, L))
    kv_mask = jax.random.bernoulli(ks[4], 0.8, (N, S))
    q_mask = q_mask.at[0, 3].set(False)          # fully-masked query row
    kv_mask = kv_mask.at[1, :].set(True)

    out = jax.block_until_ready(full_attention(queries, keys, values, q_mask, kv_mask))
    ref = _reference(queries, keys, values, q_mask, kv_mask)
    assert out.shape == (N, L, H, D)
    assert bool(jnp.all(out[0, 3] == 0.0)), "fully-masked query row must be exactly zero"
    assert jnp.allclose(out, ref, atol=5e-2, rtol=5e-2), "mismatch vs reference (masked)"

    # no-mask path on the same shapes
    out_nm = jax.block_until_ready(full_attention(queries, keys, values))
    ref_nm = _reference(queries, keys, values)
    assert jnp.allclose(out_nm, ref_nm, atol=5e-2, rtol=5e-2), "mismatch (no mask)"

    # --- Test 2: forced S-tiled online-softmax path, with L and S padding ---
    N2, L2, S2, H2, D2 = 1, 30, 200, 2, 64
    queries2 = jax.random.normal(ks[5], (N2, L2, H2, D2), dtype=jnp.float32)
    keys2 = jax.random.normal(ks[6], (N2, S2, H2, D2), dtype=jnp.float32)
    values2 = jax.random.normal(ks[7], (N2, S2, H2, D2), dtype=jnp.float32)
    kv_mask2 = jax.random.bernoulli(ks[8], 0.9, (N2, S2))
    q_mask2 = jnp.ones((N2, L2), bool)

    out2 = jax.block_until_ready(
        full_attention(queries2, keys2, values2, q_mask2, kv_mask2,
                       block_l=16, block_s=128))
    ref2 = _reference(queries2, keys2, values2, q_mask2, kv_mask2)
    assert out2.shape == (N2, L2, H2, D2)
    assert jnp.allclose(out2, ref2, atol=5e-2, rtol=5e-2), "mismatch (S-tiled path)"

    print("KERNEL_OK")
</pallas_src>

<mosaic_0001>
module attributes {stable_mosaic.version = 11 : i64} {
  func.func @_attn_kernel(%arg0: i32, %arg1: i32, %arg2: i32, %arg3: memref<1x16x128xf32, #tpu.memory_space<vmem>>, %arg4: memref<1x12x128xf32, #tpu.memory_space<vmem>>, %arg5: memref<1x12x128xf32, #tpu.memory_space<vmem>>, %arg6: memref<1x16x1xf32, #tpu.memory_space<vmem>>, %arg7: memref<1x1x12xf32, #tpu.memory_space<vmem>>, %arg8: memref<1x16x128xf32, #tpu.memory_space<vmem>>, %arg9: memref<4x16x1xf32, #tpu.memory_space<vmem>>, %arg10: memref<4x16x1xf32, #tpu.memory_space<vmem>>, %arg11: memref<4x16x32xf32, #tpu.memory_space<vmem>>) attributes {dimension_semantics = [#tpu.dimension_semantics<parallel>, #tpu.dimension_semantics<arbitrary>, #tpu.dimension_semantics<arbitrary>], iteration_bounds = array<i64: 2, 1, 1>, scalar_prefetch = 0 : i64, scratch_operands = 3 : i64, tpu.core_type = #tpu.core_type<tc>, window_params = [{transform_indices = @transform_0, window_bounds = array<i64: 1, 16, 128>}, {pipeline_mode = #tpu.pipeline_mode<synchronous>, transform_indices = @transform_1, window_bounds = array<i64: 1, 12, 128>}, {pipeline_mode = #tpu.pipeline_mode<synchronous>, transform_indices = @transform_2, window_bounds = array<i64: 1, 12, 128>}, {transform_indices = @transform_3, window_bounds = array<i64: 1, 16, 1>}, {transform_indices = @transform_4, window_bounds = array<i64: 1, 1, 12>}, {transform_indices = @transform_5, window_bounds = array<i64: 1, 16, 128>}]} {
    %c0_i32 = arith.constant 0 : i32
    %0 = arith.cmpi eq, %arg2, %c0_i32 : i32
    %1 = arith.extui %0 : i1 to i32
    %cst = arith.constant 0xFF800000 : f32
    %c0_i32_0 = arith.constant 0 : i32
    %2 = arith.cmpi ne, %1, %c0_i32_0 : i32
    scf.if %2 {
      %196 = vector.broadcast %cst : f32 to vector<4x16x1xf32>
      %c0_108 = arith.constant 0 : index
      %c0_109 = arith.constant 0 : index
      %c0_110 = arith.constant 0 : index
      %197 = vector.load %arg9[%c0_108, %c0_109, %c0_110] : memref<4x16x1xf32, #tpu.memory_space<vmem>>, vector<4x16x1xf32>
      tpu.vector_store %arg9[%c0_108, %c0_109, %c0_110], %196 {strides = array<i32>} : memref<4x16x1xf32, #tpu.memory_space<vmem>>, vector<4x16x1xf32>,
      %cst_111 = arith.constant 0.000000e+00 : f32
      %198 = vector.broadcast %cst_111 : f32 to vector<4x16x1xf32>
      %c0_112 = arith.constant 0 : index
      %c0_113 = arith.constant 0 : index
      %c0_114 = arith.constant 0 : index
      %199 = vector.load %arg10[%c0_112, %c0_113, %c0_114] : memref<4x16x1xf32, #tpu.memory_space<vmem>>, vector<4x16x1xf32>
      tpu.vector_store %arg10[%c0_112, %c0_113, %c0_114], %198 {strides = array<i32>} : memref<4x16x1xf32, #tpu.memory_space<vmem>>, vector<4x16x1xf32>,
      %cst_115 = arith.constant 0.000000e+00 : f32
      %200 = vector.broadcast %cst_115 : f32 to vector<4x16x32xf32>
      %c0_116 = arith.constant 0 : index
      %c0_117 = arith.constant 0 : index
      %c0_118 = arith.constant 0 : index
      %201 = vector.load %arg11[%c0_116, %c0_117, %c0_118] : memref<4x16x32xf32, #tpu.memory_space<vmem>>, vector<4x16x32xf32>
      tpu.vector_store %arg11[%c0_116, %c0_117, %c0_118], %200 {strides = array<i32>} : memref<4x16x32xf32, #tpu.memory_space<vmem>>, vector<4x16x32xf32>,
    } else {
    }
    %c0 = arith.constant 0 : index
    %c0_1 = arith.constant 0 : index
    %c0_2 = arith.constant 0 : index
    %3 = vector.load %arg3[%c0, %c0_1, %c0_2] : memref<1x16x128xf32, #tpu.memory_space<vmem>>, vector<1x16x128xf32>
    %4 = vector.shape_cast %3 : vector<1x16x128xf32> to vector<16x128xf32>
    %cst_3 = arith.constant 0.176776692 : f32
    %5 = vector.broadcast %cst_3 : f32 to vector<16x128xf32>
    %6 = arith.mulf %4, %5 : vector<16x128xf32>
    %c0_4 = arith.constant 0 : index
    %c0_5 = arith.constant 0 : index
    %c0_6 = arith.constant 0 : index
    %7 = vector.load %arg4[%c0_4, %c0_5, %c0_6] : memref<1x12x128xf32, #tpu.memory_space<vmem>>, vector<1x12x128xf32>
    %8 = vector.shape_cast %7 : vector<1x12x128xf32> to vector<12x128xf32>
    %c0_7 = arith.constant 0 : index
    %c0_8 = arith.constant 0 : index
    %c0_9 = arith.constant 0 : index
    %9 = vector.load %arg5[%c0_7, %c0_8, %c0_9] : memref<1x12x128xf32, #tpu.memory_space<vmem>>, vector<1x12x128xf32>
    %10 = vector.shape_cast %9 : vector<1x12x128xf32> to vector<12x128xf32>
    %c0_10 = arith.constant 0 : index
    %c0_11 = arith.constant 0 : index
    %c0_12 = arith.constant 0 : index
    %11 = vector.load %arg7[%c0_10, %c0_11, %c0_12] : memref<1x1x12xf32, #tpu.memory_space<vmem>>, vector<1x1x12xf32>
    %12 = vector.shape_cast %11 : vector<1x1x12xf32> to vector<1x12xf32>
    %13 = vector.extract_strided_slice %6 {offsets = [0, 0], sizes = [16, 32], strides = [1, 1]} : vector<16x128xf32> to vector<16x32xf32>
    %14 = arith.truncf %13 : vector<16x32xf32> to vector<16x32xbf16>
    %15 = vector.extract_strided_slice %8 {offsets = [0, 0], sizes = [12, 32], strides = [1, 1]} : vector<12x128xf32> to vector<12x32xf32>
    %16 = arith.truncf %15 : vector<12x32xf32> to vector<12x32xbf16>
    %17 = vector.extract_strided_slice %10 {offsets = [0, 0], sizes = [12, 32], strides = [1, 1]} : vector<12x128xf32> to vector<12x32xf32>
    %18 = arith.truncf %17 : vector<12x32xf32> to vector<12x32xbf16>
    %cst_13 = arith.constant dense<0.000000e+00> : vector<16x12xf32>
    %19 = tpu.matmul %14, %16, %cst_13 {dimension_numbers = #tpu.dot_dimension_numbers<[1], [1], [0], [0], [0, 0, 1, 0], [], []>} : vector<16x32xbf16>, vector<12x32xbf16>, vector<16x12xf32> -> vector<16x12xf32>
    %20 = vector.broadcast %12 : vector<1x12xf32> to vector<16x12xf32>
    %21 = arith.addf %19, %20 : vector<16x12xf32>
    %c0_14 = arith.constant 0 : index
    %c0_15 = arith.constant 0 : index
    %c0_16 = arith.constant 0 : index
    %22 = vector.load %arg9[%c0_14, %c0_15, %c0_16] : memref<4x16x1xf32, #tpu.memory_space<vmem>>, vector<1x16x1xf32>
    %23 = vector.shape_cast %22 : vector<1x16x1xf32> to vector<16x1xf32>
    %c0_17 = arith.constant 0 : index
    %c0_18 = arith.constant 0 : index
    %c0_19 = arith.constant 0 : index
    %24 = vector.load %arg10[%c0_17, %c0_18, %c0_19] : memref<4x16x1xf32, #tpu.memory_space<vmem>>, vector<1x16x1xf32>
    %25 = vector.shape_cast %24 : vector<1x16x1xf32> to vector<16x1xf32>
    %c0_20 = arith.constant 0 : index
    %c0_21 = arith.constant 0 : index
    %c0_22 = arith.constant 0 : index
    %26 = vector.load %arg11[%c0_20, %c0_21, %c0_22] : memref<4x16x32xf32, #tpu.memory_space<vmem>>, vector<1x16x32xf32>
    %27 = vector.shape_cast %26 : vector<1x16x32xf32> to vector<16x32xf32>
    %cst_23 = arith.constant dense<0xFF800000> : vector<16xf32>
    %28 = vector.multi_reduction <maximumf>, %21, %cst_23 [1] : vector<16x12xf32> to vector<16xf32>
    %29 = vector.shape_cast %28 : vector<16xf32> to vector<16x1xf32>
    %30 = arith.maximumf %23, %29 : vector<16x1xf32>
    %cst_24 = arith.constant 0xFF800000 : f32
    %31 = vector.broadcast %cst_24 : f32 to vector<16x1xf32>
    %32 = arith.cmpf ogt, %30, %31 : vector<16x1xf32>
    %cst_25 = arith.constant 0.000000e+00 : f32
    %33 = vector.broadcast %cst_25 : f32 to vector<16x1xf32>
    %34 = arith.select %32, %30, %33 : vector<16x1xi1>, vector<16x1xf32>
    %35 = arith.subf %23, %34 : vector<16x1xf32>
    %36 = math.exp %35 : vector<16x1xf32>
    %37 = vector.broadcast %34 : vector<16x1xf32> to vector<16x12xf32>
    %38 = arith.subf %21, %37 : vector<16x12xf32>
    %39 = math.exp %38 : vector<16x12xf32>
    %40 = arith.mulf %36, %25 : vector<16x1xf32>
    %cst_26 = arith.constant dense<0.000000e+00> : vector<16xf32>
    %41 = vector.multi_reduction <add>, %39, %cst_26 [1] : vector<16x12xf32> to vector<16xf32>
    %42 = vector.shape_cast %41 : vector<16xf32> to vector<16x1xf32>
    %43 = arith.addf %40, %42 : vector<16x1xf32>
    %c0_27 = arith.constant 0 : index
    %c0_28 = arith.constant 0 : index
    %c0_29 = arith.constant 0 : index
    %44 = vector.load %arg10[%c0_27, %c0_28, %c0_29] : memref<4x16x1xf32, #tpu.memory_space<vmem>>, vector<1x16x1xf32>
    %45 = vector.shape_cast %44 : vector<1x16x1xf32> to vector<16x1xf32>
    %46 = vector.shape_cast %43 : vector<16x1xf32> to vector<1x16x1xf32>
    tpu.vector_store %arg10[%c0_27, %c0_28, %c0_29], %46 {strides = array<i32>} : memref<4x16x1xf32, #tpu.memory_space<vmem>>, vector<1x16x1xf32>,
    %47 = arith.truncf %39 : vector<16x12xf32> to vector<16x12xbf16>
    %cst_30 = arith.constant dense<0.000000e+00> : vector<16x32xf32>
    %48 = tpu.matmul %47, %18, %cst_30 {dimension_numbers = #tpu.dot_dimension_numbers<[1], [0], [0], [1], [0, 0, 1, 1], [], []>} : vector<16x12xbf16>, vector<12x32xbf16>, vector<16x32xf32> -> vector<16x32xf32>
    %49 = vector.broadcast %36 : vector<16x1xf32> to vector<16x32xf32>
    %50 = arith.mulf %49, %27 : vector<16x32xf32>
    %51 = arith.addf %50, %48 : vector<16x32xf32>
    %c0_31 = arith.constant 0 : index
    %c0_32 = arith.constant 0 : index
    %c0_33 = arith.constant 0 : index
    %52 = vector.load %arg11[%c0_31, %c0_32, %c0_33] : memref<4x16x32xf32, #tpu.memory_space<vmem>>, vector<1x16x32xf32>
    %53 = vector.shape_cast %52 : vector<1x16x32xf32> to vector<16x32xf32>
    %54 = vector.shape_cast %51 : vector<16x32xf32> to vector<1x16x32xf32>
    tpu.vector_store %arg11[%c0_31, %c0_32, %c0_33], %54 {strides = array<i32>} : memref<4x16x32xf32, #tpu.memory_space<vmem>>, vector<1x16x32xf32>,
    %c0_34 = arith.constant 0 : index
    %c0_35 = arith.constant 0 : index
    %c0_36 = arith.constant 0 : index
    %55 = vector.load %arg9[%c0_34, %c0_35, %c0_36] : memref<4x16x1xf32, #tpu.memory_space<vmem>>, vector<1x16x1xf32>
    %56 = vector.shape_cast %55 : vector<1x16x1xf32> to vector<16x1xf32>
    %57 = vector.shape_cast %30 : vector<16x1xf32> to vector<1x16x1xf32>
    tpu.vector_store %arg9[%c0_34, %c0_35, %c0_36], %57 {strides = array<i32>} : memref<4x16x1xf32, #tpu.memory_space<vmem>>, vector<1x16x1xf32>,
    %58 = vector.extract_strided_slice %6 {offsets = [0, 32], sizes = [16, 32], strides = [1, 1]} : vector<16x128xf32> to vector<16x32xf32>
    %59 = arith.truncf %58 : vector<16x32xf32> to vector<16x32xbf16>
    %60 = vector.extract_strided_slice %8 {offsets = [0, 32], sizes = [12, 32], strides = [1, 1]} : vector<12x128xf32> to vector<12x32xf32>
    %61 = arith.truncf %60 : vector<12x32xf32> to vector<12x32xbf16>
    %62 = vector.extract_strided_slice %10 {offsets = [0, 32], sizes = [12, 32], strides = [1, 1]} : vector<12x128xf32> to vector<12x32xf32>
    %63 = arith.truncf %62 : vector<12x32xf32> to vector<12x32xbf16>
    %cst_37 = arith.constant dense<0.000000e+00> : vector<16x12xf32>
    %64 = tpu.matmul %59, %61, %cst_37 {dimension_numbers = #tpu.dot_dimension_numbers<[1], [1], [0], [0], [0, 0, 1, 0], [], []>} : vector<16x32xbf16>, vector<12x32xbf16>, vector<16x12xf32> -> vector<16x12xf32>
    %65 = vector.broadcast %12 : vector<1x12xf32> to vector<16x12xf32>
    %66 = arith.addf %64, %65 : vector<16x12xf32>
    %c1 = arith.constant 1 : index
    %c0_38 = arith.constant 0 : index
    %c0_39 = arith.constant 0 : index
    %67 = vector.load %arg9[%c1, %c0_38, %c0_39] : memref<4x16x1xf32, #tpu.memory_space<vmem>>, vector<1x16x1xf32>
    %68 = vector.shape_cast %67 : vector<1x16x1xf32> to vector<16x1xf32>
    %c1_40 = arith.constant 1 : index
    %c0_41 = arith.constant 0 : index
    %c0_42 = arith.constant 0 : index
    %69 = vector.load %arg10[%c1_40, %c0_41, %c0_42] : memref<4x16x1xf32, #tpu.memory_space<vmem>>, vector<1x16x1xf32>
    %70 = vector.shape_cast %69 : vector<1x16x1xf32> to vector<16x1xf32>
    %c1_43 = arith.constant 1 : index
    %c0_44 = arith.constant 0 : index
    %c0_45 = arith.constant 0 : index
    %71 = vector.load %arg11[%c1_43, %c0_44, %c0_45] : memref<4x16x32xf32, #tpu.memory_space<vmem>>, vector<1x16x32xf32>
    %72 = vector.shape_cast %71 : vector<1x16x32xf32> to vector<16x32xf32>
    %cst_46 = arith.constant dense<0xFF800000> : vector<16xf32>
    %73 = vector.multi_reduction <maximumf>, %66, %cst_46 [1] : vector<16x12xf32> to vector<16xf32>
    %74 = vector.shape_cast %73 : vector<16xf32> to vector<16x1xf32>
    %75 = arith.maximumf %68, %74 : vector<16x1xf32>
    %cst_47 = arith.constant 0xFF800000 : f32
    %76 = vector.broadcast %cst_47 : f32 to vector<16x1xf32>
    %77 = arith.cmpf ogt, %75, %76 : vector<16x1xf32>
    %cst_48 = arith.constant 0.000000e+00 : f32
    %78 = vector.broadcast %cst_48 : f32 to vector<16x1xf32>
    %79 = arith.select %77, %75, %78 : vector<16x1xi1>, vector<16x1xf32>
    %80 = arith.subf %68, %79 : vector<16x1xf32>
    %81 = math.exp %80 : vector<16x1xf32>
    %82 = vector.broadcast %79 : vector<16x1xf32> to vector<16x12xf32>
    %83 = arith.subf %66, %82 : vector<16x12xf32>
    %84 = math.exp %83 : vector<16x12xf32>
    %85 = arith.mulf %81, %70 : vector<16x1xf32>
    %cst_49 = arith.constant dense<0.000000e+00> : vector<16xf32>
    %86 = vector.multi_reduction <add>, %84, %cst_49 [1] : vector<16x12xf32> to vector<16xf32>
    %87 = vector.shape_cast %86 : vector<16xf32> to vector<16x1xf32>
    %88 = arith.addf %85, %87 : vector<16x1xf32>
    %c1_50 = arith.constant 1 : index
    %c0_51 = arith.constant 0 : index
    %c0_52 = arith.constant 0 : index
    %89 = vector.load %arg10[%c1_50, %c0_51, %c0_52] : memref<4x16x1xf32, #tpu.memory_space<vmem>>, vector<1x16x1xf32>
    %90 = vector.shape_cast %89 : vector<1x16x1xf32> to vector<16x1xf32>
    %91 = vector.shape_cast %88 : vector<16x1xf32> to vector<1x16x1xf32>
    tpu.vector_store %arg10[%c1_50, %c0_51, %c0_52], %91 {strides = array<i32>} : memref<4x16x1xf32, #tpu.memory_space<vmem>>, vector<1x16x1xf32>,
    %92 = arith.truncf %84 : vector<16x12xf32> to vector<16x12xbf16>
    %cst_53 = arith.constant dense<0.000000e+00> : vector<16x32xf32>
    %93 = tpu.matmul %92, %63, %cst_53 {dimension_numbers = #tpu.dot_dimension_numbers<[1], [0], [0], [1], [0, 0, 1, 1], [], []>} : vector<16x12xbf16>, vector<12x32xbf16>, vector<16x32xf32> -> vector<16x32xf32>
    %94 = vector.broadcast %81 : vector<16x1xf32> to vector<16x32xf32>
    %95 = arith.mulf %94, %72 : vector<16x32xf32>
    %96 = arith.addf %95, %93 : vector<16x32xf32>
    %c1_54 = arith.constant 1 : index
    %c0_55 = arith.constant 0 : index
    %c0_56 = arith.constant 0 : index
    %97 = vector.load %arg11[%c1_54, %c0_55, %c0_56] : memref<4x16x32xf32, #tpu.memory_space<vmem>>, vector<1x16x32xf32>
    %98 = vector.shape_cast %97 : vector<1x16x32xf32> to vector<16x32xf32>
    %99 = vector.shape_cast %96 : vector<16x32xf32> to vector<1x16x32xf32>
    tpu.vector_store %arg11[%c1_54, %c0_55, %c0_56], %99 {strides = array<i32>} : memref<4x16x32xf32, #tpu.memory_space<vmem>>, vector<1x16x32xf32>,
    %c1_57 = arith.constant 1 : index
    %c0_58 = arith.constant 0 : index
    %c0_59 = arith.constant 0 : index
    %100 = vector.load %arg9[%c1_57, %c0_58, %c0_59] : memref<4x16x1xf32, #tpu.memory_space<vmem>>, vector<1x16x1xf32>
    %101 = vector.shape_cast %100 : vector<1x16x1xf32> to vector<16x1xf32>
    %102 = vector.shape_cast %75 : vector<16x1xf32> to vector<1x16x1xf32>
    tpu.vector_store %arg9[%c1_57, %c0_58, %c0_59], %102 {strides = array<i32>} : memref<4x16x1xf32, #tpu.memory_space<vmem>>, vector<1x16x1xf32>,
    %103 = vector.extract_strided_slice %6 {offsets = [0, 64], sizes = [16, 32], strides = [1, 1]} : vector<16x128xf32> to vector<16x32xf32>
    %104 = arith.truncf %103 : vector<16x32xf32> to vector<16x32xbf16>
    %105 = vector.extract_strided_slice %8 {offsets = [0, 64], sizes = [12, 32], strides = [1, 1]} : vector<12x128xf32> to vector<12x32xf32>
    %106 = arith.truncf %105 : vector<12x32xf32> to vector<12x32xbf16>
    %107 = vector.extract_strided_slice %10 {offsets = [0, 64], sizes = [12, 32], strides = [1, 1]} : vector<12x128xf32> to vector<12x32xf32>
    %108 = arith.truncf %107 : vector<12x32xf32> to vector<12x32xbf16>
    %cst_60 = arith.constant dense<0.000000e+00> : vector<16x12xf32>
    %109 = tpu.matmul %104, %106, %cst_60 {dimension_numbers = #tpu.dot_dimension_numbers<[1], [1], [0], [0], [0, 0, 1, 0], [], []>} : vector<16x32xbf16>, vector<12x32xbf16>, vector<16x12xf32> -> vector<16x12xf32>
    %110 = vector.broadcast %12 : vector<1x12xf32> to vector<16x12xf32>
    %111 = arith.addf %109, %110 : vector<16x12xf32>
    %c2 = arith.constant 2 : index
    %c0_61 = arith.constant 0 : index
    %c0_62 = arith.constant 0 : index
    %112 = vector.load %arg9[%c2, %c0_61, %c0_62] : memref<4x16x1xf32, #tpu.memory_space<vmem>>, vector<1x16x1xf32>
    %113 = vector.shape_cast %112 : vector<1x16x1xf32> to vector<16x1xf32>
    %c2_63 = arith.constant 2 : index
    %c0_64 = arith.constant 0 : index
    %c0_65 = arith.constant 0 : index
    %114 = vector.load %arg10[%c2_63, %c0_64, %c0_65] : memref<4x16x1xf32, #tpu.memory_space<vmem>>, vector<1x16x1xf32>
    %115 = vector.shape_cast %114 : vector<1x16x1xf32> to vector<16x1xf32>
    %c2_66 = arith.constant 2 : index
    %c0_67 = arith.constant 0 : index
    %c0_68 = arith.constant 0 : index
    %116 = vector.load %arg11[%c2_66, %c0_67, %c0_68] : memref<4x16x32xf32, #tpu.memory_space<vmem>>, vector<1x16x32xf32>
    %117 = vector.shape_cast %116 : vector<1x16x32xf32> to vector<16x32xf32>
    %cst_69 = arith.constant dense<0xFF800000> : vector<16xf32>
    %118 = vector.multi_reduction <maximumf>, %111, %cst_69 [1] : vector<16x12xf32> to vector<16xf32>
    %119 = vector.shape_cast %118 : vector<16xf32> to vector<16x1xf32>
    %120 = arith.maximumf %113, %119 : vector<16x1xf32>
    %cst_70 = arith.constant 0xFF800000 : f32
    %121 = vector.broadcast %cst_70 : f32 to vector<16x1xf32>
    %122 = arith.cmpf ogt, %120, %121 : vector<16x1xf32>
    %cst_71 = arith.constant 0.000000e+00 : f32
    %123 = vector.broadcast %cst_71 : f32 to vector<16x1xf32>
    %124 = arith.select %122, %120, %123 : vector<16x1xi1>, vector<16x1xf32>
    %125 = arith.subf %113, %124 : vector<16x1xf32>
    %126 = math.exp %125 : vector<16x1xf32>
    %127 = vector.broadcast %124 : vector<16x1xf32> to vector<16x12xf32>
    %128 = arith.subf %111, %127 : vector<16x12xf32>
    %129 = math.exp %128 : vector<16x12xf32>
    %130 = arith.mulf %126, %115 : vector<16x1xf32>
    %cst_72 = arith.constant dense<0.000000e+00> : vector<16xf32>
    %131 = vector.multi_reduction <add>, %129, %cst_72 [1] : vector<16x12xf32> to vector<16xf32>
    %132 = vector.shape_cast %131 : vector<16xf32> to vector<16x1xf32>
    %133 = arith.addf %130, %132 : vector<16x1xf32>
    %c2_73 = arith.constant 2 : index
    %c0_74 = arith.constant 0 : index
    %c0_75 = arith.constant 0 : index
    %134 = vector.load %arg10[%c2_73, %c0_74, %c0_75] : memref<4x16x1xf32, #tpu.memory_space<vmem>>, vector<1x16x1xf32>
    %135 = vector.shape_cast %134 : vector<1x16x1xf32> to vector<16x1xf32>
    %136 = vector.shape_cast %133 : vector<16x1xf32> to vector<1x16x1xf32>
    tpu.vector_store %arg10[%c2_73, %c0_74, %c0_75], %136 {strides = array<i32>} : memref<4x16x1xf32, #tpu.memory_space<vmem>>, vector<1x16x1xf32>,
    %137 = arith.truncf %129 : vector<16x12xf32> to vector<16x12xbf16>
    %cst_76 = arith.constant dense<0.000000e+00> : vector<16x32xf32>
    %138 = tpu.matmul %137, %108, %cst_76 {dimension_numbers = #tpu.dot_dimension_numbers<[1], [0], [0], [1], [0, 0, 1, 1], [], []>} : vector<16x12xbf16>, vector<12x32xbf16>, vector<16x32xf32> -> vector<16x32xf32>
    %139 = vector.broadcast %126 : vector<16x1xf32> to vector<16x32xf32>
    %140 = arith.mulf %139, %117 : vector<16x32xf32>
    %141 = arith.addf %140, %138 : vector<16x32xf32>
    %c2_77 = arith.constant 2 : index
    %c0_78 = arith.constant 0 : index
    %c0_79 = arith.constant 0 : index
    %142 = vector.load %arg11[%c2_77, %c0_78, %c0_79] : memref<4x16x32xf32, #tpu.memory_space<vmem>>, vector<1x16x32xf32>
    %143 = vector.shape_cast %142 : vector<1x16x32xf32> to vector<16x32xf32>
    %144 = vector.shape_cast %141 : vector<16x32xf32> to vector<1x16x32xf32>
    tpu.vector_store %arg11[%c2_77, %c0_78, %c0_79], %144 {strides = array<i32>} : memref<4x16x32xf32, #tpu.memory_space<vmem>>, vector<1x16x32xf32>,
    %c2_80 = arith.constant 2 : index
    %c0_81 = arith.constant 0 : index
    %c0_82 = arith.constant 0 : index
    %145 = vector.load %arg9[%c2_80, %c0_81, %c0_82] : memref<4x16x1xf32, #tpu.memory_space<vmem>>, vector<1x16x1xf32>
    %146 = vector.shape_cast %145 : vector<1x16x1xf32> to vector<16x1xf32>
    %147 = vector.shape_cast %120 : vector<16x1xf32> to vector<1x16x1xf32>
    tpu.vector_store %arg9[%c2_80, %c0_81, %c0_82], %147 {strides = array<i32>} : memref<4x16x1xf32, #tpu.memory_space<vmem>>, vector<1x16x1xf32>,
    %148 = vector.extract_strided_slice %6 {offsets = [0, 96], sizes = [16, 32], strides = [1, 1]} : vector<16x128xf32> to vector<16x32xf32>
    %149 = arith.truncf %148 : vector<16x32xf32> to vector<16x32xbf16>
    %150 = vector.extract_strided_slice %8 {offsets = [0, 96], sizes = [12, 32], strides = [1, 1]} : vector<12x128xf32> to vector<12x32xf32>
    %151 = arith.truncf %150 : vector<12x32xf32> to vector<12x32xbf16>
    %152 = vector.extract_strided_slice %10 {offsets = [0, 96], sizes = [12, 32], strides = [1, 1]} : vector<12x128xf32> to vector<12x32xf32>
    %153 = arith.truncf %152 : vector<12x32xf32> to vector<12x32xbf16>
    %cst_83 = arith.constant dense<0.000000e+00> : vector<16x12xf32>
    %154 = tpu.matmul %149, %151, %cst_83 {dimension_numbers = #tpu.dot_dimension_numbers<[1], [1], [0], [0], [0, 0, 1, 0], [], []>} : vector<16x32xbf16>, vector<12x32xbf16>, vector<16x12xf32> -> vector<16x12xf32>
    %155 = vector.broadcast %12 : vector<1x12xf32> to vector<16x12xf32>
    %156 = arith.addf %154, %155 : vector<16x12xf32>
    %c3 = arith.constant 3 : index
    %c0_84 = arith.constant 0 : index
    %c0_85 = arith.constant 0 : index
    %157 = vector.load %arg9[%c3, %c0_84, %c0_85] : memref<4x16x1xf32, #tpu.memory_space<vmem>>, vector<1x16x1xf32>
    %158 = vector.shape_cast %157 : vector<1x16x1xf32> to vector<16x1xf32>
    %c3_86 = arith.constant 3 : index
    %c0_87 = arith.constant 0 : index
    %c0_88 = arith.constant 0 : index
    %159 = vector.load %arg10[%c3_86, %c0_87, %c0_88] : memref<4x16x1xf32, #tpu.memory_space<vmem>>, vector<1x16x1xf32>
    %160 = vector.shape_cast %159 : vector<1x16x1xf32> to vector<16x1xf32>
    %c3_89 = arith.constant 3 : index
    %c0_90 = arith.constant 0 : index
    %c0_91 = arith.constant 0 : index
    %161 = vector.load %arg11[%c3_89, %c0_90, %c0_91] : memref<4x16x32xf32, #tpu.memory_space<vmem>>, vector<1x16x32xf32>
    %162 = vector.shape_cast %161 : vector<1x16x32xf32> to vector<16x32xf32>
    %cst_92 = arith.constant dense<0xFF800000> : vector<16xf32>
    %163 = vector.multi_reduction <maximumf>, %156, %cst_92 [1] : vector<16x12xf32> to vector<16xf32>
    %164 = vector.shape_cast %163 : vector<16xf32> to vector<16x1xf32>
    %165 = arith.maximumf %158, %164 : vector<16x1xf32>
    %cst_93 = arith.constant 0xFF800000 : f32
    %166 = vector.broadcast %cst_93 : f32 to vector<16x1xf32>
    %167 = arith.cmpf ogt, %165, %166 : vector<16x1xf32>
    %cst_94 = arith.constant 0.000000e+00 : f32
    %168 = vector.broadcast %cst_94 : f32 to vector<16x1xf32>
    %169 = arith.select %167, %165, %168 : vector<16x1xi1>, vector<16x1xf32>
    %170 = arith.subf %158, %169 : vector<16x1xf32>
    %171 = math.exp %170 : vector<16x1xf32>
    %172 = vector.broadcast %169 : vector<16x1xf32> to vector<16x12xf32>
    %173 = arith.subf %156, %172 : vector<16x12xf32>
    %174 = math.exp %173 : vector<16x12xf32>
    %175 = arith.mulf %171, %160 : vector<16x1xf32>
    %cst_95 = arith.constant dense<0.000000e+00> : vector<16xf32>
    %176 = vector.multi_reduction <add>, %174, %cst_95 [1] : vector<16x12xf32> to vector<16xf32>
    %177 = vector.shape_cast %176 : vector<16xf32> to vector<16x1xf32>
    %178 = arith.addf %175, %177 : vector<16x1xf32>
    %c3_96 = arith.constant 3 : index
    %c0_97 = arith.constant 0 : index
    %c0_98 = arith.constant 0 : index
    %179 = vector.load %arg10[%c3_96, %c0_97, %c0_98] : memref<4x16x1xf32, #tpu.memory_space<vmem>>, vector<1x16x1xf32>
    %180 = vector.shape_cast %179 : vector<1x16x1xf32> to vector<16x1xf32>
    %181 = vector.shape_cast %178 : vector<16x1xf32> to vector<1x16x1xf32>
    tpu.vector_store %arg10[%c3_96, %c0_97, %c0_98], %181 {strides = array<i32>} : memref<4x16x1xf32, #tpu.memory_space<vmem>>, vector<1x16x1xf32>,
    %182 = arith.truncf %174 : vector<16x12xf32> to vector<16x12xbf16>
    %cst_99 = arith.constant dense<0.000000e+00> : vector<16x32xf32>
    %183 = tpu.matmul %182, %153, %cst_99 {dimension_numbers = #tpu.dot_dimension_numbers<[1], [0], [0], [1], [0, 0, 1, 1], [], []>} : vector<16x12xbf16>, vector<12x32xbf16>, vector<16x32xf32> -> vector<16x32xf32>
    %184 = vector.broadcast %171 : vector<16x1xf32> to vector<16x32xf32>
    %185 = arith.mulf %184, %162 : vector<16x32xf32>
    %186 = arith.addf %185, %183 : vector<16x32xf32>
    %c3_100 = arith.constant 3 : index
    %c0_101 = arith.constant 0 : index
    %c0_102 = arith.constant 0 : index
    %187 = vector.load %arg11[%c3_100, %c0_101, %c0_102] : memref<4x16x32xf32, #tpu.memory_space<vmem>>, vector<1x16x32xf32>
    %188 = vector.shape_cast %187 : vector<1x16x32xf32> to vector<16x32xf32>
    %189 = vector.shape_cast %186 : vector<16x32xf32> to vector<1x16x32xf32>
    tpu.vector_store %arg11[%c3_100, %c0_101, %c0_102], %189 {strides = array<i32>} : memref<4x16x32xf32, #tpu.memory_space<vmem>>, vector<1x16x32xf32>,
    %c3_103 = arith.constant 3 : index
    %c0_104 = arith.constant 0 : index
    %c0_105 = arith.constant 0 : index
    %190 = vector.load %arg9[%c3_103, %c0_104, %c0_105] : memref<4x16x1xf32, #tpu.memory_space<vmem>>, vector<1x16x1xf32>
    %191 = vector.shape_cast %190 : vector<1x16x1xf32> to vector<16x1xf32>
    %192 = vector.shape_cast %165 : vector<16x1xf32> to vector<1x16x1xf32>
    tpu.vector_store %arg9[%c3_103, %c0_104, %c0_105], %192 {strides = array<i32>} : memref<4x16x1xf32, #tpu.memory_space<vmem>>, vector<1x16x1xf32>,
    %c0_i32_106 = arith.constant 0 : i32
    %193 = arith.cmpi eq, %arg2, %c0_i32_106 : i32
    %194 = arith.extui %193 : i1 to i32
    %c0_i32_107 = arith.constant 0 : i32
    %195 = arith.cmpi ne, %194, %c0_i32_107 : i32
    scf.if %195 {
      %c0_108 = arith.constant 0 : index
      %c0_109 = arith.constant 0 : index
      %c0_110 = arith.constant 0 : index
      %196 = vector.load %arg6[%c0_108, %c0_109, %c0_110] : memref<1x16x1xf32, #tpu.memory_space<vmem>>, vector<1x16x1xf32>
      %197 = vector.shape_cast %196 : vector<1x16x1xf32> to vector<16x1xf32>
      %cst_111 = arith.constant 0.000000e+00 : f32
      %198 = vector.broadcast %cst_111 : f32 to vector<16x1xf32>
      %199 = arith.cmpf ogt, %197, %198 : vector<16x1xf32>
      %c0_112 = arith.constant 0 : index
      %c0_113 = arith.constant 0 : index
      %c0_114 = arith.constant 0 : index
      %200 = vector.load %arg10[%c0_112, %c0_113, %c0_114] : memref<4x16x1xf32, #tpu.memory_space<vmem>>, vector<1x16x1xf32>
      %201 = vector.shape_cast %200 : vector<1x16x1xf32> to vector<16x1xf32>
      %cst_115 = arith.constant 0.000000e+00 : f32
      %202 = vector.broadcast %cst_115 : f32 to vector<16x1xf32>
      %203 = arith.cmpf ogt, %201, %202 : vector<16x1xf32>
      %204 = arith.andi %203, %199 : vector<16x1xi1>
      %cst_116 = arith.constant 1.000000e+00 : f32
      %205 = vector.broadcast %cst_116 : f32 to vector<16x1xf32>
      %206 = arith.select %204, %201, %205 : vector<16x1xi1>, vector<16x1xf32>
      %207 = tpu.reciprocal %206 {approx = true} : vector<16x1xf32> -> vector<16x1xf32>
      %cst_117 = arith.constant 0.000000e+00 : f32
      %208 = vector.broadcast %cst_117 : f32 to vector<16x1xf32>
      %209 = arith.select %204, %207, %208 : vector<16x1xi1>, vector<16x1xf32>
      %c0_118 = arith.constant 0 : index
      %c0_119 = arith.constant 0 : index
      %c0_120 = arith.constant 0 : index
      %210 = vector.load %arg11[%c0_118, %c0_119, %c0_120] : memref<4x16x32xf32, #tpu.memory_space<vmem>>, vector<1x16x32xf32>
      %211 = vector.shape_cast %210 : vector<1x16x32xf32> to vector<16x32xf32>
      %212 = vector.broadcast %209 : vector<16x1xf32> to vector<16x32xf32>
      %213 = arith.mulf %211, %212 : vector<16x32xf32>
      %c0_121 = arith.constant 0 : index
      %c0_122 = arith.constant 0 : index
      %c0_123 = arith.constant 0 : index
      %214 = vector.load %arg8[%c0_121, %c0_122, %c0_123] : memref<1x16x128xf32, #tpu.memory_space<vmem>>, vector<1x16x32xf32>
      %215 = vector.shape_cast %214 : vector<1x16x32xf32> to vector<16x32xf32>
      %216 = vector.shape_cast %213 : vector<16x32xf32> to vector<1x16x32xf32>
      tpu.vector_store %arg8[%c0_121, %c0_122, %c0_123], %216 {strides = array<i32>} : memref<1x16x128xf32, #tpu.memory_space<vmem>>, vector<1x16x32xf32>,
      %c1_124 = arith.constant 1 : index
      %c0_125 = arith.constant 0 : index
      %c0_126 = arith.constant 0 : index
      %217 = vector.load %arg10[%c1_124, %c0_125, %c0_126] : memref<4x16x1xf32, #tpu.memory_space<vmem>>, vector<1x16x1xf32>
      %218 = vector.shape_cast %217 : vector<1x16x1xf32> to vector<16x1xf32>
      %cst_127 = arith.constant 0.000000e+00 : f32
      %219 = vector.broadcast %cst_127 : f32 to vector<16x1xf32>
      %220 = arith.cmpf ogt, %218, %219 : vector<16x1xf32>
      %221 = arith.andi %220, %199 : vector<16x1xi1>
      %cst_128 = arith.constant 1.000000e+00 : f32
      %222 = vector.broadcast %cst_128 : f32 to vector<16x1xf32>
      %223 = arith.select %221, %218, %222 : vector<16x1xi1>, vector<16x1xf32>
      %224 = tpu.reciprocal %223 {approx = true} : vector<16x1xf32> -> vector<16x1xf32>
      %cst_129 = arith.constant 0.000000e+00 : f32
      %225 = vector.broadcast %cst_129 : f32 to vector<16x1xf32>
      %226 = arith.select %221, %224, %225 : vector<16x1xi1>, vector<16x1xf32>
      %c1_130 = arith.constant 1 : index
      %c0_131 = arith.constant 0 : index
      %c0_132 = arith.constant 0 : index
      %227 = vector.load %arg11[%c1_130, %c0_131, %c0_132] : memref<4x16x32xf32, #tpu.memory_space<vmem>>, vector<1x16x32xf32>
      %228 = vector.shape_cast %227 : vector<1x16x32xf32> to vector<16x32xf32>
      %229 = vector.broadcast %226 : vector<16x1xf32> to vector<16x32xf32>
      %230 = arith.mulf %228, %229 : vector<16x32xf32>
      %c0_133 = arith.constant 0 : index
      %c0_134 = arith.constant 0 : index
      %c32 = arith.constant 32 : index
      %231 = vector.load %arg8[%c0_133, %c0_134, %c32] : memref<1x16x128xf32, #tpu.memory_space<vmem>>, vector<1x16x32xf32>
      %232 = vector.shape_cast %231 : vector<1x16x32xf32> to vector<16x32xf32>
      %233 = vector.shape_cast %230 : vector<16x32xf32> to vector<1x16x32xf32>
      tpu.vector_store %arg8[%c0_133, %c0_134, %c32], %233 {strides = array<i32>} : memref<1x16x128xf32, #tpu.memory_space<vmem>>, vector<1x16x32xf32>,
      %c2_135 = arith.constant 2 : index
      %c0_136 = arith.constant 0 : index
      %c0_137 = arith.constant 0 : index
      %234 = vector.load %arg10[%c2_135, %c0_136, %c0_137] : memref<4x16x1xf32, #tpu.memory_space<vmem>>, vector<1x16x1xf32>
      %235 = vector.shape_cast %234 : vector<1x16x1xf32> to vector<16x1xf32>
      %cst_138 = arith.constant 0.000000e+00 : f32
      %236 = vector.broadcast %cst_138 : f32 to vector<16x1xf32>
      %237 = arith.cmpf ogt, %235, %236 : vector<16x1xf32>
      %238 = arith.andi %237, %199 : vector<16x1xi1>
      %cst_139 = arith.constant 1.000000e+00 : f32
      %239 = vector.broadcast %cst_139 : f32 to vector<16x1xf32>
      %240 = arith.select %238, %235, %239 : vector<16x1xi1>, vector<16x1xf32>
      %241 = tpu.reciprocal %240 {approx = true} : vector<16x1xf32> -> vector<16x1xf32>
      %cst_140 = arith.constant 0.000000e+00 : f32
      %242 = vector.broadcast %cst_140 : f32 to vector<16x1xf32>
      %243 = arith.select %238, %241, %242 : vector<16x1xi1>, vector<16x1xf32>
      %c2_141 = arith.constant 2 : index
      %c0_142 = arith.constant 0 : index
      %c0_143 = arith.constant 0 : index
      %244 = vector.load %arg11[%c2_141, %c0_142, %c0_143] : memref<4x16x32xf32, #tpu.memory_space<vmem>>, vector<1x16x32xf32>
      %245 = vector.shape_cast %244 : vector<1x16x32xf32> to vector<16x32xf32>
      %246 = vector.broadcast %243 : vector<16x1xf32> to vector<16x32xf32>
      %247 = arith.mulf %245, %246 : vector<16x32xf32>
      %c0_144 = arith.constant 0 : index
      %c0_145 = arith.constant 0 : index
      %c64 = arith.constant 64 : index
      %248 = vector.load %arg8[%c0_144, %c0_145, %c64] : memref<1x16x128xf32, #tpu.memory_space<vmem>>, vector<1x16x32xf32>
      %249 = vector.shape_cast %248 : vector<1x16x32xf32> to vector<16x32xf32>
      %250 = vector.shape_cast %247 : vector<16x32xf32> to vector<1x16x32xf32>
      tpu.vector_store %arg8[%c0_144, %c0_145, %c64], %250 {strides = array<i32>} : memref<1x16x128xf32, #tpu.memory_space<vmem>>, vector<1x16x32xf32>,
      %c3_146 = arith.constant 3 : index
      %c0_147 = arith.constant 0 : index
      %c0_148 = arith.constant 0 : index
      %251 = vector.load %arg10[%c3_146, %c0_147, %c0_148] : memref<4x16x1xf32, #tpu.memory_space<vmem>>, vector<1x16x1xf32>
      %252 = vector.shape_cast %251 : vector<1x16x1xf32> to vector<16x1xf32>
      %cst_149 = arith.constant 0.000000e+00 : f32
      %253 = vector.broadcast %cst_149 : f32 to vector<16x1xf32>
      %254 = arith.cmpf ogt, %252, %253 : vector<16x1xf32>
      %255 = arith.andi %254, %199 : vector<16x1xi1>
      %cst_150 = arith.constant 1.000000e+00 : f32
      %256 = vector.broadcast %cst_150 : f32 to vector<16x1xf32>
      %257 = arith.select %255, %252, %256 : vector<16x1xi1>, vector<16x1xf32>
      %258 = tpu.reciprocal %257 {approx = true} : vector<16x1xf32> -> vector<16x1xf32>
      %cst_151 = arith.constant 0.000000e+00 : f32
      %259 = vector.broadcast %cst_151 : f32 to vector<16x1xf32>
      %260 = arith.select %255, %258, %259 : vector<16x1xi1>, vector<16x1xf32>
      %c3_152 = arith.constant 3 : index
      %c0_153 = arith.constant 0 : index
      %c0_154 = arith.constant 0 : index
      %261 = vector.load %arg11[%c3_152, %c0_153, %c0_154] : memref<4x16x32xf32, #tpu.memory_space<vmem>>, vector<1x16x32xf32>
      %262 = vector.shape_cast %261 : vector<1x16x32xf32> to vector<16x32xf32>
      %263 = vector.broadcast %260 : vector<16x1xf32> to vector<16x32xf32>
      %264 = arith.mulf %262, %263 : vector<16x32xf32>
      %c0_155 = arith.constant 0 : index
      %c0_156 = arith.constant 0 : index
      %c96 = arith.constant 96 : index
      %265 = vector.load %arg8[%c0_155, %c0_156, %c96] : memref<1x16x128xf32, #tpu.memory_space<vmem>>, vector<1x16x32xf32>
      %266 = vector.shape_cast %265 : vector<1x16x32xf32> to vector<16x32xf32>
      %267 = vector.shape_cast %264 : vector<16x32xf32> to vector<1x16x32xf32>
      tpu.vector_store %arg8[%c0_155, %c0_156, %c96], %267 {strides = array<i32>} : memref<1x16x128xf32, #tpu.memory_space<vmem>>, vector<1x16x32xf32>,
    } else {
    }
    return
  }
  func.func @transform_0(%arg0: i32, %arg1: i32, %arg2: i32) -> (i32, i32, i32) {
    %c0_i32 = arith.constant 0 : i32
    %c0_i32_0 = arith.constant 0 : i32
    return %arg0, %arg1, %c0_i32 : i32, i32, i32
  }
  func.func @transform_1(%arg0: i32, %arg1: i32, %arg2: i32) -> (i32, i32, i32) {
    %c0_i32 = arith.constant 0 : i32
    %c0_i32_0 = arith.constant 0 : i32
    return %arg0, %arg2, %c0_i32 : i32, i32, i32
  }
  func.func @transform_2(%arg0: i32, %arg1: i32, %arg2: i32) -> (i32, i32, i32) {
    %c0_i32 = arith.constant 0 : i32
    %c0_i32_0 = arith.constant 0 : i32
    return %arg0, %arg2, %c0_i32 : i32, i32, i32
  }
  func.func @transform_3(%arg0: i32, %arg1: i32, %arg2: i32) -> (i32, i32, i32) {
    %c0_i32 = arith.constant 0 : i32
    %c0_i32_0 = arith.constant 0 : i32
    return %arg0, %arg1, %c0_i32 : i32, i32, i32
  }
  func.func @transform_4(%arg0: i32, %arg1: i32, %arg2: i32) -> (i32, i32, i32) {
    %c0_i32 = arith.constant 0 : i32
    %c0_i32_0 = arith.constant 0 : i32
    return %arg0, %c0_i32, %arg2 : i32, i32, i32
  }
  func.func @transform_5(%arg0: i32, %arg1: i32, %arg2: i32) -> (i32, i32, i32) {
    %c0_i32 = arith.constant 0 : i32
    %c0_i32_0 = arith.constant 0 : i32
    return %arg0, %arg1, %c0_i32 : i32, i32, i32
  }
}

module attributes {stable_mosaic.version = 11 : i64} {
  func.func @_attn_kernel(%arg0: i32, %arg1: i32, %arg2: i32, %arg3: memref<1x16x128xf32, #tpu.memory_space<vmem>>, %arg4: memref<1x12x128xf32, #tpu.memory_space<vmem>>, %arg5: memref<1x12x128xf32, #tpu.memory_space<vmem>>, %arg6: memref<1x16x1xf32, #tpu.memory_space<vmem>>, %arg7: memref<1x1x12xf32, #tpu.memory_space<vmem>>, %arg8: memref<1x16x128xf32, #tpu.memory_space<vmem>>, %arg9: memref<4x16x1xf32, #tpu.memory_space<vmem>>, %arg10: memref<4x16x1xf32, #tpu.memory_space<vmem>>, %arg11: memref<4x16x32xf32, #tpu.memory_space<vmem>>) attributes {dimension_semantics = [#tpu.dimension_semantics<parallel>, #tpu.dimension_semantics<arbitrary>, #tpu.dimension_semantics<arbitrary>], iteration_bounds = array<i64: 2, 1, 1>, scalar_prefetch = 0 : i64, scratch_operands = 3 : i64, tpu.core_type = #tpu.core_type<tc>, window_params = [{transform_indices = @transform_0, window_bounds = array<i64: 1, 16, 128>}, {transform_indices = @transform_1, window_bounds = array<i64: 1, 12, 128>}, {transform_indices = @transform_2, window_bounds = array<i64: 1, 12, 128>}, {transform_indices = @transform_3, window_bounds = array<i64: 1, 16, 1>}, {transform_indices = @transform_4, window_bounds = array<i64: 1, 1, 12>}, {transform_indices = @transform_5, window_bounds = array<i64: 1, 16, 128>}]} {
    %c0_i32 = arith.constant 0 : i32
    %0 = arith.cmpi eq, %arg2, %c0_i32 : i32
    %1 = arith.extui %0 : i1 to i32
    %cst = arith.constant 0xFF800000 : f32
    %c0_i32_0 = arith.constant 0 : i32
    %2 = arith.cmpi ne, %1, %c0_i32_0 : i32
    scf.if %2 {
      %196 = vector.broadcast %cst : f32 to vector<4x16x1xf32>
      %c0_108 = arith.constant 0 : index
      %c0_109 = arith.constant 0 : index
      %c0_110 = arith.constant 0 : index
      %197 = vector.load %arg9[%c0_108, %c0_109, %c0_110] : memref<4x16x1xf32, #tpu.memory_space<vmem>>, vector<4x16x1xf32>
      tpu.vector_store %arg9[%c0_108, %c0_109, %c0_110], %196 {strides = array<i32>} : memref<4x16x1xf32, #tpu.memory_space<vmem>>, vector<4x16x1xf32>,
      %cst_111 = arith.constant 0.000000e+00 : f32
      %198 = vector.broadcast %cst_111 : f32 to vector<4x16x1xf32>
      %c0_112 = arith.constant 0 : index
      %c0_113 = arith.constant 0 : index
      %c0_114 = arith.constant 0 : index
      %199 = vector.load %arg10[%c0_112, %c0_113, %c0_114] : memref<4x16x1xf32, #tpu.memory_space<vmem>>, vector<4x16x1xf32>
      tpu.vector_store %arg10[%c0_112, %c0_113, %c0_114], %198 {strides = array<i32>} : memref<4x16x1xf32, #tpu.memory_space<vmem>>, vector<4x16x1xf32>,
      %cst_115 = arith.constant 0.000000e+00 : f32
      %200 = vector.broadcast %cst_115 : f32 to vector<4x16x32xf32>
      %c0_116 = arith.constant 0 : index
      %c0_117 = arith.constant 0 : index
      %c0_118 = arith.constant 0 : index
      %201 = vector.load %arg11[%c0_116, %c0_117, %c0_118] : memref<4x16x32xf32, #tpu.memory_space<vmem>>, vector<4x16x32xf32>
      tpu.vector_store %arg11[%c0_116, %c0_117, %c0_118], %200 {strides = array<i32>} : memref<4x16x32xf32, #tpu.memory_space<vmem>>, vector<4x16x32xf32>,
    } else {
    }
    %c0 = arith.constant 0 : index
    %c0_1 = arith.constant 0 : index
    %c0_2 = arith.constant 0 : index
    %3 = vector.load %arg3[%c0, %c0_1, %c0_2] : memref<1x16x128xf32, #tpu.memory_space<vmem>>, vector<1x16x128xf32>
    %4 = vector.shape_cast %3 : vector<1x16x128xf32> to vector<16x128xf32>
    %cst_3 = arith.constant 0.176776692 : f32
    %5 = vector.broadcast %cst_3 : f32 to vector<16x128xf32>
    %6 = arith.mulf %4, %5 : vector<16x128xf32>
    %c0_4 = arith.constant 0 : index
    %c0_5 = arith.constant 0 : index
    %c0_6 = arith.constant 0 : index
    %7 = vector.load %arg4[%c0_4, %c0_5, %c0_6] : memref<1x12x128xf32, #tpu.memory_space<vmem>>, vector<1x12x128xf32>
    %8 = vector.shape_cast %7 : vector<1x12x128xf32> to vector<12x128xf32>
    %c0_7 = arith.constant 0 : index
    %c0_8 = arith.constant 0 : index
    %c0_9 = arith.constant 0 : index
    %9 = vector.load %arg5[%c0_7, %c0_8, %c0_9] : memref<1x12x128xf32, #tpu.memory_space<vmem>>, vector<1x12x128xf32>
    %10 = vector.shape_cast %9 : vector<1x12x128xf32> to vector<12x128xf32>
    %c0_10 = arith.constant 0 : index
    %c0_11 = arith.constant 0 : index
    %c0_12 = arith.constant 0 : index
    %11 = vector.load %arg7[%c0_10, %c0_11, %c0_12] : memref<1x1x12xf32, #tpu.memory_space<vmem>>, vector<1x1x12xf32>
    %12 = vector.shape_cast %11 : vector<1x1x12xf32> to vector<1x12xf32>
    %13 = vector.extract_strided_slice %6 {offsets = [0, 0], sizes = [16, 32], strides = [1, 1]} : vector<16x128xf32> to vector<16x32xf32>
    %14 = arith.truncf %13 : vector<16x32xf32> to vector<16x32xbf16>
    %15 = vector.extract_strided_slice %8 {offsets = [0, 0], sizes = [12, 32], strides = [1, 1]} : vector<12x128xf32> to vector<12x32xf32>
    %16 = arith.truncf %15 : vector<12x32xf32> to vector<12x32xbf16>
    %17 = vector.extract_strided_slice %10 {offsets = [0, 0], sizes = [12, 32], strides = [1, 1]} : vector<12x128xf32> to vector<12x32xf32>
    %18 = arith.truncf %17 : vector<12x32xf32> to vector<12x32xbf16>
    %cst_13 = arith.constant dense<0.000000e+00> : vector<16x12xf32>
    %19 = tpu.matmul %14, %16, %cst_13 {dimension_numbers = #tpu.dot_dimension_numbers<[1], [1], [0], [0], [0, 0, 1, 0], [], []>} : vector<16x32xbf16>, vector<12x32xbf16>, vector<16x12xf32> -> vector<16x12xf32>
    %20 = vector.broadcast %12 : vector<1x12xf32> to vector<16x12xf32>
    %21 = arith.addf %19, %20 : vector<16x12xf32>
    %c0_14 = arith.constant 0 : index
    %c0_15 = arith.constant 0 : index
    %c0_16 = arith.constant 0 : index
    %22 = vector.load %arg9[%c0_14, %c0_15, %c0_16] : memref<4x16x1xf32, #tpu.memory_space<vmem>>, vector<1x16x1xf32>
    %23 = vector.shape_cast %22 : vector<1x16x1xf32> to vector<16x1xf32>
    %c0_17 = arith.constant 0 : index
    %c0_18 = arith.constant 0 : index
    %c0_19 = arith.constant 0 : index
    %24 = vector.load %arg10[%c0_17, %c0_18, %c0_19] : memref<4x16x1xf32, #tpu.memory_space<vmem>>, vector<1x16x1xf32>
    %25 = vector.shape_cast %24 : vector<1x16x1xf32> to vector<16x1xf32>
    %c0_20 = arith.constant 0 : index
    %c0_21 = arith.constant 0 : index
    %c0_22 = arith.constant 0 : index
    %26 = vector.load %arg11[%c0_20, %c0_21, %c0_22] : memref<4x16x32xf32, #tpu.memory_space<vmem>>, vector<1x16x32xf32>
    %27 = vector.shape_cast %26 : vector<1x16x32xf32> to vector<16x32xf32>
    %cst_23 = arith.constant dense<0xFF800000> : vector<16xf32>
    %28 = vector.multi_reduction <maximumf>, %21, %cst_23 [1] : vector<16x12xf32> to vector<16xf32>
    %29 = vector.shape_cast %28 : vector<16xf32> to vector<16x1xf32>
    %30 = arith.maximumf %23, %29 : vector<16x1xf32>
    %cst_24 = arith.constant 0xFF800000 : f32
    %31 = vector.broadcast %cst_24 : f32 to vector<16x1xf32>
    %32 = arith.cmpf ogt, %30, %31 : vector<16x1xf32>
    %cst_25 = arith.constant 0.000000e+00 : f32
    %33 = vector.broadcast %cst_25 : f32 to vector<16x1xf32>
    %34 = arith.select %32, %30, %33 : vector<16x1xi1>, vector<16x1xf32>
    %35 = arith.subf %23, %34 : vector<16x1xf32>
    %36 = math.exp %35 : vector<16x1xf32>
    %37 = vector.broadcast %34 : vector<16x1xf32> to vector<16x12xf32>
    %38 = arith.subf %21, %37 : vector<16x12xf32>
    %39 = math.exp %38 : vector<16x12xf32>
    %40 = arith.mulf %36, %25 : vector<16x1xf32>
    %cst_26 = arith.constant dense<0.000000e+00> : vector<16xf32>
    %41 = vector.multi_reduction <add>, %39, %cst_26 [1] : vector<16x12xf32> to vector<16xf32>
    %42 = vector.shape_cast %41 : vector<16xf32> to vector<16x1xf32>
    %43 = arith.addf %40, %42 : vector<16x1xf32>
    %c0_27 = arith.constant 0 : index
    %c0_28 = arith.constant 0 : index
    %c0_29 = arith.constant 0 : index
    %44 = vector.load %arg10[%c0_27, %c0_28, %c0_29] : memref<4x16x1xf32, #tpu.memory_space<vmem>>, vector<1x16x1xf32>
    %45 = vector.shape_cast %44 : vector<1x16x1xf32> to vector<16x1xf32>
    %46 = vector.shape_cast %43 : vector<16x1xf32> to vector<1x16x1xf32>
    tpu.vector_store %arg10[%c0_27, %c0_28, %c0_29], %46 {strides = array<i32>} : memref<4x16x1xf32, #tpu.memory_space<vmem>>, vector<1x16x1xf32>,
    %47 = arith.truncf %39 : vector<16x12xf32> to vector<16x12xbf16>
    %cst_30 = arith.constant dense<0.000000e+00> : vector<16x32xf32>
    %48 = tpu.matmul %47, %18, %cst_30 {dimension_numbers = #tpu.dot_dimension_numbers<[1], [0], [0], [1], [0, 0, 1, 1], [], []>} : vector<16x12xbf16>, vector<12x32xbf16>, vector<16x32xf32> -> vector<16x32xf32>
    %49 = vector.broadcast %36 : vector<16x1xf32> to vector<16x32xf32>
    %50 = arith.mulf %49, %27 : vector<16x32xf32>
    %51 = arith.addf %50, %48 : vector<16x32xf32>
    %c0_31 = arith.constant 0 : index
    %c0_32 = arith.constant 0 : index
    %c0_33 = arith.constant 0 : index
    %52 = vector.load %arg11[%c0_31, %c0_32, %c0_33] : memref<4x16x32xf32, #tpu.memory_space<vmem>>, vector<1x16x32xf32>
    %53 = vector.shape_cast %52 : vector<1x16x32xf32> to vector<16x32xf32>
    %54 = vector.shape_cast %51 : vector<16x32xf32> to vector<1x16x32xf32>
    tpu.vector_store %arg11[%c0_31, %c0_32, %c0_33], %54 {strides = array<i32>} : memref<4x16x32xf32, #tpu.memory_space<vmem>>, vector<1x16x32xf32>,
    %c0_34 = arith.constant 0 : index
    %c0_35 = arith.constant 0 : index
    %c0_36 = arith.constant 0 : index
    %55 = vector.load %arg9[%c0_34, %c0_35, %c0_36] : memref<4x16x1xf32, #tpu.memory_space<vmem>>, vector<1x16x1xf32>
    %56 = vector.shape_cast %55 : vector<1x16x1xf32> to vector<16x1xf32>
    %57 = vector.shape_cast %30 : vector<16x1xf32> to vector<1x16x1xf32>
    tpu.vector_store %arg9[%c0_34, %c0_35, %c0_36], %57 {strides = array<i32>} : memref<4x16x1xf32, #tpu.memory_space<vmem>>, vector<1x16x1xf32>,
    %58 = vector.extract_strided_slice %6 {offsets = [0, 32], sizes = [16, 32], strides = [1, 1]} : vector<16x128xf32> to vector<16x32xf32>
    %59 = arith.truncf %58 : vector<16x32xf32> to vector<16x32xbf16>
    %60 = vector.extract_strided_slice %8 {offsets = [0, 32], sizes = [12, 32], strides = [1, 1]} : vector<12x128xf32> to vector<12x32xf32>
    %61 = arith.truncf %60 : vector<12x32xf32> to vector<12x32xbf16>
    %62 = vector.extract_strided_slice %10 {offsets = [0, 32], sizes = [12, 32], strides = [1, 1]} : vector<12x128xf32> to vector<12x32xf32>
    %63 = arith.truncf %62 : vector<12x32xf32> to vector<12x32xbf16>
    %cst_37 = arith.constant dense<0.000000e+00> : vector<16x12xf32>
    %64 = tpu.matmul %59, %61, %cst_37 {dimension_numbers = #tpu.dot_dimension_numbers<[1], [1], [0], [0], [0, 0, 1, 0], [], []>} : vector<16x32xbf16>, vector<12x32xbf16>, vector<16x12xf32> -> vector<16x12xf32>
    %65 = vector.broadcast %12 : vector<1x12xf32> to vector<16x12xf32>
    %66 = arith.addf %64, %65 : vector<16x12xf32>
    %c1 = arith.constant 1 : index
    %c0_38 = arith.constant 0 : index
    %c0_39 = arith.constant 0 : index
    %67 = vector.load %arg9[%c1, %c0_38, %c0_39] : memref<4x16x1xf32, #tpu.memory_space<vmem>>, vector<1x16x1xf32>
    %68 = vector.shape_cast %67 : vector<1x16x1xf32> to vector<16x1xf32>
    %c1_40 = arith.constant 1 : index
    %c0_41 = arith.constant 0 : index
    %c0_42 = arith.constant 0 : index
    %69 = vector.load %arg10[%c1_40, %c0_41, %c0_42] : memref<4x16x1xf32, #tpu.memory_space<vmem>>, vector<1x16x1xf32>
    %70 = vector.shape_cast %69 : vector<1x16x1xf32> to vector<16x1xf32>
    %c1_43 = arith.constant 1 : index
    %c0_44 = arith.constant 0 : index
    %c0_45 = arith.constant 0 : index
    %71 = vector.load %arg11[%c1_43, %c0_44, %c0_45] : memref<4x16x32xf32, #tpu.memory_space<vmem>>, vector<1x16x32xf32>
    %72 = vector.shape_cast %71 : vector<1x16x32xf32> to vector<16x32xf32>
    %cst_46 = arith.constant dense<0xFF800000> : vector<16xf32>
    %73 = vector.multi_reduction <maximumf>, %66, %cst_46 [1] : vector<16x12xf32> to vector<16xf32>
    %74 = vector.shape_cast %73 : vector<16xf32> to vector<16x1xf32>
    %75 = arith.maximumf %68, %74 : vector<16x1xf32>
    %cst_47 = arith.constant 0xFF800000 : f32
    %76 = vector.broadcast %cst_47 : f32 to vector<16x1xf32>
    %77 = arith.cmpf ogt, %75, %76 : vector<16x1xf32>
    %cst_48 = arith.constant 0.000000e+00 : f32
    %78 = vector.broadcast %cst_48 : f32 to vector<16x1xf32>
    %79 = arith.select %77, %75, %78 : vector<16x1xi1>, vector<16x1xf32>
    %80 = arith.subf %68, %79 : vector<16x1xf32>
    %81 = math.exp %80 : vector<16x1xf32>
    %82 = vector.broadcast %79 : vector<16x1xf32> to vector<16x12xf32>
    %83 = arith.subf %66, %82 : vector<16x12xf32>
    %84 = math.exp %83 : vector<16x12xf32>
    %85 = arith.mulf %81, %70 : vector<16x1xf32>
    %cst_49 = arith.constant dense<0.000000e+00> : vector<16xf32>
    %86 = vector.multi_reduction <add>, %84, %cst_49 [1] : vector<16x12xf32> to vector<16xf32>
    %87 = vector.shape_cast %86 : vector<16xf32> to vector<16x1xf32>
    %88 = arith.addf %85, %87 : vector<16x1xf32>
    %c1_50 = arith.constant 1 : index
    %c0_51 = arith.constant 0 : index
    %c0_52 = arith.constant 0 : index
    %89 = vector.load %arg10[%c1_50, %c0_51, %c0_52] : memref<4x16x1xf32, #tpu.memory_space<vmem>>, vector<1x16x1xf32>
    %90 = vector.shape_cast %89 : vector<1x16x1xf32> to vector<16x1xf32>
    %91 = vector.shape_cast %88 : vector<16x1xf32> to vector<1x16x1xf32>
    tpu.vector_store %arg10[%c1_50, %c0_51, %c0_52], %91 {strides = array<i32>} : memref<4x16x1xf32, #tpu.memory_space<vmem>>, vector<1x16x1xf32>,
    %92 = arith.truncf %84 : vector<16x12xf32> to vector<16x12xbf16>
    %cst_53 = arith.constant dense<0.000000e+00> : vector<16x32xf32>
    %93 = tpu.matmul %92, %63, %cst_53 {dimension_numbers = #tpu.dot_dimension_numbers<[1], [0], [0], [1], [0, 0, 1, 1], [], []>} : vector<16x12xbf16>, vector<12x32xbf16>, vector<16x32xf32> -> vector<16x32xf32>
    %94 = vector.broadcast %81 : vector<16x1xf32> to vector<16x32xf32>
    %95 = arith.mulf %94, %72 : vector<16x32xf32>
    %96 = arith.addf %95, %93 : vector<16x32xf32>
    %c1_54 = arith.constant 1 : index
    %c0_55 = arith.constant 0 : index
    %c0_56 = arith.constant 0 : index
    %97 = vector.load %arg11[%c1_54, %c0_55, %c0_56] : memref<4x16x32xf32, #tpu.memory_space<vmem>>, vector<1x16x32xf32>
    %98 = vector.shape_cast %97 : vector<1x16x32xf32> to vector<16x32xf32>
    %99 = vector.shape_cast %96 : vector<16x32xf32> to vector<1x16x32xf32>
    tpu.vector_store %arg11[%c1_54, %c0_55, %c0_56], %99 {strides = array<i32>} : memref<4x16x32xf32, #tpu.memory_space<vmem>>, vector<1x16x32xf32>,
    %c1_57 = arith.constant 1 : index
    %c0_58 = arith.constant 0 : index
    %c0_59 = arith.constant 0 : index
    %100 = vector.load %arg9[%c1_57, %c0_58, %c0_59] : memref<4x16x1xf32, #tpu.memory_space<vmem>>, vector<1x16x1xf32>
    %101 = vector.shape_cast %100 : vector<1x16x1xf32> to vector<16x1xf32>
    %102 = vector.shape_cast %75 : vector<16x1xf32> to vector<1x16x1xf32>
    tpu.vector_store %arg9[%c1_57, %c0_58, %c0_59], %102 {strides = array<i32>} : memref<4x16x1xf32, #tpu.memory_space<vmem>>, vector<1x16x1xf32>,
    %103 = vector.extract_strided_slice %6 {offsets = [0, 64], sizes = [16, 32], strides = [1, 1]} : vector<16x128xf32> to vector<16x32xf32>
    %104 = arith.truncf %103 : vector<16x32xf32> to vector<16x32xbf16>
    %105 = vector.extract_strided_slice %8 {offsets = [0, 64], sizes = [12, 32], strides = [1, 1]} : vector<12x128xf32> to vector<12x32xf32>
    %106 = arith.truncf %105 : vector<12x32xf32> to vector<12x32xbf16>
    %107 = vector.extract_strided_slice %10 {offsets = [0, 64], sizes = [12, 32], strides = [1, 1]} : vector<12x128xf32> to vector<12x32xf32>
    %108 = arith.truncf %107 : vector<12x32xf32> to vector<12x32xbf16>
    %cst_60 = arith.constant dense<0.000000e+00> : vector<16x12xf32>
    %109 = tpu.matmul %104, %106, %cst_60 {dimension_numbers = #tpu.dot_dimension_numbers<[1], [1], [0], [0], [0, 0, 1, 0], [], []>} : vector<16x32xbf16>, vector<12x32xbf16>, vector<16x12xf32> -> vector<16x12xf32>
    %110 = vector.broadcast %12 : vector<1x12xf32> to vector<16x12xf32>
    %111 = arith.addf %109, %110 : vector<16x12xf32>
    %c2 = arith.constant 2 : index
    %c0_61 = arith.constant 0 : index
    %c0_62 = arith.constant 0 : index
    %112 = vector.load %arg9[%c2, %c0_61, %c0_62] : memref<4x16x1xf32, #tpu.memory_space<vmem>>, vector<1x16x1xf32>
    %113 = vector.shape_cast %112 : vector<1x16x1xf32> to vector<16x1xf32>
    %c2_63 = arith.constant 2 : index
    %c0_64 = arith.constant 0 : index
    %c0_65 = arith.constant 0 : index
    %114 = vector.load %arg10[%c2_63, %c0_64, %c0_65] : memref<4x16x1xf32, #tpu.memory_space<vmem>>, vector<1x16x1xf32>
    %115 = vector.shape_cast %114 : vector<1x16x1xf32> to vector<16x1xf32>
    %c2_66 = arith.constant 2 : index
    %c0_67 = arith.constant 0 : index
    %c0_68 = arith.constant 0 : index
    %116 = vector.load %arg11[%c2_66, %c0_67, %c0_68] : memref<4x16x32xf32, #tpu.memory_space<vmem>>, vector<1x16x32xf32>
    %117 = vector.shape_cast %116 : vector<1x16x32xf32> to vector<16x32xf32>
    %cst_69 = arith.constant dense<0xFF800000> : vector<16xf32>
    %118 = vector.multi_reduction <maximumf>, %111, %cst_69 [1] : vector<16x12xf32> to vector<16xf32>
    %119 = vector.shape_cast %118 : vector<16xf32> to vector<16x1xf32>
    %120 = arith.maximumf %113, %119 : vector<16x1xf32>
    %cst_70 = arith.constant 0xFF800000 : f32
    %121 = vector.broadcast %cst_70 : f32 to vector<16x1xf32>
    %122 = arith.cmpf ogt, %120, %121 : vector<16x1xf32>
    %cst_71 = arith.constant 0.000000e+00 : f32
    %123 = vector.broadcast %cst_71 : f32 to vector<16x1xf32>
    %124 = arith.select %122, %120, %123 : vector<16x1xi1>, vector<16x1xf32>
    %125 = arith.subf %113, %124 : vector<16x1xf32>
    %126 = math.exp %125 : vector<16x1xf32>
    %127 = vector.broadcast %124 : vector<16x1xf32> to vector<16x12xf32>
    %128 = arith.subf %111, %127 : vector<16x12xf32>
    %129 = math.exp %128 : vector<16x12xf32>
    %130 = arith.mulf %126, %115 : vector<16x1xf32>
    %cst_72 = arith.constant dense<0.000000e+00> : vector<16xf32>
    %131 = vector.multi_reduction <add>, %129, %cst_72 [1] : vector<16x12xf32> to vector<16xf32>
    %132 = vector.shape_cast %131 : vector<16xf32> to vector<16x1xf32>
    %133 = arith.addf %130, %132 : vector<16x1xf32>
    %c2_73 = arith.constant 2 : index
    %c0_74 = arith.constant 0 : index
    %c0_75 = arith.constant 0 : index
    %134 = vector.load %arg10[%c2_73, %c0_74, %c0_75] : memref<4x16x1xf32, #tpu.memory_space<vmem>>, vector<1x16x1xf32>
    %135 = vector.shape_cast %134 : vector<1x16x1xf32> to vector<16x1xf32>
    %136 = vector.shape_cast %133 : vector<16x1xf32> to vector<1x16x1xf32>
    tpu.vector_store %arg10[%c2_73, %c0_74, %c0_75], %136 {strides = array<i32>} : memref<4x16x1xf32, #tpu.memory_space<vmem>>, vector<1x16x1xf32>,
    %137 = arith.truncf %129 : vector<16x12xf32> to vector<16x12xbf16>
    %cst_76 = arith.constant dense<0.000000e+00> : vector<16x32xf32>
    %138 = tpu.matmul %137, %108, %cst_76 {dimension_numbers = #tpu.dot_dimension_numbers<[1], [0], [0], [1], [0, 0, 1, 1], [], []>} : vector<16x12xbf16>, vector<12x32xbf16>, vector<16x32xf32> -> vector<16x32xf32>
    %139 = vector.broadcast %126 : vector<16x1xf32> to vector<16x32xf32>
    %140 = arith.mulf %139, %117 : vector<16x32xf32>
    %141 = arith.addf %140, %138 : vector<16x32xf32>
    %c2_77 = arith.constant 2 : index
    %c0_78 = arith.constant 0 : index
    %c0_79 = arith.constant 0 : index
    %142 = vector.load %arg11[%c2_77, %c0_78, %c0_79] : memref<4x16x32xf32, #tpu.memory_space<vmem>>, vector<1x16x32xf32>
    %143 = vector.shape_cast %142 : vector<1x16x32xf32> to vector<16x32xf32>
    %144 = vector.shape_cast %141 : vector<16x32xf32> to vector<1x16x32xf32>
    tpu.vector_store %arg11[%c2_77, %c0_78, %c0_79], %144 {strides = array<i32>} : memref<4x16x32xf32, #tpu.memory_space<vmem>>, vector<1x16x32xf32>,
    %c2_80 = arith.constant 2 : index
    %c0_81 = arith.constant 0 : index
    %c0_82 = arith.constant 0 : index
    %145 = vector.load %arg9[%c2_80, %c0_81, %c0_82] : memref<4x16x1xf32, #tpu.memory_space<vmem>>, vector<1x16x1xf32>
    %146 = vector.shape_cast %145 : vector<1x16x1xf32> to vector<16x1xf32>
    %147 = vector.shape_cast %120 : vector<16x1xf32> to vector<1x16x1xf32>
    tpu.vector_store %arg9[%c2_80, %c0_81, %c0_82], %147 {strides = array<i32>} : memref<4x16x1xf32, #tpu.memory_space<vmem>>, vector<1x16x1xf32>,
    %148 = vector.extract_strided_slice %6 {offsets = [0, 96], sizes = [16, 32], strides = [1, 1]} : vector<16x128xf32> to vector<16x32xf32>
    %149 = arith.truncf %148 : vector<16x32xf32> to vector<16x32xbf16>
    %150 = vector.extract_strided_slice %8 {offsets = [0, 96], sizes = [12, 32], strides = [1, 1]} : vector<12x128xf32> to vector<12x32xf32>
    %151 = arith.truncf %150 : vector<12x32xf32> to vector<12x32xbf16>
    %152 = vector.extract_strided_slice %10 {offsets = [0, 96], sizes = [12, 32], strides = [1, 1]} : vector<12x128xf32> to vector<12x32xf32>
    %153 = arith.truncf %152 : vector<12x32xf32> to vector<12x32xbf16>
    %cst_83 = arith.constant dense<0.000000e+00> : vector<16x12xf32>
    %154 = tpu.matmul %149, %151, %cst_83 {dimension_numbers = #tpu.dot_dimension_numbers<[1], [1], [0], [0], [0, 0, 1, 0], [], []>} : vector<16x32xbf16>, vector<12x32xbf16>, vector<16x12xf32> -> vector<16x12xf32>
    %155 = vector.broadcast %12 : vector<1x12xf32> to vector<16x12xf32>
    %156 = arith.addf %154, %155 : vector<16x12xf32>
    %c3 = arith.constant 3 : index
    %c0_84 = arith.constant 0 : index
    %c0_85 = arith.constant 0 : index
    %157 = vector.load %arg9[%c3, %c0_84, %c0_85] : memref<4x16x1xf32, #tpu.memory_space<vmem>>, vector<1x16x1xf32>
    %158 = vector.shape_cast %157 : vector<1x16x1xf32> to vector<16x1xf32>
    %c3_86 = arith.constant 3 : index
    %c0_87 = arith.constant 0 : index
    %c0_88 = arith.constant 0 : index
    %159 = vector.load %arg10[%c3_86, %c0_87, %c0_88] : memref<4x16x1xf32, #tpu.memory_space<vmem>>, vector<1x16x1xf32>
    %160 = vector.shape_cast %159 : vector<1x16x1xf32> to vector<16x1xf32>
    %c3_89 = arith.constant 3 : index
    %c0_90 = arith.constant 0 : index
    %c0_91 = arith.constant 0 : index
    %161 = vector.load %arg11[%c3_89, %c0_90, %c0_91] : memref<4x16x32xf32, #tpu.memory_space<vmem>>, vector<1x16x32xf32>
    %162 = vector.shape_cast %161 : vector<1x16x32xf32> to vector<16x32xf32>
    %cst_92 = arith.constant dense<0xFF800000> : vector<16xf32>
    %163 = vector.multi_reduction <maximumf>, %156, %cst_92 [1] : vector<16x12xf32> to vector<16xf32>
    %164 = vector.shape_cast %163 : vector<16xf32> to vector<16x1xf32>
    %165 = arith.maximumf %158, %164 : vector<16x1xf32>
    %cst_93 = arith.constant 0xFF800000 : f32
    %166 = vector.broadcast %cst_93 : f32 to vector<16x1xf32>
    %167 = arith.cmpf ogt, %165, %166 : vector<16x1xf32>
    %cst_94 = arith.constant 0.000000e+00 : f32
    %168 = vector.broadcast %cst_94 : f32 to vector<16x1xf32>
    %169 = arith.select %167, %165, %168 : vector<16x1xi1>, vector<16x1xf32>
    %170 = arith.subf %158, %169 : vector<16x1xf32>
    %171 = math.exp %170 : vector<16x1xf32>
    %172 = vector.broadcast %169 : vector<16x1xf32> to vector<16x12xf32>
    %173 = arith.subf %156, %172 : vector<16x12xf32>
    %174 = math.exp %173 : vector<16x12xf32>
    %175 = arith.mulf %171, %160 : vector<16x1xf32>
    %cst_95 = arith.constant dense<0.000000e+00> : vector<16xf32>
    %176 = vector.multi_reduction <add>, %174, %cst_95 [1] : vector<16x12xf32> to vector<16xf32>
    %177 = vector.shape_cast %176 : vector<16xf32> to vector<16x1xf32>
    %178 = arith.addf %175, %177 : vector<16x1xf32>
    %c3_96 = arith.constant 3 : index
    %c0_97 = arith.constant 0 : index
    %c0_98 = arith.constant 0 : index
    %179 = vector.load %arg10[%c3_96, %c0_97, %c0_98] : memref<4x16x1xf32, #tpu.memory_space<vmem>>, vector<1x16x1xf32>
    %180 = vector.shape_cast %179 : vector<1x16x1xf32> to vector<16x1xf32>
    %181 = vector.shape_cast %178 : vector<16x1xf32> to vector<1x16x1xf32>
    tpu.vector_store %arg10[%c3_96, %c0_97, %c0_98], %181 {strides = array<i32>} : memref<4x16x1xf32, #tpu.memory_space<vmem>>, vector<1x16x1xf32>,
    %182 = arith.truncf %174 : vector<16x12xf32> to vector<16x12xbf16>
    %cst_99 = arith.constant dense<0.000000e+00> : vector<16x32xf32>
    %183 = tpu.matmul %182, %153, %cst_99 {dimension_numbers = #tpu.dot_dimension_numbers<[1], [0], [0], [1], [0, 0, 1, 1], [], []>} : vector<16x12xbf16>, vector<12x32xbf16>, vector<16x32xf32> -> vector<16x32xf32>
    %184 = vector.broadcast %171 : vector<16x1xf32> to vector<16x32xf32>
    %185 = arith.mulf %184, %162 : vector<16x32xf32>
    %186 = arith.addf %185, %183 : vector<16x32xf32>
    %c3_100 = arith.constant 3 : index
    %c0_101 = arith.constant 0 : index
    %c0_102 = arith.constant 0 : index
    %187 = vector.load %arg11[%c3_100, %c0_101, %c0_102] : memref<4x16x32xf32, #tpu.memory_space<vmem>>, vector<1x16x32xf32>
    %188 = vector.shape_cast %187 : vector<1x16x32xf32> to vector<16x32xf32>
    %189 = vector.shape_cast %186 : vector<16x32xf32> to vector<1x16x32xf32>
    tpu.vector_store %arg11[%c3_100, %c0_101, %c0_102], %189 {strides = array<i32>} : memref<4x16x32xf32, #tpu.memory_space<vmem>>, vector<1x16x32xf32>,
    %c3_103 = arith.constant 3 : index
    %c0_104 = arith.constant 0 : index
    %c0_105 = arith.constant 0 : index
    %190 = vector.load %arg9[%c3_103, %c0_104, %c0_105] : memref<4x16x1xf32, #tpu.memory_space<vmem>>, vector<1x16x1xf32>
    %191 = vector.shape_cast %190 : vector<1x16x1xf32> to vector<16x1xf32>
    %192 = vector.shape_cast %165 : vector<16x1xf32> to vector<1x16x1xf32>
    tpu.vector_store %arg9[%c3_103, %c0_104, %c0_105], %192 {strides = array<i32>} : memref<4x16x1xf32, #tpu.memory_space<vmem>>, vector<1x16x1xf32>,
    %c0_i32_106 = arith.constant 0 : i32
    %193 = arith.cmpi eq, %arg2, %c0_i32_106 : i32
    %194 = arith.extui %193 : i1 to i32
    %c0_i32_107 = arith.constant 0 : i32
    %195 = arith.cmpi ne, %194, %c0_i32_107 : i32
    scf.if %195 {
      %c0_108 = arith.constant 0 : index
      %c0_109 = arith.constant 0 : index
      %c0_110 = arith.constant 0 : index
      %196 = vector.load %arg6[%c0_108, %c0_109, %c0_110] : memref<1x16x1xf32, #tpu.memory_space<vmem>>, vector<1x16x1xf32>
      %197 = vector.shape_cast %196 : vector<1x16x1xf32> to vector<16x1xf32>
      %cst_111 = arith.constant 0.000000e+00 : f32
      %198 = vector.broadcast %cst_111 : f32 to vector<16x1xf32>
      %199 = arith.cmpf ogt, %197, %198 : vector<16x1xf32>
      %c0_112 = arith.constant 0 : index
      %c0_113 = arith.constant 0 : index
      %c0_114 = arith.constant 0 : index
      %200 = vector.load %arg10[%c0_112, %c0_113, %c0_114] : memref<4x16x1xf32, #tpu.memory_space<vmem>>, vector<1x16x1xf32>
      %201 = vector.shape_cast %200 : vector<1x16x1xf32> to vector<16x1xf32>
      %cst_115 = arith.constant 0.000000e+00 : f32
      %202 = vector.broadcast %cst_115 : f32 to vector<16x1xf32>
      %203 = arith.cmpf ogt, %201, %202 : vector<16x1xf32>
      %204 = arith.andi %203, %199 : vector<16x1xi1>
      %cst_116 = arith.constant 1.000000e+00 : f32
      %205 = vector.broadcast %cst_116 : f32 to vector<16x1xf32>
      %206 = arith.select %204, %201, %205 : vector<16x1xi1>, vector<16x1xf32>
      %207 = tpu.reciprocal %206 {approx = true} : vector<16x1xf32> -> vector<16x1xf32>
      %cst_117 = arith.constant 0.000000e+00 : f32
      %208 = vector.broadcast %cst_117 : f32 to vector<16x1xf32>
      %209 = arith.select %204, %207, %208 : vector<16x1xi1>, vector<16x1xf32>
      %c0_118 = arith.constant 0 : index
      %c0_119 = arith.constant 0 : index
      %c0_120 = arith.constant 0 : index
      %210 = vector.load %arg11[%c0_118, %c0_119, %c0_120] : memref<4x16x32xf32, #tpu.memory_space<vmem>>, vector<1x16x32xf32>
      %211 = vector.shape_cast %210 : vector<1x16x32xf32> to vector<16x32xf32>
      %212 = vector.broadcast %209 : vector<16x1xf32> to vector<16x32xf32>
      %213 = arith.mulf %211, %212 : vector<16x32xf32>
      %c0_121 = arith.constant 0 : index
      %c0_122 = arith.constant 0 : index
      %c0_123 = arith.constant 0 : index
      %214 = vector.load %arg8[%c0_121, %c0_122, %c0_123] : memref<1x16x128xf32, #tpu.memory_space<vmem>>, vector<1x16x32xf32>
      %215 = vector.shape_cast %214 : vector<1x16x32xf32> to vector<16x32xf32>
      %216 = vector.shape_cast %213 : vector<16x32xf32> to vector<1x16x32xf32>
      tpu.vector_store %arg8[%c0_121, %c0_122, %c0_123], %216 {strides = array<i32>} : memref<1x16x128xf32, #tpu.memory_space<vmem>>, vector<1x16x32xf32>,
      %c1_124 = arith.constant 1 : index
      %c0_125 = arith.constant 0 : index
      %c0_126 = arith.constant 0 : index
      %217 = vector.load %arg10[%c1_124, %c0_125, %c0_126] : memref<4x16x1xf32, #tpu.memory_space<vmem>>, vector<1x16x1xf32>
      %218 = vector.shape_cast %217 : vector<1x16x1xf32> to vector<16x1xf32>
      %cst_127 = arith.constant 0.000000e+00 : f32
      %219 = vector.broadcast %cst_127 : f32 to vector<16x1xf32>
      %220 = arith.cmpf ogt, %218, %219 : vector<16x1xf32>
      %221 = arith.andi %220, %199 : vector<16x1xi1>
      %cst_128 = arith.constant 1.000000e+00 : f32
      %222 = vector.broadcast %cst_128 : f32 to vector<16x1xf32>
      %223 = arith.select %221, %218, %222 : vector<16x1xi1>, vector<16x1xf32>
      %224 = tpu.reciprocal %223 {approx = true} : vector<16x1xf32> -> vector<16x1xf32>
      %cst_129 = arith.constant 0.000000e+00 : f32
      %225 = vector.broadcast %cst_129 : f32 to vector<16x1xf32>
      %226 = arith.select %221, %224, %225 : vector<16x1xi1>, vector<16x1xf32>
      %c1_130 = arith.constant 1 : index
      %c0_131 = arith.constant 0 : index
      %c0_132 = arith.constant 0 : index
      %227 = vector.load %arg11[%c1_130, %c0_131, %c0_132] : memref<4x16x32xf32, #tpu.memory_space<vmem>>, vector<1x16x32xf32>
      %228 = vector.shape_cast %227 : vector<1x16x32xf32> to vector<16x32xf32>
      %229 = vector.broadcast %226 : vector<16x1xf32> to vector<16x32xf32>
      %230 = arith.mulf %228, %229 : vector<16x32xf32>
      %c0_133 = arith.constant 0 : index
      %c0_134 = arith.constant 0 : index
      %c32 = arith.constant 32 : index
      %231 = vector.load %arg8[%c0_133, %c0_134, %c32] : memref<1x16x128xf32, #tpu.memory_space<vmem>>, vector<1x16x32xf32>
      %232 = vector.shape_cast %231 : vector<1x16x32xf32> to vector<16x32xf32>
      %233 = vector.shape_cast %230 : vector<16x32xf32> to vector<1x16x32xf32>
      tpu.vector_store %arg8[%c0_133, %c0_134, %c32], %233 {strides = array<i32>} : memref<1x16x128xf32, #tpu.memory_space<vmem>>, vector<1x16x32xf32>,
      %c2_135 = arith.constant 2 : index
      %c0_136 = arith.constant 0 : index
      %c0_137 = arith.constant 0 : index
      %234 = vector.load %arg10[%c2_135, %c0_136, %c0_137] : memref<4x16x1xf32, #tpu.memory_space<vmem>>, vector<1x16x1xf32>
      %235 = vector.shape_cast %234 : vector<1x16x1xf32> to vector<16x1xf32>
      %cst_138 = arith.constant 0.000000e+00 : f32
      %236 = vector.broadcast %cst_138 : f32 to vector<16x1xf32>
      %237 = arith.cmpf ogt, %235, %236 : vector<16x1xf32>
      %238 = arith.andi %237, %199 : vector<16x1xi1>
      %cst_139 = arith.constant 1.000000e+00 : f32
      %239 = vector.broadcast %cst_139 : f32 to vector<16x1xf32>
      %240 = arith.select %238, %235, %239 : vector<16x1xi1>, vector<16x1xf32>
      %241 = tpu.reciprocal %240 {approx = true} : vector<16x1xf32> -> vector<16x1xf32>
      %cst_140 = arith.constant 0.000000e+00 : f32
      %242 = vector.broadcast %cst_140 : f32 to vector<16x1xf32>
      %243 = arith.select %238, %241, %242 : vector<16x1xi1>, vector<16x1xf32>
      %c2_141 = arith.constant 2 : index
      %c0_142 = arith.constant 0 : index
      %c0_143 = arith.constant 0 : index
      %244 = vector.load %arg11[%c2_141, %c0_142, %c0_143] : memref<4x16x32xf32, #tpu.memory_space<vmem>>, vector<1x16x32xf32>
      %245 = vector.shape_cast %244 : vector<1x16x32xf32> to vector<16x32xf32>
      %246 = vector.broadcast %243 : vector<16x1xf32> to vector<16x32xf32>
      %247 = arith.mulf %245, %246 : vector<16x32xf32>
      %c0_144 = arith.constant 0 : index
      %c0_145 = arith.constant 0 : index
      %c64 = arith.constant 64 : index
      %248 = vector.load %arg8[%c0_144, %c0_145, %c64] : memref<1x16x128xf32, #tpu.memory_space<vmem>>, vector<1x16x32xf32>
      %249 = vector.shape_cast %248 : vector<1x16x32xf32> to vector<16x32xf32>
      %250 = vector.shape_cast %247 : vector<16x32xf32> to vector<1x16x32xf32>
      tpu.vector_store %arg8[%c0_144, %c0_145, %c64], %250 {strides = array<i32>} : memref<1x16x128xf32, #tpu.memory_space<vmem>>, vector<1x16x32xf32>,
      %c3_146 = arith.constant 3 : index
      %c0_147 = arith.constant 0 : index
      %c0_148 = arith.constant 0 : index
      %251 = vector.load %arg10[%c3_146, %c0_147, %c0_148] : memref<4x16x1xf32, #tpu.memory_space<vmem>>, vector<1x16x1xf32>
      %252 = vector.shape_cast %251 : vector<1x16x1xf32> to vector<16x1xf32>
      %cst_149 = arith.constant 0.000000e+00 : f32
      %253 = vector.broadcast %cst_149 : f32 to vector<16x1xf32>
      %254 = arith.cmpf ogt, %252, %253 : vector<16x1xf32>
      %255 = arith.andi %254, %199 : vector<16x1xi1>
      %cst_150 = arith.constant 1.000000e+00 : f32
      %256 = vector.broadcast %cst_150 : f32 to vector<16x1xf32>
      %257 = arith.select %255, %252, %256 : vector<16x1xi1>, vector<16x1xf32>
      %258 = tpu.reciprocal %257 {approx = true} : vector<16x1xf32> -> vector<16x1xf32>
      %cst_151 = arith.constant 0.000000e+00 : f32
      %259 = vector.broadcast %cst_151 : f32 to vector<16x1xf32>
      %260 = arith.select %255, %258, %259 : vector<16x1xi1>, vector<16x1xf32>
      %c3_152 = arith.constant 3 : index
      %c0_153 = arith.constant 0 : index
      %c0_154 = arith.constant 0 : index
      %261 = vector.load %arg11[%c3_152, %c0_153, %c0_154] : memref<4x16x32xf32, #tpu.memory_space<vmem>>, vector<1x16x32xf32>
      %262 = vector.shape_cast %261 : vector<1x16x32xf32> to vector<16x32xf32>
      %263 = vector.broadcast %260 : vector<16x1xf32> to vector<16x32xf32>
      %264 = arith.mulf %262, %263 : vector<16x32xf32>
      %c0_155 = arith.constant 0 : index
      %c0_156 = arith.constant 0 : index
      %c96 = arith.constant 96 : index
      %265 = vector.load %arg8[%c0_155, %c0_156, %c96] : memref<1x16x128xf32, #tpu.memory_space<vmem>>, vector<1x16x32xf32>
      %266 = vector.shape_cast %265 : vector<1x16x32xf32> to vector<16x32xf32>
      %267 = vector.shape_cast %264 : vector<16x32xf32> to vector<1x16x32xf32>
      tpu.vector_store %arg8[%c0_155, %c0_156, %c96], %267 {strides = array<i32>} : memref<1x16x128xf32, #tpu.memory_space<vmem>>, vector<1x16x32xf32>,
    } else {
    }
    return
  }
  func.func @transform_0(%arg0: i32, %arg1: i32, %arg2: i32) -> (i32, i32, i32) {
    %c0_i32 = arith.constant 0 : i32
    %c0_i32_0 = arith.constant 0 : i32
    return %arg0, %arg1, %c0_i32 : i32, i32, i32
  }
  func.func @transform_1(%arg0: i32, %arg1: i32, %arg2: i32) -> (i32, i32, i32) {
    %c0_i32 = arith.constant 0 : i32
    %c0_i32_0 = arith.constant 0 : i32
    return %arg0, %arg2, %c0_i32 : i32, i32, i32
  }
  func.func @transform_2(%arg0: i32, %arg1: i32, %arg2: i32) -> (i32, i32, i32) {
    %c0_i32 = arith.constant 0 : i32
    %c0_i32_0 = arith.constant 0 : i32
    return %arg0, %arg2, %c0_i32 : i32, i32, i32
  }
  func.func @transform_3(%arg0: i32, %arg1: i32, %arg2: i32) -> (i32, i32, i32) {
    %c0_i32 = arith.constant 0 : i32
    %c0_i32_0 = arith.constant 0 : i32
    return %arg0, %arg1, %c0_i32 : i32, i32, i32
  }
  func.func @transform_4(%arg0: i32, %arg1: i32, %arg2: i32) -> (i32, i32, i32) {
    %c0_i32 = arith.constant 0 : i32
    %c0_i32_0 = arith.constant 0 : i32
    return %arg0, %c0_i32, %arg2 : i32, i32, i32
  }
  func.func @transform_5(%arg0: i32, %arg1: i32, %arg2: i32) -> (i32, i32, i32) {
    %c0_i32 = arith.constant 0 : i32
    %c0_i32_0 = arith.constant 0 : i32
    return %arg0, %arg1, %c0_i32 : i32, i32, i32
  }
}

</mosaic_0001>

<bundles_post_ra>
// kernel: tpu_custom_call.1
= control target key start
LH: loop header
LB: loop body
LE: loop exit
PB: predicated region body
PF: predicated region fallthrough
CT: control target
= control target key end

     0   :  { %10 = vsyncpa [#allocation6], 0  ;;  %s1936_s0 = inlined_call_operand.vmem [shape: f32[2,16,128], index: 0, kind: input, shape index: {}]   ;;  %s1937_s1 = inlined_call_operand.vmem [shape: f32[2,12,128], index: 1, kind: input, shape index: {}]   ;;  %s1938_s2 = inlined_call_operand.vmem [shape: f32[2,12,128], index: 2, kind: input, shape index: {}]   ;;  %s1939_s3 = inlined_call_operand.vmem [shape: f32[2,16,1], index: 3, kind: input, shape index: {}]   ;;  %s1940_s4 = inlined_call_operand.vmem [shape: f32[2,1,12], index: 4, kind: input, shape index: {}]   ;;  %s1941_s5 = inlined_call_operand.hbm [shape: f32[2,16,128], index: 5, kind: output, shape index: {}]  }
   0x1   :  { %12 = vsyncpa [#allocation6 + $0x1], 0  ;;  %s1501_s18 = smov 0   ;;  %s1503_s19 = smov 0  }
   0x2   :  { %s1505_s20 = smov 0   ;;  %s1507_s21 = smov 0  }
   0x3   :  { %s1509_s22 = smov 0   ;;  %s1511_s23 = smov 0  }
   0x4 LB: > { %s1236_s24 = sadd.s32 4294967295, %s1461_s23   ;;  %s1237_s25 = sadd.s32 4294967294, %s1461_s23   ;;  %s1461_s23 = sphi %s1511_s23, %s18_s23   ;;  %s1457_s22 = sphi %s1509_s22, %s1960_s22   ;;  %s1453_s21 = sphi %s1507_s21, %s1959_s21   ;;  %s1449_s20 = sphi %s1505_s20, %s1958_s20   ;;  %s1445_s19 = sphi %s1503_s19, %s1957_s19   ;;  %s1441_s18 = sphi %s1501_s18, %s1956_s18  }
   0x5   : > { %s37_s26 = sadd.s32 1, %s1457_s22  ;;  %s186_s27 = sadd.s32 1, %s1449_s20 }
   0x6   : > { %p39_p0 = scmp.ge.s32.totalorder %s37_s26, 2  ;;  %p196_p1 = scmp.ne.s32.totalorder %s1449_s20, %s1445_s19 }
   0x7   : > { %p197_p2 = scmp.eq.s32.totalorder %s1236_s24, 1  ;;  %p202_p3 = scmp.ne.s32.totalorder %s1445_s19, %s1441_s18 }
   0x8   : > { %s1962_s26 = smov (%p39_p0, %s37_s26), 0  ;;  %p203_p5 = scmp.eq.s32.totalorder %s1237_s25, 1 }
   0x9   : > { %p1541_p4 = por %p197_p2, %p196_p1  ;;  %s181_s29 = ssub.s32 %s1457_s22, %s1962_s26 }
   0xa   : > { %p1240_p6 = scmp.ge.s32.totalorder %s1461_s23, 1  ;;  %p184_p7 = scmp.eq.s32.totalorder %s181_s29, 0 }
   0xb   : > { %p1548_p8 = por %p203_p5, %p202_p3  ;;  %p282_p9 = scmp.lt.s32.totalorder %s1461_s23, 3 }
   0xc   : > { %s1554_s6 = scalar_select %p184_p7, %s1449_s20, %s186_s27  }
   0xd   : > { %p283_p10 = pnand %p1240_p6, %p282_p9 }
   0xe   : > { %p348_p11 = scmp.lt.s32.totalorder (!%p283_p10), %s1453_s21, 1  ;;  %s1463_s24 = smov (!%p283_p10), 96  }
   0xf   : > { %286 = sbr.rel (%p283_p10) target bundleno = 1253 (0x4e5), region = 40  ;;  %s1465_s25 = smov (!%p283_p10), 64  }
  0x10   : > { %s1468_s27 = smov (!%p283_p10), 32   ;;  %s1267_s15 = sshll.u32 (!%p283_p10), %s1453_s21, 4 }
  0x14   : > { %s1558_s7 = scalar_select %p348_p11, %s1453_s21, 1  ;;  %vm416_vm0 = vcmask 261120   ;;  %vm399_vm1 = vcmask 7168   ;;  %v1464_v9 = vmov -inf   ;;  %vm467_vm2 = vcmask 97280  }
  0x15   : > { %400 = vst.msk [vmem:[#allocation2] sm:$0xff] %vm399_vm1, %v1464_v9  ;;  %v1466_v17 = vmov 0   ;;  %v1467_v18 = vmov 0.0   ;;  %vm519_vm5 = vcmask 1045504  }
  0x16   : > { %s1561_s8 = sshll.u32 %s1558_s7, 4  ;;  %s392_s11 = scalar_lea.vmem %s1940_s4, %s1558_s7  ;;  %401 = vst.msk [vmem:[#allocation2 + $0x8] sm:$0xff] %vm399_vm1, %v1464_v9  ;;  %1331 = vset.pattern.permute.xlu1 %v1466_v17  ;;  %1332 = vset.pattern.permute.xlu2 %v1466_v17 }
  0x17   : > { %s365_s14 = scalar_lea.vmem %s1937_s1, %s1561_s8  ;;  %s355_s17 = scalar_lea.vmem %s1936_s0, %s1561_s8  ;;  %402 = vst.msk [vmem:[#allocation2 + $0x10] sm:$0xff] %vm399_vm1, %v1464_v9  ;;  %v1593_v10 = vld [vmem:[%s392_s11] ss:$0 sm:$0xff]  ;;  %1333 = vset.pattern.permute.xlu0 %v1466_v17 }
  0x18   : > { %v429_v0 = vld [vmem:[%s365_s14] sm:$0xff]  ;;  %v430_v1 = vld [vmem:[%s365_s14 + $0x8] sm:$0xf]  ;;  %403 = vst.msk [vmem:[#allocation2 + $0x18] sm:$0xff] %vm399_vm1, %v1464_v9  ;;  %s375_s9 = scalar_lea.vmem %s1938_s2, %s1561_s8  ;;  %s385_s12 = scalar_lea.vmem %s1939_s3, %s1561_s8 }
  0x19   : > { %v425_v2 = vld [vmem:[%s355_s17] sm:$0xff]  ;;  %v1575_v3 = vpack.c.bf16 %v430_v1, %v429_v0  ;;  %v426_v4 = vld [vmem:[%s355_s17 + $0x8] sm:$0xff]  ;;  %404 = vst.msk [vmem:[#allocation2 + $0x20] sm:$0xff] %vm399_vm1, %v1464_v9  ;;  %s344_s8 = sand.u32 1, %s1445_s19   ;;  %s1403_s11 = scalar_lea.hbm %s1941_s5, 32 }
  0x1a   : > { %v427_v6 = vmul.f32 0.17677669, %v425_v2  ;;  %v428_v7 = vmul.f32 0.17677669, %v426_v4  ;;  %405 = vst.msk [vmem:[#allocation2 + $0x28] sm:$0xff] %vm399_vm1, %v1464_v9  ;;  %v431_v31 = vld [vmem:[%s375_s9] sm:$0xff] }
  0x1b   : > { %v445_v5 = vsel %vm416_vm0, %v1575_v3, 0  ;;  %559 = vrot.lane.b32.xlu1 %v1575_v3, %s1463_s24  ;;  %406 = vst.msk [vmem:[#allocation2 + $0x30] sm:$0xff] %vm399_vm1, %v1464_v9  ;;  %v432_v32 = vld [vmem:[%s375_s9 + $0x8] sm:$0xf]  ;;  %s1241_s13 = sshll.u32 %s344_s8, 4  ;;  %s1065_s29 = scalar_lea.sflag [#allocation6], %s344_s8 }
  0x1c   : > { %454 = vmatpush.bf16.xpose.msra.mxu0 %v445_v5  ;;  %v1579_v8 = vpack.c.bf16 %v428_v7, %v427_v6  ;;  %407 = vst.msk [vmem:[#allocation2 + $0x38] sm:$0xff] %vm399_vm1, %v1464_v9  ;;  %v461_v19 = vld [vmem:[#allocation2] sm:$0xff]  ;;  %v1646_v33 = vpack.c.bf16 %v432_v32, %v431_v31  ;;  %s1849_s14 = scalar_lea.vmem [#allocation5], %s1241_s13 }
  0x1d   : > { %417 = vst.msk [vmem:[#allocation4] sm:$0xff] %vm416_vm0, %v1467_v18  ;;  %v1624_v24 = vld [vmem:[#allocation2 + $0x8] sm:$0xff] }
  0x1e   : > { %408 = vst.msk [vmem:[#allocation3] sm:$0xff] %vm399_vm1, %v1467_v18  ;;  %v521_v34 = vsel %vm519_vm5, %v1646_v33, 0 }
  0x1f   : > { %409 = vst.msk [vmem:[#allocation3 + $0x8] sm:$0xff] %vm399_vm1, %v1467_v18  ;;  %530 = vmatpush.bf16.msra.mxu1 %v521_v34 }
  0x20   : > { %410 = vst.msk [vmem:[#allocation3 + $0x10] sm:$0xff] %vm399_vm1, %v1467_v18 }
  0x21   : > { %411 = vst.msk [vmem:[#allocation3 + $0x18] sm:$0xff] %vm399_vm1, %v1467_v18 }
  0x22   : > { %412 = vst.msk [vmem:[#allocation3 + $0x20] sm:$0xff] %vm399_vm1, %v1467_v18 }
  0x23   : > { %1250 = vmatmul.msk.bf16.vlgmr.msra.gmra.mxu0 %vm416_vm0, %v1579_v8  ;;  %413 = vst.msk [vmem:[#allocation3 + $0x28] sm:$0xff] %vm399_vm1, %v1467_v18 }
  0x24   : > { %414 = vst.msk [vmem:[#allocation3 + $0x30] sm:$0xff] %vm399_vm1, %v1467_v18 }
  0x25   : > { %415 = vst.msk [vmem:[#allocation3 + $0x38] sm:$0xff] %vm399_vm1, %v1467_v18 }
  0x26   : > { %418 = vst.msk [vmem:[#allocation4 + $0x8] sm:$0xff] %vm416_vm0, %v1467_v18 }
  0x27   : > { %419 = vst.msk [vmem:[#allocation4 + $0x10] sm:$0xff] %vm416_vm0, %v1467_v18 }
  0x28   : > { %420 = vst.msk [vmem:[#allocation4 + $0x18] sm:$0xff] %vm416_vm0, %v1467_v18 }
  0x29   : > { %421 = vst.msk [vmem:[#allocation4 + $0x20] sm:$0xff] %vm416_vm0, %v1467_v18 }
  0x2a   : > { %422 = vst.msk [vmem:[#allocation4 + $0x28] sm:$0xff] %vm416_vm0, %v1467_v18 }
  0x2b   : > { %423 = vst.msk [vmem:[#allocation4 + $0x30] sm:$0xff] %vm416_vm0, %v1467_v18 }
  0x2c   : > { %424 = vst.msk [vmem:[#allocation4 + $0x38] sm:$0xff] %vm416_vm0, %v1467_v18  ;;  %v1701_v18 = vld [vmem:[#allocation2 + $0x30] sm:$0xff] }
  0x8d   : > { %v560_v29 = vpop.permute.xlu1 %559 }
  0x8e   : > { %v565_v30 = vsel %vm416_vm0, %v560_v29, 0 }
  0x8f   : > { %574 = vmatpush.bf16.xpose.msra.mxu2 %v565_v30 }
  0xa0   : > { %v456_v11 = vpop.f32.mrf.mxu0 }
  0xa1   : > { %v1596_v12 = vadd.f32 %v1593_v10, %v456_v11 }
  0xa3   : > { %v468_v13 = vsel %vm467_vm2, %v1596_v12, -inf }
  0xa4   : > { %469 = vmax.xlane.f32.xlu0 %v468_v13 }
  0xa8   : > { %v458_v14 = vpop.f32.mrf.mxu0 }
  0xa9   : > { %v1601_v15 = vadd.f32 %v1593_v10, %v458_v14  ;;  %v582_v14 = vld [vmem:[#allocation2 + $0x10] sm:$0xff] }
  0xab   : > { %v471_v16 = vsel %vm467_vm2, %v1601_v15, -inf }
  0xac   : > { %472 = vmax.xlane.f32.xlu0 %v471_v16 }
  0xc0   : > { %680 = vrot.lane.b32.xlu0 %v1575_v3, %s1465_s25 }
 0x117   : > { %v470_v20 = vpop.xlane.xlu0 %469 }
 0x118   : > { %v474_v21 = vmax.f32 %v461_v19, %v470_v20 }
 0x11a   : > { %553 = vst.msk [vmem:[#allocation2] sm:$0xff] %vm399_vm1, %v474_v21  ;;  %vm476_vm3 = vcmp.gt.f32.partialorder %v474_v21, -inf }
 0x11b   : > { %v478_v22 = vsel %vm476_vm3, %v474_v21, 0.0 }
 0x11c   : > { %488 = vperm.xlu1 %1331, %v478_v22   ;;  %v480_v23 = vsub.f32 %v461_v19, %v478_v22  ;;  %v465_v19 = vld [vmem:[#allocation4] sm:$0xff] }
 0x11e   : > { %v482_v54 = vmul.f32 1.442695, %v480_v23 }
 0x11f   : > { %v473_v25 = vpop.xlane.xlu0 %472 }
 0x120   : > { %v475_v26 = vmax.f32 %v1624_v24, %v473_v25 }
 0x122   : > { %554 = vst.msk [vmem:[#allocation2 + $0x8] sm:$0xff] %vm399_vm1, %v475_v26  ;;  %vm477_vm4 = vcmp.gt.f32.partialorder %v475_v26, -inf }
 0x123   : > { %v1628_v27 = vsel %vm477_vm4, %v475_v26, 0.0 }
 0x124   : > { %800 = vrot.lane.b32.xlu1 %v1575_v3, %s1468_s27  ;;  %493 = vperm.xlu2 %1332, %v1628_v27   ;;  %v481_v28 = vsub.f32 %v1624_v24, %v1628_v27  ;;  %v1711_v27 = vld [vmem:[#allocation2 + $0x38] sm:$0xff] }
 0x126   : > { %v484_v7 = vmul.f32 1.442695, %v481_v28  ;;  %v1713_v28 = vld [vmem:[#allocation2 + $0x18] sm:$0xff] }
 0x12c   : > { %798 = vrot.lane.b32.xlu1 %v1579_v8, %s1468_s27  ;;  %556 = vrot.lane.b32.xlu2 %v1579_v8, %s1463_s24 }
 0x132   : > { %v681_v36 = vpop.permute.xlu0 %680 }
 0x133   : > { %v686_v37 = vsel %vm416_vm0, %v681_v36, 0  ;;  %v464_v36 = vld [vmem:[#allocation3 + $0x8] sm:$0xff] }
 0x134   : > { %678 = vrot.lane.b32.xlu2 %v1579_v8, %s1465_s25  ;;  %695 = vmatpush.bf16.xpose.msrb.mxu1 %v686_v37 }
 0x17e   : > { %v494_v35 = vpop.permute.xlu2 %493 }
 0x17f   : > { %v497_v39 = vsub.f32 %v1601_v15, %v494_v35 }
 0x181   : > { %v500_v40 = vmul.f32 1.442695, %v497_v39 }
 0x183   : > { %1335 = vpow2.f32 %v500_v40 }
 0x186   : > { %v557_v38 = vpop.permute.xlu2 %556 }
 0x187   : > { %1252 = vmatmul.msk.bf16.vlgmr.msra.gmra.mxu2 %vm416_vm0, %v557_v38  ;;  %v466_v38 = vld [vmem:[#allocation4 + $0x8] sm:$0xff] }
 0x189   : > { %v1336_v46 = vpop.eup %1335 }
 0x18a   : > { %v507_v4 = vsel %vm467_vm2, %v1336_v46, 0.0 }
 0x18e   : > { %v489_v41 = vpop.permute.xlu1 %488  ;;  %v679_v50 = vpop.permute.xlu2 %678 }
 0x18f   : > { %v496_v42 = vsub.f32 %v1596_v12, %v489_v41 }
 0x191   : > { %v498_v43 = vmul.f32 1.442695, %v496_v42 }
 0x193   : > { %1337 = vpow2.f32 %v498_v43 }
 0x194   : > { %1339 = vpow2.f32 %v482_v54 }
 0x195   : > { %1341 = vpow2.f32 %v484_v7 }
 0x196   : > { %v801_v44 = vpop.permute.xlu1 %800 }
 0x197   : > { %v806_v45 = vsel %vm416_vm0, %v801_v44, 0 }
 0x198   : > { %815 = vmatpush.bf16.xpose.msrb.mxu0 %v806_v45 }
 0x199   : > { %v1338_v47 = vpop.eup %1337 }
 0x19a   : > { %v515_v48 = vpack.c.bf16 %v1336_v46, %v1338_v47  ;;  %v1668_v60 = vpop.eup %1339  ;;  %v504_v11 = vsel %vm467_vm2, %v1338_v47, 0.0  ;;  %v1732_v46 = vld [vmem:[#allocation2 + $0x28] sm:$0xff] }
 0x19b   : > { %v1342_v9 = vpop.eup %1341 }
 0x19c   : > { %1251 = vmatmul.msk.bf16.vlgmr.msra.gmra.mxu1 %vm467_vm2, %v515_v48  ;;  %v503_v39 = vmul.f32 %v1342_v9, %v464_v36 }
 0x19e   : > { %v799_v49 = vpop.permute.xlu1 %798 }
 0x19f   : > { %1256 = vmatmul.msk.bf16.vlgmr.msrb.gmra.mxu0 %vm416_vm0, %v799_v49 }
 0x1ac   : > { %1254 = vmatmul.msk.bf16.vlgmr.msrb.gmra.mxu1 %vm416_vm0, %v679_v50 }
 0x20a   : > { %v576_v51 = vpop.f32.mrf.mxu2 }
 0x20b   : > { %v1659_v52 = vadd.f32 %v1593_v10, %v576_v51  ;;  %v463_v51 = vld [vmem:[#allocation3] sm:$0xff] }
 0x20d   : > { %v590_v53 = vsel %vm467_vm2, %v1659_v52, -inf }
 0x20e   : > { %591 = vmax.xlane.f32.xlu0 %v590_v53  ;;  %v502_v53 = vmul.f32 %v1668_v60, %v463_v51 }
 0x212   : > { %v578_v59 = vpop.f32.mrf.mxu2 }
 0x213   : > { %v1674_v62 = vadd.f32 %v1593_v10, %v578_v59 }
 0x215   : > { %v593_v2 = vsel %vm467_vm2, %v1674_v62, -inf }
 0x219   : > { %v532_v55 = vpop.f32.mrf.mxu1 }
 0x21c   : > { %v817_v56 = vpop.f32.mrf.mxu0 }
 0x21d   : > { %v1664_v57 = vadd.f32 %v1593_v10, %v817_v56  ;;  %v703_v56 = vld [vmem:[#allocation2 + $0x20] sm:$0xff] }
 0x21f   : > { %v831_v58 = vsel %vm467_vm2, %v1664_v57, -inf }
 0x220   : > { %832 = vmax.xlane.f32.xlu2 %v831_v58 }
 0x221   : > { %v1670_v61 = vpop.f32.mrf.mxu1 }
 0x222   : > { %539 = vperm.xlu0 %1333, %v1668_v60  }
 0x224   : > { %v819_v63 = vpop.f32.mrf.mxu0 }
 0x225   : > { %v1677_v0 = vadd.f32 %v1593_v10, %v819_v63 }
 0x227   : > { %v834_v1 = vsel %vm467_vm2, %v1677_v0, -inf }
 0x228   : > { %835 = vmax.xlane.f32.xlu1 %v834_v1  ;;  %594 = vmax.xlane.f32.xlu2 %v593_v2 }
 0x229   : > { %v697_v3 = vpop.f32.mrf.mxu1 }
 0x22a   : > { %v1694_v12 = vadd.f32 %v1593_v10, %v697_v3 }
 0x22c   : > { %v711_v13 = vsel %vm467_vm2, %v1694_v12, -inf }
 0x230   : > { %508 = vadd.xlane.f32.xlu1 %v507_v4 }
 0x231   : > { %v699_v5 = vpop.f32.mrf.mxu1 }
 0x232   : > { %v1685_v6 = vadd.f32 %v1593_v10, %v699_v5 }
 0x234   : > { %v714_v8 = vsel %vm467_vm2, %v1685_v6, -inf }
 0x238   : > { %715 = vmax.xlane.f32.xlu1 %v714_v8 }
 0x240   : > { %544 = vperm.xlu2 %1332, %v1342_v9  }
 0x269   : > { %505 = vadd.xlane.f32.xlu2 %v504_v11 }
 0x271   : > { %712 = vmax.xlane.f32.xlu2 %v711_v13 }
 0x281   : > { %v592_v15 = vpop.xlane.xlu0 %591 }
 0x282   : > { %v596_v16 = vmax.f32 %v582_v14, %v592_v15 }
 0x284   : > { %676 = vst.msk [vmem:[#allocation2 + $0x10] sm:$0xff] %vm399_vm1, %v596_v16  ;;  %vm598_vm6 = vcmp.gt.f32.partialorder %v596_v16, -inf }
 0x285   : > { %v600_v17 = vsel %vm598_vm6, %v596_v16, 0.0 }
 0x286   : > { %610 = vperm.xlu1 %1331, %v600_v17   ;;  %v602_v26 = vsub.f32 %v582_v14, %v600_v17 }
 0x288   : > { %v604_v34 = vmul.f32 1.442695, %v602_v26 }
 0x289   : > { %638 = vrot.lane.b32.xlu2 %v1646_v33, %s1463_s24 }
 0x28a   : > { %1343 = vpow2.f32 %v604_v34 }
 0x290   : > { %v1728_v45 = vpop.eup %1343 }
 0x293   : > { %v833_v10 = vpop.xlane.xlu2 %832 }
 0x294   : > { %v837_v20 = vmax.f32 %v1701_v18, %v833_v10  ;;  %v540_v21 = vpop.permute.xlu0 %539 }
 0x295   : > { %v547_v22 = vmul.f32 %v540_v21, %v465_v19 }
 0x296   : > { %916 = vst.msk [vmem:[#allocation2 + $0x30] sm:$0xff] %vm399_vm1, %v837_v20  ;;  %vm839_vm7 = vcmp.gt.f32.partialorder %v837_v20, -inf }
 0x297   : > { %v549_v23 = vadd.f32 %v547_v22, %v532_v55  ;;  %v1705_v24 = vsel %vm839_vm7, %v837_v20, 0.0 }
 0x298   : > { %v843_v25 = vsub.f32 %v1701_v18, %v1705_v24  ;;  %851 = vperm.xlu2 %1332, %v1705_v24  }
 0x299   : > { %551 = vst.msk [vmem:[#allocation4] sm:$0xff] %vm416_vm0, %v549_v23 }
 0x29b   : > { %v836_v29 = vpop.xlane.xlu1 %835  ;;  %v595_v30 = vpop.xlane.xlu2 %594 }
 0x29c   : > { %v838_v31 = vmax.f32 %v1711_v27, %v836_v29  ;;  %v597_v32 = vmax.f32 %v1713_v28, %v595_v30  ;;  %v1764_v29 = vld [vmem:[%s385_s12] sm:$0xff] }
 0x29d   : > { %vm923_vm12 = vcmp.gt.f32.partialorder %v1764_v29, 0.0 }
 0x29e   : > { %917 = vst.msk [vmem:[#allocation2 + $0x38] sm:$0xff] %vm399_vm1, %v838_v31  ;;  %vm599_vm8 = vcmp.gt.f32.partialorder %v597_v32, -inf  ;;  %vm840_vm11 = vcmp.gt.f32.partialorder %v838_v31, -inf }
 0x29f   : > { %677 = vst.msk [vmem:[#allocation2 + $0x18] sm:$0xff] %vm399_vm1, %v597_v32  ;;  %v1719_v35 = vsel %vm599_vm8, %v597_v32, 0.0  ;;  %v842_v1 = vsel %vm840_vm11, %v838_v31, 0.0 }
 0x2a0   : > { %615 = vperm.xlu0 %1333, %v1719_v35   ;;  %v603_v37 = vsub.f32 %v1713_v28, %v1719_v35  ;;  %878 = vrot.lane.b32.xlu2 %v1646_v33, %s1468_s27  ;;  %v844_v26 = vsub.f32 %v1711_v27, %v842_v1  ;;  %v1776_v27 = vld [vmem:[%s385_s12 + $0x8] sm:$0xff] }
 0x2a1   : > { %vm924_vm15 = vcmp.gt.f32.partialorder %v1776_v27, 0.0 }
 0x2a2   : > { %v847_v31 = vmul.f32 1.442695, %v844_v26 }
 0x2a3   : > { %v509_v40 = vpop.xlane.xlu1 %508  ;;  %v545_v41 = vpop.permute.xlu2 %544 }
 0x2a4   : > { %v511_v42 = vadd.f32 %v509_v40, %v503_v39  ;;  %v548_v43 = vmul.f32 %v545_v41, %v466_v38 }
 0x2a6   : > { %514 = vst.msk [vmem:[#allocation3 + $0x8] sm:$0xff] %vm399_vm1, %v511_v42  ;;  %v550_v44 = vadd.f32 %v548_v43, %v1670_v61 }
 0x2a8   : > { %552 = vst.msk [vmem:[#allocation4 + $0x8] sm:$0xff] %vm416_vm0, %v550_v44  ;;  %662 = vperm.xlu2 %1332, %v1728_v45  }
 0x2ab   : > { %v716_v47 = vpop.xlane.xlu1 %715 }
 0x2ac   : > { %v718_v48 = vmax.f32 %v1732_v46, %v716_v47 }
 0x2ad   : > { %v926_v34 = vld [vmem:[#allocation3 + $0x8] sm:$0xff] }
 0x2ae   : > { %797 = vst.msk [vmem:[#allocation2 + $0x28] sm:$0xff] %vm399_vm1, %v718_v48  ;;  %vm720_vm9 = vcmp.gt.f32.partialorder %v718_v48, -inf  ;;  %vm928_vm3 = vcmp.gt.f32.partialorder %v926_v34, 0.0 }
 0x2af   : > { %v1736_v49 = vsel %vm720_vm9, %v718_v48, 0.0  ;;  %vm930_vm4 = vmand %vm928_vm3, %vm924_vm15 }
 0x2b0   : > { %v724_v50 = vsub.f32 %v1732_v46, %v1736_v49  ;;  %736 = vperm.xlu1 %1331, %v1736_v49   ;;  %v932_v39 = vsel %vm930_vm4, %v926_v34, 1.0 }
 0x2b8   : > { %758 = vrot.lane.b32.xlu1 %v1646_v33, %s1465_s25 }
 0x2dc   : > { %v506_v54 = vpop.xlane.xlu2 %505 }
 0x2dd   : > { %v510_v55 = vadd.f32 %v506_v54, %v502_v53 }
 0x2df   : > { %513 = vst.msk [vmem:[#allocation3] sm:$0xff] %vm399_vm1, %v510_v55 }
 0x2e4   : > { %v713_v58 = vpop.xlane.xlu2 %712 }
 0x2e5   : > { %v717_v59 = vmax.f32 %v703_v56, %v713_v58 }
 0x2e6   : > { %v925_v30 = vld [vmem:[#allocation3] sm:$0xff] }
 0x2e7   : > { %796 = vst.msk [vmem:[#allocation2 + $0x20] sm:$0xff] %vm399_vm1, %v717_v59  ;;  %vm719_vm10 = vcmp.gt.f32.partialorder %v717_v59, -inf  ;;  %vm927_vm13 = vcmp.gt.f32.partialorder %v925_v30, 0.0 }
 0x2e8   : > { %v721_v61 = vsel %vm719_vm10, %v717_v59, 0.0  ;;  %vm1772_vm14 = vmand %vm927_vm13, %vm923_vm12 }
 0x2e9   : > { %731 = vperm.xlu0 %1333, %v721_v61   ;;  %v723_v63 = vsub.f32 %v703_v56, %v721_v61  ;;  %v931_v36 = vsel %vm1772_vm14, %v925_v30, 1.0 }
 0x2eb   : > { %v725_v22 = vmul.f32 1.442695, %v723_v63 }
 0x2ec   : > { %v639_v33 = vpop.permute.xlu2 %638 }
 0x2ed   : > { %v644_v2 = vsel %vm519_vm5, %v639_v33, 0 }
 0x2ee   : > { %653 = vmatpush.bf16.msra.mxu3 %v644_v2 }
 0x2f1   : > { %856 = vperm.xlu0 %1333, %v842_v1  }
 0x2f4   : > { %v852_v5 = vpop.permute.xlu2 %851 }
 0x2f5   : > { %v859_v7 = vsub.f32 %v1664_v57, %v852_v5 }
 0x2f7   : > { %v861_v11 = vmul.f32 1.442695, %v859_v7 }
 0x2f8   : > { %v611_v60 = vpop.permute.xlu1 %610 }
 0x2f9   : > { %v618_v3 = vsub.f32 %v1659_v52, %v611_v60 }
 0x2fb   : > { %v620_v4 = vmul.f32 1.442695, %v618_v3  ;;  %v727_v3 = vmul.f32 1.442695, %v724_v50 }
 0x2fc   : > { %v879_v44 = vpop.permute.xlu2 %878 }
 0x2fd   : > { %1345 = vpow2.f32 %v620_v4  ;;  %v884_v47 = vsel %vm519_vm5, %v879_v44, 0 }
 0x2fe   : > { %893 = vmatpush.bf16.msrb.mxu2 %v884_v47 }
 0x303   : > { %v1346_v14 = vpop.eup %1345 }
 0x304   : > { %v626_v15 = vsel %vm467_vm2, %v1346_v14, 0.0 }
 0x312   : > { %v616_v8 = vpop.permute.xlu0 %615 }
 0x313   : > { %v619_v9 = vsub.f32 %v1674_v62, %v616_v8  ;;  %v585_v8 = vld [vmem:[#allocation3 + $0x10] sm:$0xff] }
 0x314   : > { %v624_v28 = vmul.f32 %v1728_v45, %v585_v8 }
 0x315   : > { %v622_v13 = vmul.f32 1.442695, %v619_v9  ;;  %v826_v9 = vld [vmem:[#allocation3 + $0x30] sm:$0xff] }
 0x317   : > { %1347 = vpow2.f32 %v622_v13 }
 0x318   : > { %1349 = vpow2.f32 %v861_v11 }
 0x31b   : > { %627 = vadd.xlane.f32.xlu0 %v626_v15 }
 0x31d   : > { %v1348_v16 = vpop.eup %1347 }
 0x31e   : > { %v629_v17 = vsel %vm467_vm2, %v1348_v16, 0.0  ;;  %v636_v52 = vpack.c.bf16 %v1348_v16, %v1346_v14  ;;  %v1752_v19 = vpop.eup %1349  ;;  %v707_v16 = vld [vmem:[#allocation3 + $0x28] sm:$0xff] }
 0x31f   : > { %630 = vadd.xlane.f32.xlu1 %v629_v17  ;;  %v867_v62 = vsel %vm467_vm2, %v1752_v19, 0.0 }
 0x320   : > { %1253 = vmatmul.msk.bf16.vlgmr.msra.gmra.mxu3 %vm467_vm2, %v636_v52  ;;  %v588_v52 = vld [vmem:[#allocation4 + $0x10] sm:$0xff] }
 0x322   : > { %v737_v57 = vpop.permute.xlu1 %736 }
 0x323   : > { %v740_v10 = vsub.f32 %v1685_v6, %v737_v57  ;;  %868 = vadd.xlane.f32.xlu0 %v867_v62 }
 0x325   : > { %v743_v20 = vmul.f32 1.442695, %v740_v10 }
 0x327   : > { %1351 = vpow2.f32 %v743_v20 }
 0x328   : > { %1353 = vpow2.f32 %v725_v22 }
 0x329   : > { %1355 = vpow2.f32 %v847_v31 }
 0x32a   : > { %1357 = vrcp.f32 %v931_v36  ;;  %v759_v41 = vpop.permute.xlu1 %758 }
 0x32b   : > { %1359 = vrcp.f32 %v932_v39  ;;  %v764_v42 = vsel %vm519_vm5, %v759_v41, 0 }
 0x32c   : > { %773 = vmatpush.bf16.msrb.mxu3 %v764_v42 }
 0x32d   : > { %v1352_v21 = vpop.eup %1351 }
 0x32e   : > { %v750_v23 = vsel %vm467_vm2, %v1352_v21, 0.0  ;;  %v1767_v6 = vpop.eup %1353 }
 0x32f   : > { %751 = vadd.xlane.f32.xlu0 %v750_v23  ;;  %v1781_v38 = vpop.eup %1355 }
 0x330   : > { %v1358_v40 = vpop.eup %1357 }
 0x331   : > { %v935_v43 = vsel %vm1772_vm14, %v1358_v40, 0.0  ;;  %v1360_v48 = vpop.eup %1359 }
 0x332   : > { %v936_v51 = vsel %vm930_vm4, %v1360_v48, 0.0 }
 0x338   : > { %782 = vperm.xlu1 %1331, %v1767_v6  }
 0x340   : > { %907 = vperm.xlu1 %1331, %v1781_v38  }
 0x348   : > { %941 = vperm.xlu1 %1331, %v935_v43  }
 0x350   : > { %946 = vperm.xlu1 %1331, %v936_v51  }
 0x35b   : > { %v732_v53 = vpop.permute.xlu0 %731 }
 0x35c   : > { %v739_v54 = vsub.f32 %v1694_v12, %v732_v53  ;;  %v845_v12 = vmul.f32 1.442695, %v843_v25  ;;  %v937_v53 = vld [vmem:[#allocation4] sm:$0xff] }
 0x35e   : > { %v741_v55 = vmul.f32 1.442695, %v739_v54 }
 0x360   : > { %1361 = vpow2.f32 %v741_v55 }
 0x363   : > { %v857_v56 = vpop.permute.xlu0 %856 }
 0x364   : > { %v860_v58 = vsub.f32 %v1677_v0, %v857_v56  ;;  %v606_v0 = vmul.f32 1.442695, %v603_v37  ;;  %v586_v37 = vld [vmem:[#allocation3 + $0x18] sm:$0xff]  ;;  %v938_v56 = vld [vmem:[#allocation4 + $0x8] sm:$0xff] }
 0x366   : > { %v1362_v59 = vpop.eup %1361  ;;  %v863_v61 = vmul.f32 1.442695, %v860_v58 }
 0x367   : > { %v747_v63 = vsel %vm467_vm2, %v1362_v59, 0.0  ;;  %v757_v1 = vpack.c.bf16 %v1352_v21, %v1362_v59 }
 0x368   : > { %1363 = vpow2.f32 %v863_v61  ;;  %748 = vadd.xlane.f32.xlu2 %v747_v63  ;;  %v706_v61 = vld [vmem:[#allocation3 + $0x20] sm:$0xff] }
 0x369   : > { %1255 = vmatmul.msk.bf16.vlgmr.msrb.gmra.mxu3 %vm467_vm2, %v757_v1  ;;  %1365 = vpow2.f32 %v606_v0  ;;  %v745_v63 = vmul.f32 %v1767_v6, %v706_v61 }
 0x36a   : > { %1367 = vpow2.f32 %v845_v12 }
 0x36b   : > { %1369 = vpow2.f32 %v727_v3 }
 0x36e   : > { %v1364_v33 = vpop.eup %1363 }
 0x36f   : > { %v870_v2 = vsel %vm467_vm2, %v1364_v33, 0.0  ;;  %v877_v60 = vpack.c.bf16 %v1364_v33, %v1752_v19  ;;  %v1366_v4 = vpop.eup %1365  ;;  %v663_v19 = vpop.permute.xlu2 %662 }
 0x370   : > { %871 = vadd.xlane.f32.xlu0 %v870_v2  ;;  %v1368_v5 = vpop.eup %1367  ;;  %v625_v24 = vmul.f32 %v1366_v4, %v586_v37  ;;  %v670_v21 = vmul.f32 %v663_v19, %v588_v52  ;;  %v827_v2 = vld [vmem:[#allocation3 + $0x38] sm:$0xff] }
 0x371   : > { %1257 = vmatmul.msk.bf16.vlgmr.msrb.gmra.mxu2 %vm467_vm2, %v877_v60  ;;  %v1370_v7 = vpop.eup %1369  ;;  %v865_v49 = vmul.f32 %v1368_v5, %v826_v9  ;;  %v589_v60 = vld [vmem:[#allocation4 + $0x18] sm:$0xff]  ;;  %v866_v0 = vmul.f32 %v1781_v38, %v827_v2 }
 0x372   : > { %v746_v10 = vmul.f32 %v1370_v7, %v707_v16  ;;  %v830_v19 = vld [vmem:[#allocation4 + $0x38] sm:$0xff] }
 0x380   : > { %667 = vperm.xlu2 %1332, %v1366_v4  }
 0x384   : > { %902 = vperm.xlu0 %1333, %v1368_v5  }
 0x388   : > { %787 = vperm.xlu2 %1332, %v1370_v7  }
 0x38e   : > { %v628_v35 = vpop.xlane.xlu0 %627 }
 0x38f   : > { %v632_v18 = vadd.f32 %v628_v35, %v624_v28  ;;  %v709_v35 = vld [vmem:[#allocation4 + $0x20] sm:$0xff] }
 0x391   : > { %634 = vst.msk [vmem:[#allocation3 + $0x10] sm:$0xff] %vm399_vm1, %v632_v18 }
 0x392   : > { %v631_v25 = vpop.xlane.xlu1 %630 }
 0x393   : > { %v633_v46 = vadd.f32 %v631_v25, %v625_v24 }
 0x395   : > { %635 = vst.msk [vmem:[#allocation3 + $0x18] sm:$0xff] %vm399_vm1, %v633_v46  ;;  %v710_v46 = vld [vmem:[#allocation4 + $0x28] sm:$0xff] }
 0x396   : > { %v869_v50 = vpop.xlane.xlu0 %868 }
 0x397   : > { %v873_v11 = vadd.f32 %v869_v50, %v865_v49 }
 0x398   : > { %v953_v13 = vld [vmem:[#allocation3 + $0x10] sm:$0xff] }
 0x399   : > { %875 = vst.msk [vmem:[#allocation3 + $0x30] sm:$0xff] %vm399_vm1, %v873_v11  ;;  %vm955_vm2 = vcmp.gt.f32.partialorder %v953_v13, 0.0 }
 0x39a   : > { %vm1812_vm5 = vmand %vm955_vm2, %vm923_vm12 }
 0x39b   : > { %v959_v14 = vsel %vm1812_vm5, %v953_v13, 1.0 }
 0x39c   : > { %1371 = vrcp.f32 %v959_v14  ;;  %v954_v15 = vld [vmem:[#allocation3 + $0x18] sm:$0xff] }
 0x39d   : > { %vm956_vm6 = vcmp.gt.f32.partialorder %v954_v15, 0.0 }
 0x39e   : > { %vm1820_vm7 = vmand %vm956_vm6, %vm924_vm15 }
 0x39f   : > { %v960_v57 = vsel %vm1820_vm7, %v954_v15, 1.0  ;;  %v829_v15 = vld [vmem:[#allocation4 + $0x30] sm:$0xff] }
 0x3a0   : > { %1373 = vrcp.f32 %v960_v57  ;;  %v1027_v62 = vld [vmem:[#allocation3 + $0x30] sm:$0xff] }
 0x3a1   : > { %vm1029_vm8 = vcmp.gt.f32.partialorder %v1027_v62, 0.0 }
 0x3a2   : > { %v1372_v20 = vpop.eup %1371  ;;  %v752_v22 = vpop.xlane.xlu0 %751  ;;  %vm1828_vm9 = vmand %vm1029_vm8, %vm923_vm12 }
 0x3a3   : > { %v754_v26 = vadd.f32 %v752_v22, %v746_v10  ;;  %v655_v30 = vpop.f32.mrf.mxu3  ;;  %v963_v31 = vsel %vm1812_vm5, %v1372_v20, 0.0  ;;  %v1033_v32 = vsel %vm1828_vm9, %v1027_v62, 1.0 }
 0x3a4   : > { %v672_v34 = vadd.f32 %v670_v21, %v655_v30  ;;  %969 = vperm.xlu0 %1333, %v963_v31   ;;  %1375 = vrcp.f32 %v1033_v32 }
 0x3a5   : > { %756 = vst.msk [vmem:[#allocation3 + $0x28] sm:$0xff] %vm399_vm1, %v754_v26 }
 0x3a6   : > { %v1374_v36 = vpop.eup %1373  ;;  %674 = vst.msk [vmem:[#allocation4 + $0x10] sm:$0xff] %vm416_vm0, %v672_v34 }
 0x3a7   : > { %v964_v39 = vsel %vm1820_vm7, %v1374_v36, 0.0 }
 0x3a8   : > { %974 = vperm.xlu2 %1332, %v964_v39  }
 0x3aa   : > { %v783_v40 = vpop.permute.xlu1 %782  ;;  %v1376_v41 = vpop.eup %1375 }
 0x3ab   : > { %v1037_v43 = vsel %vm1828_vm9, %v1376_v41, 0.0  ;;  %v657_v4 = vpop.f32.mrf.mxu3  ;;  %v790_v37 = vmul.f32 %v783_v40, %v709_v35 }
 0x3ac   : > { %v991_v42 = vld [vmem:[#allocation3 + $0x28] sm:$0xff] }
 0x3ad   : > { %vm993_vm10 = vcmp.gt.f32.partialorder %v991_v42, 0.0  ;;  %v965_v34 = vld [vmem:[#allocation4 + $0x10] sm:$0xff] }
 0x3ae   : > { %vm995_vm11 = vmand %vm993_vm10, %vm924_vm15 }
 0x3af   : > { %v997_v44 = vsel %vm995_vm11, %v991_v42, 1.0 }
 0x3b0   : > { %1043 = vperm.xlu2 %1332, %v1037_v43   ;;  %1377 = vrcp.f32 %v997_v44 }
 0x3b2   : > { %v1844_v47 = vpop.permute.xlu1 %907 }
 0x3b3   : > { %v911_v10 = vmul.f32 %v1844_v47, %v830_v19 }
 0x3b6   : > { %v1378_v48 = vpop.eup %1377 }
 0x3b7   : > { %v1001_v51 = vsel %vm995_vm11, %v1378_v48, 0.0 }
 0x3b8   : > { %1011 = vperm.xlu0 %1333, %v1001_v51  }
 0x3ba   : > { %v942_v54 = vpop.permute.xlu1 %941 }
 0x3bb   : > { %v949_v55 = vmul.f32 %v942_v54, %v937_v53 }
 0x3bd   : > { %951 = vst.msk [vmem:[%s1849_s14] sm:$0xff] %vm416_vm0, %v949_v55 }
 0x3c2   : > { %v947_v58 = vpop.permute.xlu1 %946 }
 0x3c3   : > { %v950_v59 = vmul.f32 %v947_v58, %v938_v56 }
 0x3c5   : > { %952 = vst.msk [vmem:[%s1849_s14 + $0x8] sm:$0xff] %vm416_vm0, %v950_v59 }
 0x3db   : > { %v749_v1 = vpop.xlane.xlu2 %748 }
 0x3dc   : > { %v753_v33 = vadd.f32 %v749_v1, %v745_v63 }
 0x3de   : > { %755 = vst.msk [vmem:[#allocation3 + $0x20] sm:$0xff] %vm399_vm1, %v753_v33 }
 0x3e3   : > { %v668_v12 = vpop.permute.xlu2 %667  ;;  %v872_v3 = vpop.xlane.xlu0 %871 }
 0x3e4   : > { %v671_v5 = vmul.f32 %v668_v12, %v589_v60  ;;  %v874_v7 = vadd.f32 %v872_v3, %v866_v0 }
 0x3e5   : > { %v990_v8 = vld [vmem:[#allocation3 + $0x20] sm:$0xff] }
 0x3e6   : > { %v673_v28 = vadd.f32 %v671_v5, %v657_v4  ;;  %876 = vst.msk [vmem:[#allocation3 + $0x38] sm:$0xff] %vm399_vm1, %v874_v7  ;;  %vm992_vm13 = vcmp.gt.f32.partialorder %v990_v8, 0.0 }
 0x3e7   : > { %vm1861_vm14 = vmand %vm992_vm13, %vm923_vm12  ;;  %vm1024_vm12 = vcmask 785920  }
 0x3e8   : > { %675 = vst.msk [vmem:[#allocation4 + $0x18] sm:$0xff] %vm416_vm0, %v673_v28  ;;  %v996_v38 = vsel %vm1861_vm14, %v990_v8, 1.0 }
 0x3e9   : > { %1379 = vrcp.f32 %v996_v38 }
 0x3eb   : > { %v788_v49 = vpop.permute.xlu2 %787 }
 0x3ec   : > { %v775_v18 = vpop.f32.mrf.mxu3  ;;  %v791_v13 = vmul.f32 %v788_v49, %v710_v46 }
 0x3ed   : > { %v792_v24 = vadd.f32 %v790_v37, %v775_v18  ;;  %v1028_v25 = vld [vmem:[#allocation3 + $0x38] sm:$0xff] }
 0x3ee   : > { %vm1030_vm3 = vcmp.gt.f32.partialorder %v1028_v25, 0.0 }
 0x3ef   : > { %v1380_v9 = vpop.eup %1379  ;;  %794 = vst.msk [vmem:[#allocation4 + $0x20] sm:$0xff] %vm416_vm0, %v792_v24  ;;  %vm1871_vm1 = vmand %vm1030_vm3, %vm924_vm15  ;;  %v966_v22 = vld [vmem:[#allocation4 + $0x18] sm:$0xff]  ;;  %vm1061_vm15 = vcmask 1048320  }
 0x3f0   : > { %v1000_v50 = vsel %vm1861_vm14, %v1380_v9, 0.0  ;;  %v1034_v11 = vsel %vm1871_vm1, %v1028_v25, 1.0 }
 0x3f1   : > { %1006 = vperm.xlu1 %1331, %v1000_v50   ;;  %1381 = vrcp.f32 %v1034_v11 }
 0x3f4   : > { %v777_v45 = vpop.f32.mrf.mxu3  ;;  %v895_v14 = vpop.f32.mrf.mxu2 }
 0x3f5   : > { %v793_v16 = vadd.f32 %v791_v13, %v777_v45 }
 0x3f6   : > { %v903_v27 = vpop.permute.xlu0 %902  ;;  %v1002_v44 = vld [vmem:[#allocation4 + $0x20] sm:$0xff] }
 0x3f7   : > { %v1382_v17 = vpop.eup %1381  ;;  %795 = vst.msk [vmem:[#allocation4 + $0x28] sm:$0xff] %vm416_vm0, %v793_v16  ;;  %v910_v52 = vmul.f32 %v903_v27, %v829_v15 }
 0x3f8   : > { %v1038_v57 = vsel %vm1871_vm1, %v1382_v17, 0.0 }
 0x3f9   : > { %v912_v62 = vadd.f32 %v910_v52, %v895_v14  ;;  %1048 = vperm.xlu1 %1331, %v1038_v57  }
 0x3fb   : > { %914 = vst.msk [vmem:[#allocation4 + $0x30] sm:$0xff] %vm416_vm0, %v912_v62 }
 0x3fc   : > { %v897_v20 = vpop.f32.mrf.mxu2 }
 0x3fd   : > { %v913_v21 = vadd.f32 %v911_v10, %v897_v20 }
 0x3fe   : > { %v1003_v40 = vld [vmem:[#allocation4 + $0x28] sm:$0xff] }
 0x3ff   : > { %915 = vst.msk [vmem:[#allocation4 + $0x38] sm:$0xff] %vm416_vm0, %v913_v21  ;;  %vm987_vm0 = vcmask 523520  }
 0x402   : > { %v975_v23 = vpop.permute.xlu2 %974  ;;  %v1039_v31 = vld [vmem:[#allocation4 + $0x30] sm:$0xff] }
 0x403   : > { %v978_v26 = vmul.f32 %v975_v23, %v966_v22 }
 0x405   : > { %983 = vrot.lane.b32.xlu2 %v978_v26, %s1468_s27 }
 0x406   : > { %v1040_v51 = vld [vmem:[#allocation4 + $0x38] sm:$0xff] }
 0x40a   : > { %v1044_v30 = vpop.permute.xlu2 %1043 }
 0x40b   : > { %v1051_v32 = vmul.f32 %v1044_v30, %v1039_v31 }
 0x40d   : > { %1055 = vrot.lane.b32.xlu2 %v1051_v32, %s1463_s24 }
 0x416   : > { %v970_v36 = vpop.permute.xlu0 %969 }
 0x417   : > { %v977_v39 = vmul.f32 %v970_v36, %v965_v34 }
 0x419   : > { %981 = vrot.lane.b32.xlu0 %v977_v39, %s1468_s27  ;;  %s1079_s27 = sshll.u32 %s1849_s14, 4  ;;  %s1080_s27 = int_to_ptr.vmem [resolvable:$true] %s1079_s27 }
 0x42a   : > { %v1012_v41 = vpop.permute.xlu0 %1011 }
 0x42b   : > { %v1015_v42 = vmul.f32 %v1012_v41, %v1003_v40 }
 0x42d   : > { %1020 = vrot.lane.b32.xlu0 %v1015_v42, %s1465_s25 }
 0x45f   : > { %v984_v43 = vpop.permute.xlu2 %983 }
 0x460   : > { %989 = vst.msk [vmem:[%s1849_s14 + $0x8] sm:$0xff] %vm987_vm0, %v984_v43 }
 0x463   : > { %v1007_v47 = vpop.permute.xlu1 %1006 }
 0x464   : > { %v1014_v48 = vmul.f32 %v1007_v47, %v1002_v44 }
 0x466   : > { %1018 = vrot.lane.b32.xlu1 %v1014_v48, %s1465_s25  ;;  %s1078_s25 = scalar_lea.hbm %s1941_s5, %s1267_s15 }
 0x467   : > { %v1056_v59 = vpop.permute.xlu2 %1055 }
 0x46b   : > { %v1049_v53 = vpop.permute.xlu1 %1048 }
 0x46c   : > { %v1052_v54 = vmul.f32 %v1049_v53, %v1040_v51 }
 0x46e   : > { %1057 = vrot.lane.b32.xlu1 %v1052_v54, %s1463_s24  ;;  %s1081_s24 = sshll.u32 %s1078_s25, 4  ;;  %s1082_s24 = int_to_ptr.hbm [resolvable:$true] %s1081_s24 }
 0x46f   : > { %s1397_s7 = sshra.s32 %s1082_s24, 4  ;;  %s1398_s7 = int_to_ptr.hbm [resolvable:$true] %s1397_s7 }
 0x470   : > { %s1399_s21 = scalar_lea.hbm %s1398_s7, 16  ;;  %p1404_p1 = scmp.lt.s32.totalorder %s1398_s7, %s1941_s5 }
 0x471   : > { %p1400_p12 = scmp.ne.s32.totalorder %s1398_s7, %s1399_s21  ;;  %p1405_p2 = scmp.lt.s32.totalorder %s1403_s11, %s1399_s21 }
 0x473   : > { %p1401_p13 = pnand %p1400_p12, %p1541_p4  ;;  %p1406_p3 = por %p1405_p2, %p1404_p1 }
 0x475   : > { %p1402_p0 = pneg %p1401_p13 }
 0x477   : > { %p1407_p5 = pnand %p1406_p3, %p1402_p0 }
 0x48b   : > { %v982_v55 = vpop.permute.xlu0 %981 }
 0x48c   : > { %988 = vst.msk [vmem:[%s1849_s14] sm:$0xff] %vm987_vm0, %v982_v55 }
 0x49f   : > { %v1021_v56 = vpop.permute.xlu0 %1020 }
 0x4a0   : > { %1026 = vst.msk [vmem:[%s1849_s14 + $0x8] sm:$0xff] %vm1024_vm12, %v1021_v56 }
 0x4d8   : > { %v1019_v58 = vpop.permute.xlu1 %1018 }
 0x4d9   : > { %1025 = vst.msk [vmem:[%s1849_s14] sm:$0xff] %vm1024_vm12, %v1019_v58 }
 0x4da   : > { %1062 = vst.msk [vmem:[%s1849_s14] sm:$0xff] %vm1061_vm15, %v1056_v59 }
 0x4e0   : > { %v1058_v61 = vpop.permute.xlu1 %1057 }
 0x4e1   : > { %1063 = vst.msk [vmem:[%s1849_s14 + $0x8] sm:$0xff] %vm1061_vm15, %v1058_v61 }
 0x4e2   : > { %1410 = shalt.err (!%p1407_p5)
}
 0x4e3   : > { %s1469_s8 = smov 128   ;;  %s1470_s14 = smov 8  }
 0x4e4   : > { %1268 = dma.vmem_to_hbm [thread:$0]  (%p1541_p4), %s1080_s27, 256, %s1082_s24, %s1065_s29, %s1469_s8, %s1469_s8, %s1470_s14  }
 0x4e5 PF: > { %p1274_p6 = scmp.ge.s32.totalorder %s1461_s23, 2  ;;  %s1096_s15 = sand.u32 1, %s1441_s18  }
 0x4e6   : > { %s1097_s16 = scalar_lea.sflag [#allocation6], %s1096_s15 }
 0x4e7   : > { %p1271_p7 = pnand %p1274_p6, %p1548_p8 }
 0x4e9   : > { %p1272_p9 = pneg %p1271_p7 }
 0x4eb   : > { %1436 = dma.done.wait (%p1272_p9), %s1097_s16, 256  }
 0x4ec   : > { %1438 = vsyncadd (%p1272_p9), %s1097_s16, 4294967040  ;;  %s18_s23 = sadd.s32 1, %s1461_s23   ;;  %s1956_s18 = smov %s1445_s19 }
 0x4ed   : > { %p15_p10 = scmp.ge.s32.totalorder %s18_s23, 4   ;;  %s1957_s19 = smov %s1449_s20 }
 0x4ee   : > { %s1958_s20 = smov %s1554_s6  ;;  %s1959_s21 = smov %s1457_s22 }
 0x4ef   : > { %s1960_s22 = smov %s1962_s26  ;;  %17 = sbr.rel (!%p15_p10) target bundleno = 4 (0x4), region = 104 }
 0x4f4   :  { %1103 = vsyncpa [#allocation6], 1 }
 0x4f5   :  { %1105 = vsyncpa [#allocation6 + $0x1], 1 }

// kernel: tpu_custom_call.1
= control target key start
LH: loop header
LB: loop body
LE: loop exit
PB: predicated region body
PF: predicated region fallthrough
CT: control target
= control target key end

     0   :  { %10 = vsyncpa [#allocation6], 0  ;;  %s1930_s0 = inlined_call_operand.vmem [shape: f32[2,16,128], index: 0, kind: input, shape index: {}]   ;;  %s1931_s1 = inlined_call_operand.vmem [shape: f32[2,12,128], index: 1, kind: input, shape index: {}]   ;;  %s1932_s2 = inlined_call_operand.vmem [shape: f32[2,12,128], index: 2, kind: input, shape index: {}]   ;;  %s1933_s3 = inlined_call_operand.vmem [shape: f32[2,16,1], index: 3, kind: input, shape index: {}]   ;;  %s1934_s4 = inlined_call_operand.vmem [shape: f32[2,1,12], index: 4, kind: input, shape index: {}]   ;;  %s1935_s5 = inlined_call_operand.hbm [shape: f32[2,16,128], index: 5, kind: output, shape index: {}]  }
   0x1   :  { %12 = vsyncpa [#allocation6 + $0x1], 0  ;;  %s1495_s18 = smov 0   ;;  %s1497_s19 = smov 0  }
   0x2   :  { %s1499_s20 = smov 0   ;;  %s1501_s21 = smov 0  }
   0x3   :  { %s1503_s22 = smov 0   ;;  %s1505_s23 = smov 0  }
   0x4 LB: > { %s1230_s24 = sadd.s32 4294967295, %s1455_s23   ;;  %s1231_s25 = sadd.s32 4294967294, %s1455_s23   ;;  %s1455_s23 = sphi %s1505_s23, %s18_s23   ;;  %s1451_s22 = sphi %s1503_s22, %s1954_s22   ;;  %s1447_s21 = sphi %s1501_s21, %s1953_s21   ;;  %s1443_s20 = sphi %s1499_s20, %s1952_s20   ;;  %s1439_s19 = sphi %s1497_s19, %s1951_s19   ;;  %s1435_s18 = sphi %s1495_s18, %s1950_s18  }
   0x5   : > { %s37_s26 = sadd.s32 1, %s1451_s22  ;;  %s186_s27 = sadd.s32 1, %s1443_s20 }
   0x6   : > { %p39_p0 = scmp.ge.s32.totalorder %s37_s26, 2  ;;  %p196_p1 = scmp.ne.s32.totalorder %s1443_s20, %s1439_s19 }
   0x7   : > { %p197_p2 = scmp.eq.s32.totalorder %s1230_s24, 1  ;;  %p202_p3 = scmp.ne.s32.totalorder %s1439_s19, %s1435_s18 }
   0x8   : > { %s1956_s26 = smov (%p39_p0, %s37_s26), 0  ;;  %p203_p5 = scmp.eq.s32.totalorder %s1231_s25, 1 }
   0x9   : > { %p1535_p4 = por %p197_p2, %p196_p1  ;;  %s181_s29 = ssub.s32 %s1451_s22, %s1956_s26 }
   0xa   : > { %p1234_p6 = scmp.ge.s32.totalorder %s1455_s23, 1  ;;  %p184_p7 = scmp.eq.s32.totalorder %s181_s29, 0 }
   0xb   : > { %p1542_p8 = por %p203_p5, %p202_p3  ;;  %p282_p9 = scmp.lt.s32.totalorder %s1455_s23, 3 }
   0xc   : > { %s1548_s6 = scalar_select %p184_p7, %s1443_s20, %s186_s27  }
   0xd   : > { %p283_p10 = pnand %p1234_p6, %p282_p9 }
   0xe   : > { %p348_p11 = scmp.lt.s32.totalorder (!%p283_p10), %s1447_s21, 1  ;;  %s1457_s24 = smov (!%p283_p10), 96  }
   0xf   : > { %286 = sbr.rel (%p283_p10) target bundleno = 1253 (0x4e5), region = 40  ;;  %s1459_s25 = smov (!%p283_p10), 64  }
  0x10   : > { %s1462_s27 = smov (!%p283_p10), 32   ;;  %s1261_s15 = sshll.u32 (!%p283_p10), %s1447_s21, 4 }
  0x14   : > { %s1552_s7 = scalar_select %p348_p11, %s1447_s21, 1  ;;  %vm416_vm0 = vcmask 261120   ;;  %vm399_vm1 = vcmask 7168   ;;  %v1458_v9 = vmov -inf   ;;  %vm467_vm2 = vcmask 97280  }
  0x15   : > { %400 = vst.msk [vmem:[#allocation2] sm:$0xff] %vm399_vm1, %v1458_v9  ;;  %v1460_v17 = vmov 0   ;;  %v1461_v18 = vmov 0.0   ;;  %vm519_vm5 = vcmask 1045504  }
  0x16   : > { %s1555_s8 = sshll.u32 %s1552_s7, 4  ;;  %s392_s11 = scalar_lea.vmem %s1934_s4, %s1552_s7  ;;  %401 = vst.msk [vmem:[#allocation2 + $0x8] sm:$0xff] %vm399_vm1, %v1458_v9  ;;  %1325 = vset.pattern.permute.xlu1 %v1460_v17  ;;  %1326 = vset.pattern.permute.xlu2 %v1460_v17 }
  0x17   : > { %s365_s14 = scalar_lea.vmem %s1931_s1, %s1555_s8  ;;  %s355_s17 = scalar_lea.vmem %s1930_s0, %s1555_s8  ;;  %402 = vst.msk [vmem:[#allocation2 + $0x10] sm:$0xff] %vm399_vm1, %v1458_v9  ;;  %v1587_v10 = vld [vmem:[%s392_s11] ss:$0 sm:$0xff]  ;;  %1327 = vset.pattern.permute.xlu0 %v1460_v17 }
  0x18   : > { %v429_v0 = vld [vmem:[%s365_s14] sm:$0xff]  ;;  %v430_v1 = vld [vmem:[%s365_s14 + $0x8] sm:$0xf]  ;;  %403 = vst.msk [vmem:[#allocation2 + $0x18] sm:$0xff] %vm399_vm1, %v1458_v9  ;;  %s375_s9 = scalar_lea.vmem %s1932_s2, %s1555_s8  ;;  %s385_s12 = scalar_lea.vmem %s1933_s3, %s1555_s8 }
  0x19   : > { %v425_v2 = vld [vmem:[%s355_s17] sm:$0xff]  ;;  %v1569_v3 = vpack.c.bf16 %v430_v1, %v429_v0  ;;  %v426_v4 = vld [vmem:[%s355_s17 + $0x8] sm:$0xff]  ;;  %404 = vst.msk [vmem:[#allocation2 + $0x20] sm:$0xff] %vm399_vm1, %v1458_v9  ;;  %s344_s8 = sand.u32 1, %s1439_s19   ;;  %s1397_s11 = scalar_lea.hbm %s1935_s5, 32 }
  0x1a   : > { %v427_v6 = vmul.f32 0.17677669, %v425_v2  ;;  %v428_v7 = vmul.f32 0.17677669, %v426_v4  ;;  %405 = vst.msk [vmem:[#allocation2 + $0x28] sm:$0xff] %vm399_vm1, %v1458_v9  ;;  %v431_v31 = vld [vmem:[%s375_s9] sm:$0xff] }
  0x1b   : > { %v445_v5 = vsel %vm416_vm0, %v1569_v3, 0  ;;  %559 = vrot.lane.b32.xlu1 %v1569_v3, %s1457_s24  ;;  %406 = vst.msk [vmem:[#allocation2 + $0x30] sm:$0xff] %vm399_vm1, %v1458_v9  ;;  %v432_v32 = vld [vmem:[%s375_s9 + $0x8] sm:$0xf]  ;;  %s1235_s13 = sshll.u32 %s344_s8, 4  ;;  %s1065_s29 = scalar_lea.sflag [#allocation6], %s344_s8 }
  0x1c   : > { %454 = vmatpush.bf16.xpose.msra.mxu0 %v445_v5  ;;  %v1573_v8 = vpack.c.bf16 %v428_v7, %v427_v6  ;;  %407 = vst.msk [vmem:[#allocation2 + $0x38] sm:$0xff] %vm399_vm1, %v1458_v9  ;;  %v461_v19 = vld [vmem:[#allocation2] sm:$0xff]  ;;  %v1640_v33 = vpack.c.bf16 %v432_v32, %v431_v31  ;;  %s1843_s14 = scalar_lea.vmem [#allocation5], %s1235_s13 }
  0x1d   : > { %417 = vst.msk [vmem:[#allocation4] sm:$0xff] %vm416_vm0, %v1461_v18  ;;  %v1618_v24 = vld [vmem:[#allocation2 + $0x8] sm:$0xff] }
  0x1e   : > { %408 = vst.msk [vmem:[#allocation3] sm:$0xff] %vm399_vm1, %v1461_v18  ;;  %v521_v34 = vsel %vm519_vm5, %v1640_v33, 0 }
  0x1f   : > { %409 = vst.msk [vmem:[#allocation3 + $0x8] sm:$0xff] %vm399_vm1, %v1461_v18  ;;  %530 = vmatpush.bf16.msra.mxu1 %v521_v34 }
  0x20   : > { %410 = vst.msk [vmem:[#allocation3 + $0x10] sm:$0xff] %vm399_vm1, %v1461_v18 }
  0x21   : > { %411 = vst.msk [vmem:[#allocation3 + $0x18] sm:$0xff] %vm399_vm1, %v1461_v18 }
  0x22   : > { %412 = vst.msk [vmem:[#allocation3 + $0x20] sm:$0xff] %vm399_vm1, %v1461_v18 }
  0x23   : > { %1244 = vmatmul.msk.bf16.vlgmr.msra.gmra.mxu0 %vm416_vm0, %v1573_v8  ;;  %413 = vst.msk [vmem:[#allocation3 + $0x28] sm:$0xff] %vm399_vm1, %v1461_v18 }
  0x24   : > { %414 = vst.msk [vmem:[#allocation3 + $0x30] sm:$0xff] %vm399_vm1, %v1461_v18 }
  0x25   : > { %415 = vst.msk [vmem:[#allocation3 + $0x38] sm:$0xff] %vm399_vm1, %v1461_v18 }
  0x26   : > { %418 = vst.msk [vmem:[#allocation4 + $0x8] sm:$0xff] %vm416_vm0, %v1461_v18 }
  0x27   : > { %419 = vst.msk [vmem:[#allocation4 + $0x10] sm:$0xff] %vm416_vm0, %v1461_v18 }
  0x28   : > { %420 = vst.msk [vmem:[#allocation4 + $0x18] sm:$0xff] %vm416_vm0, %v1461_v18 }
  0x29   : > { %421 = vst.msk [vmem:[#allocation4 + $0x20] sm:$0xff] %vm416_vm0, %v1461_v18 }
  0x2a   : > { %422 = vst.msk [vmem:[#allocation4 + $0x28] sm:$0xff] %vm416_vm0, %v1461_v18 }
  0x2b   : > { %423 = vst.msk [vmem:[#allocation4 + $0x30] sm:$0xff] %vm416_vm0, %v1461_v18 }
  0x2c   : > { %424 = vst.msk [vmem:[#allocation4 + $0x38] sm:$0xff] %vm416_vm0, %v1461_v18  ;;  %v1695_v18 = vld [vmem:[#allocation2 + $0x30] sm:$0xff] }
  0x8d   : > { %v560_v29 = vpop.permute.xlu1 %559 }
  0x8e   : > { %v565_v30 = vsel %vm416_vm0, %v560_v29, 0 }
  0x8f   : > { %574 = vmatpush.bf16.xpose.msra.mxu2 %v565_v30 }
  0xa0   : > { %v456_v11 = vpop.f32.mrf.mxu0 }
  0xa1   : > { %v1590_v12 = vadd.f32 %v1587_v10, %v456_v11 }
  0xa3   : > { %v468_v13 = vsel %vm467_vm2, %v1590_v12, -inf }
  0xa4   : > { %469 = vmax.xlane.f32.xlu0 %v468_v13 }
  0xa8   : > { %v458_v14 = vpop.f32.mrf.mxu0 }
  0xa9   : > { %v1595_v15 = vadd.f32 %v1587_v10, %v458_v14  ;;  %v582_v14 = vld [vmem:[#allocation2 + $0x10] sm:$0xff] }
  0xab   : > { %v471_v16 = vsel %vm467_vm2, %v1595_v15, -inf }
  0xac   : > { %472 = vmax.xlane.f32.xlu0 %v471_v16 }
  0xc0   : > { %680 = vrot.lane.b32.xlu0 %v1569_v3, %s1459_s25 }
 0x117   : > { %v470_v20 = vpop.xlane.xlu0 %469 }
 0x118   : > { %v474_v21 = vmax.f32 %v461_v19, %v470_v20 }
 0x11a   : > { %553 = vst.msk [vmem:[#allocation2] sm:$0xff] %vm399_vm1, %v474_v21  ;;  %vm476_vm3 = vcmp.gt.f32.partialorder %v474_v21, -inf }
 0x11b   : > { %v478_v22 = vsel %vm476_vm3, %v474_v21, 0.0 }
 0x11c   : > { %488 = vperm.xlu1 %1325, %v478_v22   ;;  %v480_v23 = vsub.f32 %v461_v19, %v478_v22  ;;  %v465_v19 = vld [vmem:[#allocation4] sm:$0xff] }
 0x11e   : > { %v482_v54 = vmul.f32 1.442695, %v480_v23 }
 0x11f   : > { %v473_v25 = vpop.xlane.xlu0 %472 }
 0x120   : > { %v475_v26 = vmax.f32 %v1618_v24, %v473_v25 }
 0x122   : > { %554 = vst.msk [vmem:[#allocation2 + $0x8] sm:$0xff] %vm399_vm1, %v475_v26  ;;  %vm477_vm4 = vcmp.gt.f32.partialorder %v475_v26, -inf }
 0x123   : > { %v1622_v27 = vsel %vm477_vm4, %v475_v26, 0.0 }
 0x124   : > { %800 = vrot.lane.b32.xlu1 %v1569_v3, %s1462_s27  ;;  %493 = vperm.xlu2 %1326, %v1622_v27   ;;  %v481_v28 = vsub.f32 %v1618_v24, %v1622_v27  ;;  %v1705_v27 = vld [vmem:[#allocation2 + $0x38] sm:$0xff] }
 0x126   : > { %v484_v7 = vmul.f32 1.442695, %v481_v28  ;;  %v1707_v28 = vld [vmem:[#allocation2 + $0x18] sm:$0xff] }
 0x12c   : > { %798 = vrot.lane.b32.xlu1 %v1573_v8, %s1462_s27  ;;  %556 = vrot.lane.b32.xlu2 %v1573_v8, %s1457_s24 }
 0x132   : > { %v681_v36 = vpop.permute.xlu0 %680 }
 0x133   : > { %v686_v37 = vsel %vm416_vm0, %v681_v36, 0  ;;  %v464_v36 = vld [vmem:[#allocation3 + $0x8] sm:$0xff] }
 0x134   : > { %678 = vrot.lane.b32.xlu2 %v1573_v8, %s1459_s25  ;;  %695 = vmatpush.bf16.xpose.msrb.mxu1 %v686_v37 }
 0x17e   : > { %v494_v35 = vpop.permute.xlu2 %493 }
 0x17f   : > { %v497_v39 = vsub.f32 %v1595_v15, %v494_v35 }
 0x181   : > { %v500_v40 = vmul.f32 1.442695, %v497_v39 }
 0x183   : > { %1329 = vpow2.f32 %v500_v40 }
 0x186   : > { %v557_v38 = vpop.permute.xlu2 %556 }
 0x187   : > { %1246 = vmatmul.msk.bf16.vlgmr.msra.gmra.mxu2 %vm416_vm0, %v557_v38  ;;  %v466_v38 = vld [vmem:[#allocation4 + $0x8] sm:$0xff] }
 0x189   : > { %v1330_v46 = vpop.eup %1329 }
 0x18a   : > { %v507_v4 = vsel %vm467_vm2, %v1330_v46, 0.0 }
 0x18e   : > { %v489_v41 = vpop.permute.xlu1 %488  ;;  %v679_v50 = vpop.permute.xlu2 %678 }
 0x18f   : > { %v496_v42 = vsub.f32 %v1590_v12, %v489_v41 }
 0x191   : > { %v498_v43 = vmul.f32 1.442695, %v496_v42 }
 0x193   : > { %1331 = vpow2.f32 %v498_v43 }
 0x194   : > { %1333 = vpow2.f32 %v482_v54 }
 0x195   : > { %1335 = vpow2.f32 %v484_v7 }
 0x196   : > { %v801_v44 = vpop.permute.xlu1 %800 }
 0x197   : > { %v806_v45 = vsel %vm416_vm0, %v801_v44, 0 }
 0x198   : > { %815 = vmatpush.bf16.xpose.msrb.mxu0 %v806_v45 }
 0x199   : > { %v1332_v47 = vpop.eup %1331 }
 0x19a   : > { %v515_v48 = vpack.c.bf16 %v1330_v46, %v1332_v47  ;;  %v1662_v60 = vpop.eup %1333  ;;  %v504_v11 = vsel %vm467_vm2, %v1332_v47, 0.0  ;;  %v1726_v46 = vld [vmem:[#allocation2 + $0x28] sm:$0xff] }
 0x19b   : > { %v1336_v9 = vpop.eup %1335 }
 0x19c   : > { %1245 = vmatmul.msk.bf16.vlgmr.msra.gmra.mxu1 %vm467_vm2, %v515_v48  ;;  %v503_v39 = vmul.f32 %v1336_v9, %v464_v36 }
 0x19e   : > { %v799_v49 = vpop.permute.xlu1 %798 }
 0x19f   : > { %1250 = vmatmul.msk.bf16.vlgmr.msrb.gmra.mxu0 %vm416_vm0, %v799_v49 }
 0x1ac   : > { %1248 = vmatmul.msk.bf16.vlgmr.msrb.gmra.mxu1 %vm416_vm0, %v679_v50 }
 0x20a   : > { %v576_v51 = vpop.f32.mrf.mxu2 }
 0x20b   : > { %v1653_v52 = vadd.f32 %v1587_v10, %v576_v51  ;;  %v463_v51 = vld [vmem:[#allocation3] sm:$0xff] }
 0x20d   : > { %v590_v53 = vsel %vm467_vm2, %v1653_v52, -inf }
 0x20e   : > { %591 = vmax.xlane.f32.xlu0 %v590_v53  ;;  %v502_v53 = vmul.f32 %v1662_v60, %v463_v51 }
 0x212   : > { %v578_v59 = vpop.f32.mrf.mxu2 }
 0x213   : > { %v1668_v62 = vadd.f32 %v1587_v10, %v578_v59 }
 0x215   : > { %v593_v2 = vsel %vm467_vm2, %v1668_v62, -inf }
 0x219   : > { %v532_v55 = vpop.f32.mrf.mxu1 }
 0x21c   : > { %v817_v56 = vpop.f32.mrf.mxu0 }
 0x21d   : > { %v1658_v57 = vadd.f32 %v1587_v10, %v817_v56  ;;  %v703_v56 = vld [vmem:[#allocation2 + $0x20] sm:$0xff] }
 0x21f   : > { %v831_v58 = vsel %vm467_vm2, %v1658_v57, -inf }
 0x220   : > { %832 = vmax.xlane.f32.xlu2 %v831_v58 }
 0x221   : > { %v1664_v61 = vpop.f32.mrf.mxu1 }
 0x222   : > { %539 = vperm.xlu0 %1327, %v1662_v60  }
 0x224   : > { %v819_v63 = vpop.f32.mrf.mxu0 }
 0x225   : > { %v1671_v0 = vadd.f32 %v1587_v10, %v819_v63 }
 0x227   : > { %v834_v1 = vsel %vm467_vm2, %v1671_v0, -inf }
 0x228   : > { %835 = vmax.xlane.f32.xlu1 %v834_v1  ;;  %594 = vmax.xlane.f32.xlu2 %v593_v2 }
 0x229   : > { %v697_v3 = vpop.f32.mrf.mxu1 }
 0x22a   : > { %v1688_v12 = vadd.f32 %v1587_v10, %v697_v3 }
 0x22c   : > { %v711_v13 = vsel %vm467_vm2, %v1688_v12, -inf }
 0x230   : > { %508 = vadd.xlane.f32.xlu1 %v507_v4 }
 0x231   : > { %v699_v5 = vpop.f32.mrf.mxu1 }
 0x232   : > { %v1679_v6 = vadd.f32 %v1587_v10, %v699_v5 }
 0x234   : > { %v714_v8 = vsel %vm467_vm2, %v1679_v6, -inf }
 0x238   : > { %715 = vmax.xlane.f32.xlu1 %v714_v8 }
 0x240   : > { %544 = vperm.xlu2 %1326, %v1336_v9  }
 0x269   : > { %505 = vadd.xlane.f32.xlu2 %v504_v11 }
 0x271   : > { %712 = vmax.xlane.f32.xlu2 %v711_v13 }
 0x281   : > { %v592_v15 = vpop.xlane.xlu0 %591 }
 0x282   : > { %v596_v16 = vmax.f32 %v582_v14, %v592_v15 }
 0x284   : > { %676 = vst.msk [vmem:[#allocation2 + $0x10] sm:$0xff] %vm399_vm1, %v596_v16  ;;  %vm598_vm6 = vcmp.gt.f32.partialorder %v596_v16, -inf }
 0x285   : > { %v600_v17 = vsel %vm598_vm6, %v596_v16, 0.0 }
 0x286   : > { %610 = vperm.xlu1 %1325, %v600_v17   ;;  %v602_v26 = vsub.f32 %v582_v14, %v600_v17 }
 0x288   : > { %v604_v34 = vmul.f32 1.442695, %v602_v26 }
 0x289   : > { %638 = vrot.lane.b32.xlu2 %v1640_v33, %s1457_s24 }
 0x28a   : > { %1337 = vpow2.f32 %v604_v34 }
 0x290   : > { %v1722_v45 = vpop.eup %1337 }
 0x293   : > { %v833_v10 = vpop.xlane.xlu2 %832 }
 0x294   : > { %v837_v20 = vmax.f32 %v1695_v18, %v833_v10  ;;  %v540_v21 = vpop.permute.xlu0 %539 }
 0x295   : > { %v547_v22 = vmul.f32 %v540_v21, %v465_v19 }
 0x296   : > { %916 = vst.msk [vmem:[#allocation2 + $0x30] sm:$0xff] %vm399_vm1, %v837_v20  ;;  %vm839_vm7 = vcmp.gt.f32.partialorder %v837_v20, -inf }
 0x297   : > { %v549_v23 = vadd.f32 %v547_v22, %v532_v55  ;;  %v1699_v24 = vsel %vm839_vm7, %v837_v20, 0.0 }
 0x298   : > { %v843_v25 = vsub.f32 %v1695_v18, %v1699_v24  ;;  %851 = vperm.xlu2 %1326, %v1699_v24  }
 0x299   : > { %551 = vst.msk [vmem:[#allocation4] sm:$0xff] %vm416_vm0, %v549_v23 }
 0x29b   : > { %v836_v29 = vpop.xlane.xlu1 %835  ;;  %v595_v30 = vpop.xlane.xlu2 %594 }
 0x29c   : > { %v838_v31 = vmax.f32 %v1705_v27, %v836_v29  ;;  %v597_v32 = vmax.f32 %v1707_v28, %v595_v30  ;;  %v1758_v29 = vld [vmem:[%s385_s12] sm:$0xff] }
 0x29d   : > { %vm923_vm12 = vcmp.gt.f32.partialorder %v1758_v29, 0.0 }
 0x29e   : > { %917 = vst.msk [vmem:[#allocation2 + $0x38] sm:$0xff] %vm399_vm1, %v838_v31  ;;  %vm599_vm8 = vcmp.gt.f32.partialorder %v597_v32, -inf  ;;  %vm840_vm11 = vcmp.gt.f32.partialorder %v838_v31, -inf }
 0x29f   : > { %677 = vst.msk [vmem:[#allocation2 + $0x18] sm:$0xff] %vm399_vm1, %v597_v32  ;;  %v1713_v35 = vsel %vm599_vm8, %v597_v32, 0.0  ;;  %v842_v1 = vsel %vm840_vm11, %v838_v31, 0.0 }
 0x2a0   : > { %615 = vperm.xlu0 %1327, %v1713_v35   ;;  %v603_v37 = vsub.f32 %v1707_v28, %v1713_v35  ;;  %878 = vrot.lane.b32.xlu2 %v1640_v33, %s1462_s27  ;;  %v844_v26 = vsub.f32 %v1705_v27, %v842_v1  ;;  %v1770_v27 = vld [vmem:[%s385_s12 + $0x8] sm:$0xff] }
 0x2a1   : > { %vm924_vm15 = vcmp.gt.f32.partialorder %v1770_v27, 0.0 }
 0x2a2   : > { %v847_v31 = vmul.f32 1.442695, %v844_v26 }
 0x2a3   : > { %v509_v40 = vpop.xlane.xlu1 %508  ;;  %v545_v41 = vpop.permute.xlu2 %544 }
 0x2a4   : > { %v511_v42 = vadd.f32 %v509_v40, %v503_v39  ;;  %v548_v43 = vmul.f32 %v545_v41, %v466_v38 }
 0x2a6   : > { %514 = vst.msk [vmem:[#allocation3 + $0x8] sm:$0xff] %vm399_vm1, %v511_v42  ;;  %v550_v44 = vadd.f32 %v548_v43, %v1664_v61 }
 0x2a8   : > { %552 = vst.msk [vmem:[#allocation4 + $0x8] sm:$0xff] %vm416_vm0, %v550_v44  ;;  %662 = vperm.xlu2 %1326, %v1722_v45  }
 0x2ab   : > { %v716_v47 = vpop.xlane.xlu1 %715 }
 0x2ac   : > { %v718_v48 = vmax.f32 %v1726_v46, %v716_v47 }
 0x2ad   : > { %v926_v34 = vld [vmem:[#allocation3 + $0x8] sm:$0xff] }
 0x2ae   : > { %797 = vst.msk [vmem:[#allocation2 + $0x28] sm:$0xff] %vm399_vm1, %v718_v48  ;;  %vm720_vm9 = vcmp.gt.f32.partialorder %v718_v48, -inf  ;;  %vm928_vm3 = vcmp.gt.f32.partialorder %v926_v34, 0.0 }
 0x2af   : > { %v1730_v49 = vsel %vm720_vm9, %v718_v48, 0.0  ;;  %vm930_vm4 = vmand %vm928_vm3, %vm924_vm15 }
 0x2b0   : > { %v724_v50 = vsub.f32 %v1726_v46, %v1730_v49  ;;  %736 = vperm.xlu1 %1325, %v1730_v49   ;;  %v932_v39 = vsel %vm930_vm4, %v926_v34, 1.0 }
 0x2b8   : > { %758 = vrot.lane.b32.xlu1 %v1640_v33, %s1459_s25 }
 0x2dc   : > { %v506_v54 = vpop.xlane.xlu2 %505 }
 0x2dd   : > { %v510_v55 = vadd.f32 %v506_v54, %v502_v53 }
 0x2df   : > { %513 = vst.msk [vmem:[#allocation3] sm:$0xff] %vm399_vm1, %v510_v55 }
 0x2e4   : > { %v713_v58 = vpop.xlane.xlu2 %712 }
 0x2e5   : > { %v717_v59 = vmax.f32 %v703_v56, %v713_v58 }
 0x2e6   : > { %v925_v30 = vld [vmem:[#allocation3] sm:$0xff] }
 0x2e7   : > { %796 = vst.msk [vmem:[#allocation2 + $0x20] sm:$0xff] %vm399_vm1, %v717_v59  ;;  %vm719_vm10 = vcmp.gt.f32.partialorder %v717_v59, -inf  ;;  %vm927_vm13 = vcmp.gt.f32.partialorder %v925_v30, 0.0 }
 0x2e8   : > { %v721_v61 = vsel %vm719_vm10, %v717_v59, 0.0  ;;  %vm1766_vm14 = vmand %vm927_vm13, %vm923_vm12 }
 0x2e9   : > { %731 = vperm.xlu0 %1327, %v721_v61   ;;  %v723_v63 = vsub.f32 %v703_v56, %v721_v61  ;;  %v931_v36 = vsel %vm1766_vm14, %v925_v30, 1.0 }
 0x2eb   : > { %v725_v22 = vmul.f32 1.442695, %v723_v63 }
 0x2ec   : > { %v639_v33 = vpop.permute.xlu2 %638 }
 0x2ed   : > { %v644_v2 = vsel %vm519_vm5, %v639_v33, 0 }
 0x2ee   : > { %653 = vmatpush.bf16.msra.mxu3 %v644_v2 }
 0x2f1   : > { %856 = vperm.xlu0 %1327, %v842_v1  }
 0x2f4   : > { %v852_v5 = vpop.permute.xlu2 %851 }
 0x2f5   : > { %v859_v7 = vsub.f32 %v1658_v57, %v852_v5 }
 0x2f7   : > { %v861_v11 = vmul.f32 1.442695, %v859_v7 }
 0x2f8   : > { %v611_v60 = vpop.permute.xlu1 %610 }
 0x2f9   : > { %v618_v3 = vsub.f32 %v1653_v52, %v611_v60 }
 0x2fb   : > { %v620_v4 = vmul.f32 1.442695, %v618_v3  ;;  %v727_v3 = vmul.f32 1.442695, %v724_v50 }
 0x2fc   : > { %v879_v44 = vpop.permute.xlu2 %878 }
 0x2fd   : > { %1339 = vpow2.f32 %v620_v4  ;;  %v884_v47 = vsel %vm519_vm5, %v879_v44, 0 }
 0x2fe   : > { %893 = vmatpush.bf16.msrb.mxu2 %v884_v47 }
 0x303   : > { %v1340_v14 = vpop.eup %1339 }
 0x304   : > { %v626_v15 = vsel %vm467_vm2, %v1340_v14, 0.0 }
 0x312   : > { %v616_v8 = vpop.permute.xlu0 %615 }
 0x313   : > { %v619_v9 = vsub.f32 %v1668_v62, %v616_v8  ;;  %v585_v8 = vld [vmem:[#allocation3 + $0x10] sm:$0xff] }
 0x314   : > { %v624_v28 = vmul.f32 %v1722_v45, %v585_v8 }
 0x315   : > { %v622_v13 = vmul.f32 1.442695, %v619_v9  ;;  %v826_v9 = vld [vmem:[#allocation3 + $0x30] sm:$0xff] }
 0x317   : > { %1341 = vpow2.f32 %v622_v13 }
 0x318   : > { %1343 = vpow2.f32 %v861_v11 }
 0x31b   : > { %627 = vadd.xlane.f32.xlu0 %v626_v15 }
 0x31d   : > { %v1342_v16 = vpop.eup %1341 }
 0x31e   : > { %v629_v17 = vsel %vm467_vm2, %v1342_v16, 0.0  ;;  %v636_v52 = vpack.c.bf16 %v1342_v16, %v1340_v14  ;;  %v1746_v19 = vpop.eup %1343  ;;  %v707_v16 = vld [vmem:[#allocation3 + $0x28] sm:$0xff] }
 0x31f   : > { %630 = vadd.xlane.f32.xlu1 %v629_v17  ;;  %v867_v62 = vsel %vm467_vm2, %v1746_v19, 0.0 }
 0x320   : > { %1247 = vmatmul.msk.bf16.vlgmr.msra.gmra.mxu3 %vm467_vm2, %v636_v52  ;;  %v588_v52 = vld [vmem:[#allocation4 + $0x10] sm:$0xff] }
 0x322   : > { %v737_v57 = vpop.permute.xlu1 %736 }
 0x323   : > { %v740_v10 = vsub.f32 %v1679_v6, %v737_v57  ;;  %868 = vadd.xlane.f32.xlu0 %v867_v62 }
 0x325   : > { %v743_v20 = vmul.f32 1.442695, %v740_v10 }
 0x327   : > { %1345 = vpow2.f32 %v743_v20 }
 0x328   : > { %1347 = vpow2.f32 %v725_v22 }
 0x329   : > { %1349 = vpow2.f32 %v847_v31 }
 0x32a   : > { %1351 = vrcp.f32 %v931_v36  ;;  %v759_v41 = vpop.permute.xlu1 %758 }
 0x32b   : > { %1353 = vrcp.f32 %v932_v39  ;;  %v764_v42 = vsel %vm519_vm5, %v759_v41, 0 }
 0x32c   : > { %773 = vmatpush.bf16.msrb.mxu3 %v764_v42 }
 0x32d   : > { %v1346_v21 = vpop.eup %1345 }
 0x32e   : > { %v750_v23 = vsel %vm467_vm2, %v1346_v21, 0.0  ;;  %v1761_v6 = vpop.eup %1347 }
 0x32f   : > { %751 = vadd.xlane.f32.xlu0 %v750_v23  ;;  %v1775_v38 = vpop.eup %1349 }
 0x330   : > { %v1352_v40 = vpop.eup %1351 }
 0x331   : > { %v935_v43 = vsel %vm1766_vm14, %v1352_v40, 0.0  ;;  %v1354_v48 = vpop.eup %1353 }
 0x332   : > { %v936_v51 = vsel %vm930_vm4, %v1354_v48, 0.0 }
 0x338   : > { %782 = vperm.xlu1 %1325, %v1761_v6  }
 0x340   : > { %907 = vperm.xlu1 %1325, %v1775_v38  }
 0x348   : > { %941 = vperm.xlu1 %1325, %v935_v43  }
 0x350   : > { %946 = vperm.xlu1 %1325, %v936_v51  }
 0x35b   : > { %v732_v53 = vpop.permute.xlu0 %731 }
 0x35c   : > { %v739_v54 = vsub.f32 %v1688_v12, %v732_v53  ;;  %v845_v12 = vmul.f32 1.442695, %v843_v25  ;;  %v937_v53 = vld [vmem:[#allocation4] sm:$0xff] }
 0x35e   : > { %v741_v55 = vmul.f32 1.442695, %v739_v54 }
 0x360   : > { %1355 = vpow2.f32 %v741_v55 }
 0x363   : > { %v857_v56 = vpop.permute.xlu0 %856 }
 0x364   : > { %v860_v58 = vsub.f32 %v1671_v0, %v857_v56  ;;  %v606_v0 = vmul.f32 1.442695, %v603_v37  ;;  %v586_v37 = vld [vmem:[#allocation3 + $0x18] sm:$0xff]  ;;  %v938_v56 = vld [vmem:[#allocation4 + $0x8] sm:$0xff] }
 0x366   : > { %v1356_v59 = vpop.eup %1355  ;;  %v863_v61 = vmul.f32 1.442695, %v860_v58 }
 0x367   : > { %v747_v63 = vsel %vm467_vm2, %v1356_v59, 0.0  ;;  %v757_v1 = vpack.c.bf16 %v1346_v21, %v1356_v59 }
 0x368   : > { %1357 = vpow2.f32 %v863_v61  ;;  %748 = vadd.xlane.f32.xlu2 %v747_v63  ;;  %v706_v61 = vld [vmem:[#allocation3 + $0x20] sm:$0xff] }
 0x369   : > { %1249 = vmatmul.msk.bf16.vlgmr.msrb.gmra.mxu3 %vm467_vm2, %v757_v1  ;;  %1359 = vpow2.f32 %v606_v0  ;;  %v745_v63 = vmul.f32 %v1761_v6, %v706_v61 }
 0x36a   : > { %1361 = vpow2.f32 %v845_v12 }
 0x36b   : > { %1363 = vpow2.f32 %v727_v3 }
 0x36e   : > { %v1358_v33 = vpop.eup %1357 }
 0x36f   : > { %v870_v2 = vsel %vm467_vm2, %v1358_v33, 0.0  ;;  %v877_v60 = vpack.c.bf16 %v1358_v33, %v1746_v19  ;;  %v1360_v4 = vpop.eup %1359  ;;  %v663_v19 = vpop.permute.xlu2 %662 }
 0x370   : > { %871 = vadd.xlane.f32.xlu0 %v870_v2  ;;  %v1362_v5 = vpop.eup %1361  ;;  %v625_v24 = vmul.f32 %v1360_v4, %v586_v37  ;;  %v670_v21 = vmul.f32 %v663_v19, %v588_v52  ;;  %v827_v2 = vld [vmem:[#allocation3 + $0x38] sm:$0xff] }
 0x371   : > { %1251 = vmatmul.msk.bf16.vlgmr.msrb.gmra.mxu2 %vm467_vm2, %v877_v60  ;;  %v1364_v7 = vpop.eup %1363  ;;  %v865_v49 = vmul.f32 %v1362_v5, %v826_v9  ;;  %v589_v60 = vld [vmem:[#allocation4 + $0x18] sm:$0xff]  ;;  %v866_v0 = vmul.f32 %v1775_v38, %v827_v2 }
 0x372   : > { %v746_v10 = vmul.f32 %v1364_v7, %v707_v16  ;;  %v830_v19 = vld [vmem:[#allocation4 + $0x38] sm:$0xff] }
 0x380   : > { %667 = vperm.xlu2 %1326, %v1360_v4  }
 0x384   : > { %902 = vperm.xlu0 %1327, %v1362_v5  }
 0x388   : > { %787 = vperm.xlu2 %1326, %v1364_v7  }
 0x38e   : > { %v628_v35 = vpop.xlane.xlu0 %627 }
 0x38f   : > { %v632_v18 = vadd.f32 %v628_v35, %v624_v28  ;;  %v709_v35 = vld [vmem:[#allocation4 + $0x20] sm:$0xff] }
 0x391   : > { %634 = vst.msk [vmem:[#allocation3 + $0x10] sm:$0xff] %vm399_vm1, %v632_v18 }
 0x392   : > { %v631_v25 = vpop.xlane.xlu1 %630 }
 0x393   : > { %v633_v46 = vadd.f32 %v631_v25, %v625_v24 }
 0x395   : > { %635 = vst.msk [vmem:[#allocation3 + $0x18] sm:$0xff] %vm399_vm1, %v633_v46  ;;  %v710_v46 = vld [vmem:[#allocation4 + $0x28] sm:$0xff] }
 0x396   : > { %v869_v50 = vpop.xlane.xlu0 %868 }
 0x397   : > { %v873_v11 = vadd.f32 %v869_v50, %v865_v49 }
 0x398   : > { %v953_v13 = vld [vmem:[#allocation3 + $0x10] sm:$0xff] }
 0x399   : > { %875 = vst.msk [vmem:[#allocation3 + $0x30] sm:$0xff] %vm399_vm1, %v873_v11  ;;  %vm955_vm2 = vcmp.gt.f32.partialorder %v953_v13, 0.0 }
 0x39a   : > { %vm1806_vm5 = vmand %vm955_vm2, %vm923_vm12 }
 0x39b   : > { %v959_v14 = vsel %vm1806_vm5, %v953_v13, 1.0 }
 0x39c   : > { %1365 = vrcp.f32 %v959_v14  ;;  %v954_v15 = vld [vmem:[#allocation3 + $0x18] sm:$0xff] }
 0x39d   : > { %vm956_vm6 = vcmp.gt.f32.partialorder %v954_v15, 0.0 }
 0x39e   : > { %vm1814_vm7 = vmand %vm956_vm6, %vm924_vm15 }
 0x39f   : > { %v960_v57 = vsel %vm1814_vm7, %v954_v15, 1.0  ;;  %v829_v15 = vld [vmem:[#allocation4 + $0x30] sm:$0xff] }
 0x3a0   : > { %1367 = vrcp.f32 %v960_v57  ;;  %v1027_v62 = vld [vmem:[#allocation3 + $0x30] sm:$0xff] }
 0x3a1   : > { %vm1029_vm8 = vcmp.gt.f32.partialorder %v1027_v62, 0.0 }
 0x3a2   : > { %v1366_v20 = vpop.eup %1365  ;;  %v752_v22 = vpop.xlane.xlu0 %751  ;;  %vm1822_vm9 = vmand %vm1029_vm8, %vm923_vm12 }
 0x3a3   : > { %v754_v26 = vadd.f32 %v752_v22, %v746_v10  ;;  %v655_v30 = vpop.f32.mrf.mxu3  ;;  %v963_v31 = vsel %vm1806_vm5, %v1366_v20, 0.0  ;;  %v1033_v32 = vsel %vm1822_vm9, %v1027_v62, 1.0 }
 0x3a4   : > { %v672_v34 = vadd.f32 %v670_v21, %v655_v30  ;;  %969 = vperm.xlu0 %1327, %v963_v31   ;;  %1369 = vrcp.f32 %v1033_v32 }
 0x3a5   : > { %756 = vst.msk [vmem:[#allocation3 + $0x28] sm:$0xff] %vm399_vm1, %v754_v26 }
 0x3a6   : > { %v1368_v36 = vpop.eup %1367  ;;  %674 = vst.msk [vmem:[#allocation4 + $0x10] sm:$0xff] %vm416_vm0, %v672_v34 }
 0x3a7   : > { %v964_v39 = vsel %vm1814_vm7, %v1368_v36, 0.0 }
 0x3a8   : > { %974 = vperm.xlu2 %1326, %v964_v39  }
 0x3aa   : > { %v783_v40 = vpop.permute.xlu1 %782  ;;  %v1370_v41 = vpop.eup %1369 }
 0x3ab   : > { %v1037_v43 = vsel %vm1822_vm9, %v1370_v41, 0.0  ;;  %v657_v4 = vpop.f32.mrf.mxu3  ;;  %v790_v37 = vmul.f32 %v783_v40, %v709_v35 }
 0x3ac   : > { %v991_v42 = vld [vmem:[#allocation3 + $0x28] sm:$0xff] }
 0x3ad   : > { %vm993_vm10 = vcmp.gt.f32.partialorder %v991_v42, 0.0  ;;  %v965_v34 = vld [vmem:[#allocation4 + $0x10] sm:$0xff] }
 0x3ae   : > { %vm995_vm11 = vmand %vm993_vm10, %vm924_vm15 }
 0x3af   : > { %v997_v44 = vsel %vm995_vm11, %v991_v42, 1.0 }
 0x3b0   : > { %1043 = vperm.xlu2 %1326, %v1037_v43   ;;  %1371 = vrcp.f32 %v997_v44 }
 0x3b2   : > { %v1838_v47 = vpop.permute.xlu1 %907 }
 0x3b3   : > { %v911_v10 = vmul.f32 %v1838_v47, %v830_v19 }
 0x3b6   : > { %v1372_v48 = vpop.eup %1371 }
 0x3b7   : > { %v1001_v51 = vsel %vm995_vm11, %v1372_v48, 0.0 }
 0x3b8   : > { %1011 = vperm.xlu0 %1327, %v1001_v51  }
 0x3ba   : > { %v942_v54 = vpop.permute.xlu1 %941 }
 0x3bb   : > { %v949_v55 = vmul.f32 %v942_v54, %v937_v53 }
 0x3bd   : > { %951 = vst.msk [vmem:[%s1843_s14] sm:$0xff] %vm416_vm0, %v949_v55 }
 0x3c2   : > { %v947_v58 = vpop.permute.xlu1 %946 }
 0x3c3   : > { %v950_v59 = vmul.f32 %v947_v58, %v938_v56 }
 0x3c5   : > { %952 = vst.msk [vmem:[%s1843_s14 + $0x8] sm:$0xff] %vm416_vm0, %v950_v59 }
 0x3db   : > { %v749_v1 = vpop.xlane.xlu2 %748 }
 0x3dc   : > { %v753_v33 = vadd.f32 %v749_v1, %v745_v63 }
 0x3de   : > { %755 = vst.msk [vmem:[#allocation3 + $0x20] sm:$0xff] %vm399_vm1, %v753_v33 }
 0x3e3   : > { %v668_v12 = vpop.permute.xlu2 %667  ;;  %v872_v3 = vpop.xlane.xlu0 %871 }
 0x3e4   : > { %v671_v5 = vmul.f32 %v668_v12, %v589_v60  ;;  %v874_v7 = vadd.f32 %v872_v3, %v866_v0 }
 0x3e5   : > { %v990_v8 = vld [vmem:[#allocation3 + $0x20] sm:$0xff] }
 0x3e6   : > { %v673_v28 = vadd.f32 %v671_v5, %v657_v4  ;;  %876 = vst.msk [vmem:[#allocation3 + $0x38] sm:$0xff] %vm399_vm1, %v874_v7  ;;  %vm992_vm13 = vcmp.gt.f32.partialorder %v990_v8, 0.0 }
 0x3e7   : > { %vm1855_vm14 = vmand %vm992_vm13, %vm923_vm12  ;;  %vm1024_vm12 = vcmask 785920  }
 0x3e8   : > { %675 = vst.msk [vmem:[#allocation4 + $0x18] sm:$0xff] %vm416_vm0, %v673_v28  ;;  %v996_v38 = vsel %vm1855_vm14, %v990_v8, 1.0 }
 0x3e9   : > { %1373 = vrcp.f32 %v996_v38 }
 0x3eb   : > { %v788_v49 = vpop.permute.xlu2 %787 }
 0x3ec   : > { %v775_v18 = vpop.f32.mrf.mxu3  ;;  %v791_v13 = vmul.f32 %v788_v49, %v710_v46 }
 0x3ed   : > { %v792_v24 = vadd.f32 %v790_v37, %v775_v18  ;;  %v1028_v25 = vld [vmem:[#allocation3 + $0x38] sm:$0xff] }
 0x3ee   : > { %vm1030_vm3 = vcmp.gt.f32.partialorder %v1028_v25, 0.0 }
 0x3ef   : > { %v1374_v9 = vpop.eup %1373  ;;  %794 = vst.msk [vmem:[#allocation4 + $0x20] sm:$0xff] %vm416_vm0, %v792_v24  ;;  %vm1865_vm1 = vmand %vm1030_vm3, %vm924_vm15  ;;  %v966_v22 = vld [vmem:[#allocation4 + $0x18] sm:$0xff]  ;;  %vm1061_vm15 = vcmask 1048320  }
 0x3f0   : > { %v1000_v50 = vsel %vm1855_vm14, %v1374_v9, 0.0  ;;  %v1034_v11 = vsel %vm1865_vm1, %v1028_v25, 1.0 }
 0x3f1   : > { %1006 = vperm.xlu1 %1325, %v1000_v50   ;;  %1375 = vrcp.f32 %v1034_v11 }
 0x3f4   : > { %v777_v45 = vpop.f32.mrf.mxu3  ;;  %v895_v14 = vpop.f32.mrf.mxu2 }
 0x3f5   : > { %v793_v16 = vadd.f32 %v791_v13, %v777_v45 }
 0x3f6   : > { %v903_v27 = vpop.permute.xlu0 %902  ;;  %v1002_v44 = vld [vmem:[#allocation4 + $0x20] sm:$0xff] }
 0x3f7   : > { %v1376_v17 = vpop.eup %1375  ;;  %795 = vst.msk [vmem:[#allocation4 + $0x28] sm:$0xff] %vm416_vm0, %v793_v16  ;;  %v910_v52 = vmul.f32 %v903_v27, %v829_v15 }
 0x3f8   : > { %v1038_v57 = vsel %vm1865_vm1, %v1376_v17, 0.0 }
 0x3f9   : > { %v912_v62 = vadd.f32 %v910_v52, %v895_v14  ;;  %1048 = vperm.xlu1 %1325, %v1038_v57  }
 0x3fb   : > { %914 = vst.msk [vmem:[#allocation4 + $0x30] sm:$0xff] %vm416_vm0, %v912_v62 }
 0x3fc   : > { %v897_v20 = vpop.f32.mrf.mxu2 }
 0x3fd   : > { %v913_v21 = vadd.f32 %v911_v10, %v897_v20 }
 0x3fe   : > { %v1003_v40 = vld [vmem:[#allocation4 + $0x28] sm:$0xff] }
 0x3ff   : > { %915 = vst.msk [vmem:[#allocation4 + $0x38] sm:$0xff] %vm416_vm0, %v913_v21  ;;  %vm987_vm0 = vcmask 523520  }
 0x402   : > { %v975_v23 = vpop.permute.xlu2 %974  ;;  %v1039_v31 = vld [vmem:[#allocation4 + $0x30] sm:$0xff] }
 0x403   : > { %v978_v26 = vmul.f32 %v975_v23, %v966_v22 }
 0x405   : > { %983 = vrot.lane.b32.xlu2 %v978_v26, %s1462_s27 }
 0x406   : > { %v1040_v51 = vld [vmem:[#allocation4 + $0x38] sm:$0xff] }
 0x40a   : > { %v1044_v30 = vpop.permute.xlu2 %1043 }
 0x40b   : > { %v1051_v32 = vmul.f32 %v1044_v30, %v1039_v31 }
 0x40d   : > { %1055 = vrot.lane.b32.xlu2 %v1051_v32, %s1457_s24 }
 0x416   : > { %v970_v36 = vpop.permute.xlu0 %969 }
 0x417   : > { %v977_v39 = vmul.f32 %v970_v36, %v965_v34 }
 0x419   : > { %981 = vrot.lane.b32.xlu0 %v977_v39, %s1462_s27  ;;  %s1079_s27 = sshll.u32 %s1843_s14, 4  ;;  %s1080_s27 = int_to_ptr.vmem [resolvable:$true] %s1079_s27 }
 0x42a   : > { %v1012_v41 = vpop.permute.xlu0 %1011 }
 0x42b   : > { %v1015_v42 = vmul.f32 %v1012_v41, %v1003_v40 }
 0x42d   : > { %1020 = vrot.lane.b32.xlu0 %v1015_v42, %s1459_s25 }
 0x45f   : > { %v984_v43 = vpop.permute.xlu2 %983 }
 0x460   : > { %989 = vst.msk [vmem:[%s1843_s14 + $0x8] sm:$0xff] %vm987_vm0, %v984_v43 }
 0x463   : > { %v1007_v47 = vpop.permute.xlu1 %1006 }
 0x464   : > { %v1014_v48 = vmul.f32 %v1007_v47, %v1002_v44 }
 0x466   : > { %1018 = vrot.lane.b32.xlu1 %v1014_v48, %s1459_s25  ;;  %s1078_s25 = scalar_lea.hbm %s1935_s5, %s1261_s15 }
 0x467   : > { %v1056_v59 = vpop.permute.xlu2 %1055 }
 0x46b   : > { %v1049_v53 = vpop.permute.xlu1 %1048 }
 0x46c   : > { %v1052_v54 = vmul.f32 %v1049_v53, %v1040_v51 }
 0x46e   : > { %1057 = vrot.lane.b32.xlu1 %v1052_v54, %s1457_s24  ;;  %s1081_s24 = sshll.u32 %s1078_s25, 4  ;;  %s1082_s24 = int_to_ptr.hbm [resolvable:$true] %s1081_s24 }
 0x46f   : > { %s1391_s7 = sshra.s32 %s1082_s24, 4  ;;  %s1392_s7 = int_to_ptr.hbm [resolvable:$true] %s1391_s7 }
 0x470   : > { %s1393_s21 = scalar_lea.hbm %s1392_s7, 16  ;;  %p1398_p1 = scmp.lt.s32.totalorder %s1392_s7, %s1935_s5 }
 0x471   : > { %p1394_p12 = scmp.ne.s32.totalorder %s1392_s7, %s1393_s21  ;;  %p1399_p2 = scmp.lt.s32.totalorder %s1397_s11, %s1393_s21 }
 0x473   : > { %p1395_p13 = pnand %p1394_p12, %p1535_p4  ;;  %p1400_p3 = por %p1399_p2, %p1398_p1 }
 0x475   : > { %p1396_p0 = pneg %p1395_p13 }
 0x477   : > { %p1401_p5 = pnand %p1400_p3, %p1396_p0 }
 0x48b   : > { %v982_v55 = vpop.permute.xlu0 %981 }
 0x48c   : > { %988 = vst.msk [vmem:[%s1843_s14] sm:$0xff] %vm987_vm0, %v982_v55 }
 0x49f   : > { %v1021_v56 = vpop.permute.xlu0 %1020 }
 0x4a0   : > { %1026 = vst.msk [vmem:[%s1843_s14 + $0x8] sm:$0xff] %vm1024_vm12, %v1021_v56 }
 0x4d8   : > { %v1019_v58 = vpop.permute.xlu1 %1018 }
 0x4d9   : > { %1025 = vst.msk [vmem:[%s1843_s14] sm:$0xff] %vm1024_vm12, %v1019_v58 }
 0x4da   : > { %1062 = vst.msk [vmem:[%s1843_s14] sm:$0xff] %vm1061_vm15, %v1056_v59 }
 0x4e0   : > { %v1058_v61 = vpop.permute.xlu1 %1057 }
 0x4e1   : > { %1063 = vst.msk [vmem:[%s1843_s14 + $0x8] sm:$0xff] %vm1061_vm15, %v1058_v61 }
 0x4e2   : > { %1404 = shalt.err (!%p1401_p5)
}
 0x4e3   : > { %s1463_s8 = smov 128   ;;  %s1464_s14 = smov 8  }
 0x4e4   : > { %1262 = dma.vmem_to_hbm [thread:$0]  (%p1535_p4), %s1080_s27, 256, %s1082_s24, %s1065_s29, %s1463_s8, %s1463_s8, %s1464_s14  }
 0x4e5 PF: > { %p1268_p6 = scmp.ge.s32.totalorder %s1455_s23, 2  ;;  %s1096_s15 = sand.u32 1, %s1435_s18  }
 0x4e6   : > { %s1097_s16 = scalar_lea.sflag [#allocation6], %s1096_s15 }
 0x4e7   : > { %p1265_p7 = pnand %p1268_p6, %p1542_p8 }
 0x4e9   : > { %p1266_p9 = pneg %p1265_p7 }
 0x4eb   : > { %1430 = dma.done.wait (%p1266_p9), %s1097_s16, 256  }
 0x4ec   : > { %1432 = vsyncadd (%p1266_p9), %s1097_s16, 4294967040  ;;  %s18_s23 = sadd.s32 1, %s1455_s23   ;;  %s1950_s18 = smov %s1439_s19 }
 0x4ed   : > { %p15_p10 = scmp.ge.s32.totalorder %s18_s23, 4   ;;  %s1951_s19 = smov %s1443_s20 }
 0x4ee   : > { %s1952_s20 = smov %s1548_s6  ;;  %s1953_s21 = smov %s1451_s22 }
 0x4ef   : > { %s1954_s22 = smov %s1956_s26  ;;  %17 = sbr.rel (!%p15_p10) target bundleno = 4 (0x4), region = 104 }
 0x4f4   :  { %1103 = vsyncpa [#allocation6], 1 }
 0x4f5   :  { %1105 = vsyncpa [#allocation6 + $0x1], 1 }

</bundles_post_ra>
